<compile_context>
chip_gen: v7x
topology: tpu7x:2x2x1
jax: 0.10.0
libtpu: 0.0.40
codegen_flags: <defaults>
</compile_context>

<pallas_src>
import functools
import math

import jax
import jax.numpy as jnp
from jax.experimental import pallas as pl
from jax.experimental.pallas import tpu as pltpu

_LANE = 128  # final output channels are padded to 128 lanes for unmasked stores


# ----------------------------- kernel helpers ------------------------------

def _im2col(x, k):
    """x: (B, H, W, C) -> ((B*ho*wo, k*k*C), ho, wo); rows are offset-major (kh,kw,c)."""
    b, hh, ww, c = x.shape
    ho, wo = hh - k + 1, ww - k + 1
    cols = [x[:, kh:kh + ho, kw:kw + wo, :]
            for kh in range(k) for kw in range(k)]
    patches = jnp.concatenate(cols, axis=-1)               # (B, ho, wo, k*k*C)
    return patches.reshape(b * ho * wo, k * k * c), ho, wo


def _pool2x2_relu(y_flat, b, ho, wo, c):
    """2x2 / stride-2 max-pool + relu on a channel-last (B*ho*wo, c) conv output."""
    hp, wp = ho // 2, wo // 2
    y = y_flat.reshape(b, ho, wo, c)
    if (ho % 2) or (wo % 2):                 # torch max_pool2d floors odd dims
        y = y[:, :2 * hp, :2 * wp, :]
    y = jnp.max(y.reshape(b, 2 * hp, wp, 2, c), axis=3)    # pool along W
    y = jnp.max(y.reshape(b, hp, 2, wp, c), axis=2)        # pool along H
    return jnp.maximum(y, 0.0)                              # (B, hp, wp, c)


def _features_kernel(x_ref, w1_ref, b1_ref, w2_ref, b2_ref, o_ref, *, k1, k2):
    x = x_ref[...]                                          # (B, H, W, C_in)
    b = x.shape[0]
    o1 = w1_ref.shape[-1]                                   # 24 real mid channels

    # conv1 + bias: single im2col matmul, K = k1*k1*c_in
    p1, ho1, wo1 = _im2col(x, k1)                           # (B*ho1*wo1, 100)
    y1 = jnp.dot(p1, w1_ref[...],
                 preferred_element_type=jnp.float32) + b1_ref[...]
    h1 = _pool2x2_relu(y1, b, ho1, wo1, o1)                 # (B, hp1, wp1, 24)

    # conv2 + bias: single im2col matmul over the real 24 channels, K = k2*k2*24
    p2, ho2, wo2 = _im2col(h1, k2)                          # (B*ho2*wo2, 216)
    y2 = jnp.dot(p2, w2_ref[...],
                 preferred_element_type=jnp.float32) + b2_ref[...]
    h2 = _pool2x2_relu(y2, b, ho2, wo2, w2_ref.shape[-1])   # (B, hf, wf, 128)

    o_ref[...] = h2.astype(o_ref.dtype)


# ------------------------------ param packing --------------------------------

def pack_params(params):
    """One-time weight packing (do NOT call per forward pass)."""
    w1, b1, w2, b2 = params
    o1, c_in, k1, _ = w1.shape
    o2, c_mid, k2, _ = w2.shape
    assert c_mid == o1 and c_in <= _LANE and o1 <= _LANE and o2 <= _LANE
    f32 = jnp.float32
    # conv1: OIHW -> rows (kh,kw,cin) offset-major, cols = real 24 out channels
    w1_p = jnp.transpose(w1, (2, 3, 1, 0)).reshape(k1 * k1 * c_in, o1).astype(f32)
    b1_p = b1.reshape(1, o1).astype(f32)
    # conv2: contract over the real o1 channels; pad ONLY the out-channel (lane) dim
    w2_p = jnp.pad(jnp.transpose(w2, (2, 3, 1, 0)).reshape(k2 * k2 * o1, o2),
                   ((0, 0), (0, _LANE - o2))).astype(f32)
    b2_p = jnp.pad(b2, (0, _LANE - o2)).reshape(1, _LANE).astype(f32)
    arrays = (w1_p, b1_p, w2_p, b2_p)
    meta = dict(k1=int(k1), k2=int(k2), out_channels=int(o2))
    return arrays, meta


def _pick_batch_block(n):
    # Fold batch into the matmul M dim, but keep >=2 grid steps when possible so
    # both TensorCores can be used on v7x (grid is a serial loop on v5e/v6e).
    for b in (8, 4, 2, 1):
        if n % b == 0 and n // b >= 2:
            return b
    return max(n, 1)


# ------------------------------- wrapper ------------------------------------

def features_detector_forward(x, w1_p, b1_p, w2_p, b2_p, *, k1, k2, out_channels):
    """x: (N, C_in, H, W) NCHW (PyTorch layout). Returns NCHW output."""
    n, c_in, h, w = x.shape
    assert w1_p.shape[0] == k1 * k1 * c_in

    ho1, wo1 = h - k1 + 1, w - k1 + 1
    hp1, wp1 = ho1 // 2, wo1 // 2
    ho2, wo2 = hp1 - k2 + 1, wp1 - k2 + 1
    hf, wf = ho2 // 2, wo2 // 2

    b_blk = _pick_batch_block(n)
    x_nhwc = jnp.transpose(x, (0, 2, 3, 1)).astype(jnp.float32)

    kernel = functools.partial(_features_kernel, k1=k1, k2=k2)
    out_pad = pl.pallas_call(
        kernel,
        out_shape=jax.ShapeDtypeStruct((n, hf, wf, _LANE), jnp.float32),
        grid=(n // b_blk,),
        in_specs=[
            pl.BlockSpec((b_blk, h, w, c_in), lambda i: (i, 0, 0, 0)),
            # weights/biases: constant index maps -> DMA'd once, resident across steps
            pl.BlockSpec(w1_p.shape, lambda i: (0, 0)),
            pl.BlockSpec(b1_p.shape, lambda i: (0, 0)),
            pl.BlockSpec(w2_p.shape, lambda i: (0, 0)),
            pl.BlockSpec(b2_p.shape, lambda i: (0, 0)),
        ],
        out_specs=pl.BlockSpec((b_blk, hf, wf, _LANE), lambda i: (i, 0, 0, 0)),
        compiler_params=pltpu.CompilerParams(
            dimension_semantics=("parallel",)),
    )(x_nhwc, w1_p, b1_p, w2_p, b2_p)

    # Strip channel padding and go back to NCHW to match PyTorch.  At real
    # feature-map sizes, keep the padded NHWC output for the downstream
    # consumer instead of paying this extra HBM round trip.
    return jnp.transpose(out_pad[..., :out_channels], (0, 3, 1, 2))


# ------------------------------ params / ref ---------------------------------

def init_params(key, in_channels, out_channels):
    k1, k2, k3, k4 = jax.random.split(key, 4)
    w1 = 0.1 * jax.random.normal(k1, (24, in_channels, 5, 5), jnp.float32)
    b1 = 0.1 * jax.random.normal(k2, (24,), jnp.float32)
    w2 = 0.1 * jax.random.normal(k3, (out_channels, 24, 3, 3), jnp.float32)
    b2 = 0.1 * jax.random.normal(k4, (out_channels,), jnp.float32)
    return (w1, b1, w2, b2)


def _reference(x, params):
    # pure-JAX reference for correctness check
    w1, b1, w2, b2 = params

    def conv(x, w, b):
        y = jax.lax.conv_general_dilated(
            x, w, (1, 1), "VALID", dimension_numbers=("NCHW", "OIHW", "NCHW"))
        return y + b[None, :, None, None]

    def pool_relu(y):
        m = jax.lax.reduce_window(y, -jnp.inf, jax.lax.max,
                                  (1, 1, 2, 2), (1, 1, 2, 2), "VALID")
        return jnp.maximum(m, 0.0)

    x = pool_relu(conv(x, w1, b1))
    x = pool_relu(conv(x, w2, b2))
    return x


if __name__ == "__main__":
    in_channels, out_channels = 4, 8
    N, H, W = 2, 16, 16

    key = jax.random.PRNGKey(0)
    kx, kp = jax.random.split(key)
    x = jax.random.normal(kx, (N, in_channels, H, W), jnp.float32)
    params = init_params(kp, in_channels, out_channels)

    packed, meta = pack_params(params)          # weights packed ONCE, outside forward
    fwd = jax.jit(functools.partial(features_detector_forward, **meta))
    out = jax.block_until_ready(fwd(x, *packed))

    # shape: conv1 16->12, pool ->6; conv2 6->4, pool ->2
    assert out.shape == (N, out_channels, 2, 2), out.shape

    ref = jax.block_until_ready(_reference(x, params))
    assert jnp.allclose(out, ref, atol=1e-4, rtol=1e-4), "mismatch vs reference"

    print("KERNEL_OK")
</pallas_src>

<mosaic_0001>
module attributes {stable_mosaic.version = 11 : i64} {
  func.func @_features_kernel(%arg0: i32, %arg1: memref<1x16x16x4xf32, #tpu.memory_space<vmem>>, %arg2: memref<100x24xf32, #tpu.memory_space<vmem>>, %arg3: memref<1x24xf32, #tpu.memory_space<vmem>>, %arg4: memref<216x128xf32, #tpu.memory_space<vmem>>, %arg5: memref<1x128xf32, #tpu.memory_space<vmem>>, %arg6: memref<1x2x2x128xf32, #tpu.memory_space<vmem>>) attributes {dimension_semantics = [#tpu.dimension_semantics<parallel>], iteration_bounds = array<i64: 2>, scalar_prefetch = 0 : i64, scratch_operands = 0 : i64, tpu.core_type = #tpu.core_type<tc>, window_params = [{transform_indices = @transform_0, window_bounds = array<i64: 1, 16, 16, 4>}, {pipeline_mode = #tpu.pipeline_mode<synchronous>, transform_indices = @transform_1, window_bounds = array<i64: 100, 24>}, {pipeline_mode = #tpu.pipeline_mode<synchronous>, transform_indices = @transform_2, window_bounds = array<i64: 1, 24>}, {pipeline_mode = #tpu.pipeline_mode<synchronous>, transform_indices = @transform_3, window_bounds = array<i64: 216, 128>}, {pipeline_mode = #tpu.pipeline_mode<synchronous>, transform_indices = @transform_4, window_bounds = array<i64: 1, 128>}, {transform_indices = @transform_5, window_bounds = array<i64: 1, 2, 2, 128>}]} {
    %c0 = arith.constant 0 : index
    %c0_0 = arith.constant 0 : index
    %c0_1 = arith.constant 0 : index
    %c0_2 = arith.constant 0 : index
    %0 = vector.load %arg1[%c0, %c0_0, %c0_1, %c0_2] : memref<1x16x16x4xf32, #tpu.memory_space<vmem>>, vector<1x16x16x4xf32>
    %1 = vector.extract_strided_slice %0 {offsets = [0, 0, 0, 0], sizes = [1, 12, 12, 4], strides = [1, 1, 1, 1]} : vector<1x16x16x4xf32> to vector<1x12x12x4xf32>
    %2 = vector.extract_strided_slice %0 {offsets = [0, 0, 1, 0], sizes = [1, 12, 12, 4], strides = [1, 1, 1, 1]} : vector<1x16x16x4xf32> to vector<1x12x12x4xf32>
    %3 = vector.extract_strided_slice %0 {offsets = [0, 0, 2, 0], sizes = [1, 12, 12, 4], strides = [1, 1, 1, 1]} : vector<1x16x16x4xf32> to vector<1x12x12x4xf32>
    %4 = vector.extract_strided_slice %0 {offsets = [0, 0, 3, 0], sizes = [1, 12, 12, 4], strides = [1, 1, 1, 1]} : vector<1x16x16x4xf32> to vector<1x12x12x4xf32>
    %5 = vector.extract_strided_slice %0 {offsets = [0, 0, 4, 0], sizes = [1, 12, 12, 4], strides = [1, 1, 1, 1]} : vector<1x16x16x4xf32> to vector<1x12x12x4xf32>
    %6 = vector.extract_strided_slice %0 {offsets = [0, 1, 0, 0], sizes = [1, 12, 12, 4], strides = [1, 1, 1, 1]} : vector<1x16x16x4xf32> to vector<1x12x12x4xf32>
    %7 = vector.extract_strided_slice %0 {offsets = [0, 1, 1, 0], sizes = [1, 12, 12, 4], strides = [1, 1, 1, 1]} : vector<1x16x16x4xf32> to vector<1x12x12x4xf32>
    %8 = vector.extract_strided_slice %0 {offsets = [0, 1, 2, 0], sizes = [1, 12, 12, 4], strides = [1, 1, 1, 1]} : vector<1x16x16x4xf32> to vector<1x12x12x4xf32>
    %9 = vector.extract_strided_slice %0 {offsets = [0, 1, 3, 0], sizes = [1, 12, 12, 4], strides = [1, 1, 1, 1]} : vector<1x16x16x4xf32> to vector<1x12x12x4xf32>
    %10 = vector.extract_strided_slice %0 {offsets = [0, 1, 4, 0], sizes = [1, 12, 12, 4], strides = [1, 1, 1, 1]} : vector<1x16x16x4xf32> to vector<1x12x12x4xf32>
    %11 = vector.extract_strided_slice %0 {offsets = [0, 2, 0, 0], sizes = [1, 12, 12, 4], strides = [1, 1, 1, 1]} : vector<1x16x16x4xf32> to vector<1x12x12x4xf32>
    %12 = vector.extract_strided_slice %0 {offsets = [0, 2, 1, 0], sizes = [1, 12, 12, 4], strides = [1, 1, 1, 1]} : vector<1x16x16x4xf32> to vector<1x12x12x4xf32>
    %13 = vector.extract_strided_slice %0 {offsets = [0, 2, 2, 0], sizes = [1, 12, 12, 4], strides = [1, 1, 1, 1]} : vector<1x16x16x4xf32> to vector<1x12x12x4xf32>
    %14 = vector.extract_strided_slice %0 {offsets = [0, 2, 3, 0], sizes = [1, 12, 12, 4], strides = [1, 1, 1, 1]} : vector<1x16x16x4xf32> to vector<1x12x12x4xf32>
    %15 = vector.extract_strided_slice %0 {offsets = [0, 2, 4, 0], sizes = [1, 12, 12, 4], strides = [1, 1, 1, 1]} : vector<1x16x16x4xf32> to vector<1x12x12x4xf32>
    %16 = vector.extract_strided_slice %0 {offsets = [0, 3, 0, 0], sizes = [1, 12, 12, 4], strides = [1, 1, 1, 1]} : vector<1x16x16x4xf32> to vector<1x12x12x4xf32>
    %17 = vector.extract_strided_slice %0 {offsets = [0, 3, 1, 0], sizes = [1, 12, 12, 4], strides = [1, 1, 1, 1]} : vector<1x16x16x4xf32> to vector<1x12x12x4xf32>
    %18 = vector.extract_strided_slice %0 {offsets = [0, 3, 2, 0], sizes = [1, 12, 12, 4], strides = [1, 1, 1, 1]} : vector<1x16x16x4xf32> to vector<1x12x12x4xf32>
    %19 = vector.extract_strided_slice %0 {offsets = [0, 3, 3, 0], sizes = [1, 12, 12, 4], strides = [1, 1, 1, 1]} : vector<1x16x16x4xf32> to vector<1x12x12x4xf32>
    %20 = vector.extract_strided_slice %0 {offsets = [0, 3, 4, 0], sizes = [1, 12, 12, 4], strides = [1, 1, 1, 1]} : vector<1x16x16x4xf32> to vector<1x12x12x4xf32>
    %21 = vector.extract_strided_slice %0 {offsets = [0, 4, 0, 0], sizes = [1, 12, 12, 4], strides = [1, 1, 1, 1]} : vector<1x16x16x4xf32> to vector<1x12x12x4xf32>
    %22 = vector.extract_strided_slice %0 {offsets = [0, 4, 1, 0], sizes = [1, 12, 12, 4], strides = [1, 1, 1, 1]} : vector<1x16x16x4xf32> to vector<1x12x12x4xf32>
    %23 = vector.extract_strided_slice %0 {offsets = [0, 4, 2, 0], sizes = [1, 12, 12, 4], strides = [1, 1, 1, 1]} : vector<1x16x16x4xf32> to vector<1x12x12x4xf32>
    %24 = vector.extract_strided_slice %0 {offsets = [0, 4, 3, 0], sizes = [1, 12, 12, 4], strides = [1, 1, 1, 1]} : vector<1x16x16x4xf32> to vector<1x12x12x4xf32>
    %25 = vector.extract_strided_slice %0 {offsets = [0, 4, 4, 0], sizes = [1, 12, 12, 4], strides = [1, 1, 1, 1]} : vector<1x16x16x4xf32> to vector<1x12x12x4xf32>
    %26 = tpu.concatenate %1, %2, %3, %4, %5, %6, %7, %8, %9, %10, %11, %12, %13, %14, %15, %16 in 3 : vector<1x12x12x4xf32>, vector<1x12x12x4xf32>, vector<1x12x12x4xf32>, vector<1x12x12x4xf32>, vector<1x12x12x4xf32>, vector<1x12x12x4xf32>, vector<1x12x12x4xf32>, vector<1x12x12x4xf32>, vector<1x12x12x4xf32>, vector<1x12x12x4xf32>, vector<1x12x12x4xf32>, vector<1x12x12x4xf32>, vector<1x12x12x4xf32>, vector<1x12x12x4xf32>, vector<1x12x12x4xf32>, vector<1x12x12x4xf32> -> vector<1x12x12x64xf32>
    %27 = tpu.concatenate %17, %18, %19, %20, %21, %22, %23, %24, %25 in 3 : vector<1x12x12x4xf32>, vector<1x12x12x4xf32>, vector<1x12x12x4xf32>, vector<1x12x12x4xf32>, vector<1x12x12x4xf32>, vector<1x12x12x4xf32>, vector<1x12x12x4xf32>, vector<1x12x12x4xf32>, vector<1x12x12x4xf32> -> vector<1x12x12x36xf32>
    %28 = tpu.concatenate %26, %27 in 3 : vector<1x12x12x64xf32>, vector<1x12x12x36xf32> -> vector<1x12x12x100xf32>
    %29 = vector.shape_cast %28 : vector<1x12x12x100xf32> to vector<144x100xf32>
    %c0_3 = arith.constant 0 : index
    %c0_4 = arith.constant 0 : index
    %30 = vector.load %arg2[%c0_3, %c0_4] : memref<100x24xf32, #tpu.memory_space<vmem>>, vector<100x24xf32>
    %cst = arith.constant dense<0.000000e+00> : vector<144x24xf32>
    %31 = tpu.matmul %29, %30, %cst {dimension_numbers = #tpu.dot_dimension_numbers<[1], [0], [0], [1], [0, 0, 1, 1], [], []>} : vector<144x100xf32>, vector<100x24xf32>, vector<144x24xf32> -> vector<144x24xf32>
    %c0_5 = arith.constant 0 : index
    %c0_6 = arith.constant 0 : index
    %32 = vector.load %arg3[%c0_5, %c0_6] : memref<1x24xf32, #tpu.memory_space<vmem>>, vector<1x24xf32>
    %33 = vector.broadcast %32 : vector<1x24xf32> to vector<144x24xf32>
    %34 = arith.addf %31, %33 : vector<144x24xf32>
    %35 = vector.shape_cast %34 : vector<144x24xf32> to vector<1x12x12x24xf32>
    %36 = vector.shape_cast %35 : vector<1x12x12x24xf32> to vector<1x12x6x2x24xf32>
    %cst_7 = arith.constant dense<0xFF800000> : vector<1x12x6x24xf32>
    %37 = vector.multi_reduction <maximumf>, %36, %cst_7 [3] : vector<1x12x6x2x24xf32> to vector<1x12x6x24xf32>
    %38 = vector.shape_cast %37 : vector<1x12x6x24xf32> to vector<1x6x2x6x24xf32>
    %cst_8 = arith.constant dense<0xFF800000> : vector<1x6x6x24xf32>
    %39 = vector.multi_reduction <maximumf>, %38, %cst_8 [2] : vector<1x6x2x6x24xf32> to vector<1x6x6x24xf32>
    %cst_9 = arith.constant 0.000000e+00 : f32
    %40 = vector.broadcast %cst_9 : f32 to vector<1x6x6x24xf32>
    %41 = arith.maximumf %39, %40 : vector<1x6x6x24xf32>
    %42 = vector.extract_strided_slice %41 {offsets = [0, 0, 0, 0], sizes = [1, 4, 4, 24], strides = [1, 1, 1, 1]} : vector<1x6x6x24xf32> to vector<1x4x4x24xf32>
    %43 = vector.extract_strided_slice %41 {offsets = [0, 0, 1, 0], sizes = [1, 4, 4, 24], strides = [1, 1, 1, 1]} : vector<1x6x6x24xf32> to vector<1x4x4x24xf32>
    %44 = vector.extract_strided_slice %41 {offsets = [0, 0, 2, 0], sizes = [1, 4, 4, 24], strides = [1, 1, 1, 1]} : vector<1x6x6x24xf32> to vector<1x4x4x24xf32>
    %45 = vector.extract_strided_slice %41 {offsets = [0, 1, 0, 0], sizes = [1, 4, 4, 24], strides = [1, 1, 1, 1]} : vector<1x6x6x24xf32> to vector<1x4x4x24xf32>
    %46 = vector.extract_strided_slice %41 {offsets = [0, 1, 1, 0], sizes = [1, 4, 4, 24], strides = [1, 1, 1, 1]} : vector<1x6x6x24xf32> to vector<1x4x4x24xf32>
    %47 = vector.extract_strided_slice %41 {offsets = [0, 1, 2, 0], sizes = [1, 4, 4, 24], strides = [1, 1, 1, 1]} : vector<1x6x6x24xf32> to vector<1x4x4x24xf32>
    %48 = vector.extract_strided_slice %41 {offsets = [0, 2, 0, 0], sizes = [1, 4, 4, 24], strides = [1, 1, 1, 1]} : vector<1x6x6x24xf32> to vector<1x4x4x24xf32>
    %49 = vector.extract_strided_slice %41 {offsets = [0, 2, 1, 0], sizes = [1, 4, 4, 24], strides = [1, 1, 1, 1]} : vector<1x6x6x24xf32> to vector<1x4x4x24xf32>
    %50 = vector.extract_strided_slice %41 {offsets = [0, 2, 2, 0], sizes = [1, 4, 4, 24], strides = [1, 1, 1, 1]} : vector<1x6x6x24xf32> to vector<1x4x4x24xf32>
    %51 = tpu.concatenate %42, %43, %44, %45, %46, %47, %48, %49, %50 in 3 : vector<1x4x4x24xf32>, vector<1x4x4x24xf32>, vector<1x4x4x24xf32>, vector<1x4x4x24xf32>, vector<1x4x4x24xf32>, vector<1x4x4x24xf32>, vector<1x4x4x24xf32>, vector<1x4x4x24xf32>, vector<1x4x4x24xf32> -> vector<1x4x4x216xf32>
    %52 = vector.shape_cast %51 : vector<1x4x4x216xf32> to vector<16x216xf32>
    %c0_10 = arith.constant 0 : index
    %c0_11 = arith.constant 0 : index
    %53 = vector.load %arg4[%c0_10, %c0_11] : memref<216x128xf32, #tpu.memory_space<vmem>>, vector<216x128xf32>
    %cst_12 = arith.constant dense<0.000000e+00> : vector<16x128xf32>
    %54 = tpu.matmul %52, %53, %cst_12 {dimension_numbers = #tpu.dot_dimension_numbers<[1], [0], [0], [1], [0, 0, 1, 1], [], []>} : vector<16x216xf32>, vector<216x128xf32>, vector<16x128xf32> -> vector<16x128xf32>
    %c0_13 = arith.constant 0 : index
    %c0_14 = arith.constant 0 : index
    %55 = vector.load %arg5[%c0_13, %c0_14] : memref<1x128xf32, #tpu.memory_space<vmem>>, vector<1x128xf32>
    %56 = vector.broadcast %55 : vector<1x128xf32> to vector<16x128xf32>
    %57 = arith.addf %54, %56 : vector<16x128xf32>
    %58 = vector.shape_cast %57 : vector<16x128xf32> to vector<1x4x4x128xf32>
    %59 = vector.shape_cast %58 : vector<1x4x4x128xf32> to vector<1x4x2x2x128xf32>
    %cst_15 = arith.constant dense<0xFF800000> : vector<1x4x2x128xf32>
    %60 = vector.multi_reduction <maximumf>, %59, %cst_15 [3] : vector<1x4x2x2x128xf32> to vector<1x4x2x128xf32>
    %61 = vector.shape_cast %60 : vector<1x4x2x128xf32> to vector<1x2x2x2x128xf32>
    %cst_16 = arith.constant dense<0xFF800000> : vector<1x2x2x128xf32>
    %62 = vector.multi_reduction <maximumf>, %61, %cst_16 [2] : vector<1x2x2x2x128xf32> to vector<1x2x2x128xf32>
    %cst_17 = arith.constant 0.000000e+00 : f32
    %63 = vector.broadcast %cst_17 : f32 to vector<1x2x2x128xf32>
    %64 = arith.maximumf %62, %63 : vector<1x2x2x128xf32>
    %c0_18 = arith.constant 0 : index
    %c0_19 = arith.constant 0 : index
    %c0_20 = arith.constant 0 : index
    %c0_21 = arith.constant 0 : index
    %65 = vector.load %arg6[%c0_18, %c0_19, %c0_20, %c0_21] : memref<1x2x2x128xf32, #tpu.memory_space<vmem>>, vector<1x2x2x128xf32>
    tpu.vector_store %arg6[%c0_18, %c0_19, %c0_20, %c0_21], %64 {strides = array<i32>} : memref<1x2x2x128xf32, #tpu.memory_space<vmem>>, vector<1x2x2x128xf32>,
    return
  }
  func.func @transform_0(%arg0: i32) -> (i32, i32, i32, i32) {
    %c0_i32 = arith.constant 0 : i32
    %c0_i32_0 = arith.constant 0 : i32
    %c0_i32_1 = arith.constant 0 : i32
    %c0_i32_2 = arith.constant 0 : i32
    return %arg0, %c0_i32, %c0_i32_0, %c0_i32_1 : i32, i32, i32, i32
  }
  func.func @transform_1(%arg0: i32) -> (i32, i32) {
    %c0_i32 = arith.constant 0 : i32
    %c0_i32_0 = arith.constant 0 : i32
    %c0_i32_1 = arith.constant 0 : i32
    return %c0_i32, %c0_i32_0 : i32, i32
  }
  func.func @transform_2(%arg0: i32) -> (i32, i32) {
    %c0_i32 = arith.constant 0 : i32
    %c0_i32_0 = arith.constant 0 : i32
    %c0_i32_1 = arith.constant 0 : i32
    return %c0_i32, %c0_i32_0 : i32, i32
  }
  func.func @transform_3(%arg0: i32) -> (i32, i32) {
    %c0_i32 = arith.constant 0 : i32
    %c0_i32_0 = arith.constant 0 : i32
    %c0_i32_1 = arith.constant 0 : i32
    return %c0_i32, %c0_i32_0 : i32, i32
  }
  func.func @transform_4(%arg0: i32) -> (i32, i32) {
    %c0_i32 = arith.constant 0 : i32
    %c0_i32_0 = arith.constant 0 : i32
    %c0_i32_1 = arith.constant 0 : i32
    return %c0_i32, %c0_i32_0 : i32, i32
  }
  func.func @transform_5(%arg0: i32) -> (i32, i32, i32, i32) {
    %c0_i32 = arith.constant 0 : i32
    %c0_i32_0 = arith.constant 0 : i32
    %c0_i32_1 = arith.constant 0 : i32
    %c0_i32_2 = arith.constant 0 : i32
    return %arg0, %c0_i32, %c0_i32_0, %c0_i32_1 : i32, i32, i32, i32
  }
}

</mosaic_0001>

<bundles_post_ra>
// kernel: features_detector_forward.1
= control target key start
LH: loop header
LB: loop body
LE: loop exit
PB: predicated region body
PF: predicated region fallthrough
CT: control target
= control target key end

     0   :  { %s4621_s18 = smov 0   ;;  %s8627_s0 = inlined_call_operand.vmem [shape: f32[2,16,16,4], index: 0, kind: input, shape index: {}]   ;;  %s8628_s1 = inlined_call_operand.vmem [shape: f32[100,24], index: 1, kind: input, shape index: {}]   ;;  %s8629_s2 = inlined_call_operand.vmem [shape: f32[1,24], index: 2, kind: input, shape index: {}]   ;;  %s8630_s3 = inlined_call_operand.vmem [shape: f32[216,128], index: 3, kind: input, shape index: {}]   ;;  %s8631_s4 = inlined_call_operand.vmem [shape: f32[1,128], index: 4, kind: input, shape index: {}]   ;;  %s8632_s5 = inlined_call_operand.vmem [shape: f32[2,2,2,128], index: 5, kind: output, shape index: {}]  }
   0x1 LB: > { %s4312_s19 = sadd.s32 4294967295, %s4567_s18   ;;  %p4316_p0 = scmp.ge.s32.totalorder %s4567_s18, 1  ;;  %s4567_s18 = sphi %s4621_s18, %s15_s18  }
   0x2   : > { %p187_p1 = scmp.lt.s32.totalorder %s4567_s18, 3 }
   0x4   : > { %p188_p2 = pnand %p4316_p0, %p187_p1 }
   0x6   : > { %191 = sbr.rel (%p188_p2) target bundleno = 1668 (0x684), region = 40 }
   0xd   : > { %p215_p3 = scmp.lt.s32.totalorder %s4312_s19, 1  ;;  %vm8854_vm0 = vcmask 1046528   ;;  %s4569_s24 = smov 4   ;;  %vm390_vm1 = vcmask 1045504   ;;  %vm499_vm2 = vcmask 1044480   ;;  %vm8839_vm3 = vcmask 1043456  }
   0xe   : > { %s4570_s25 = smov 8   ;;  %s4571_s26 = smov 12   ;;  %vm1979_vm4 = vcmask 1040384   ;;  %vm1539_vm5 = vcmask 31744   ;;  %vm1564_vm6 = vcmask 64512   ;;  %vm8861_vm7 = vcmask 97280  }
   0xf   : > { %s9686_s19 = smov (!%p215_p3, %s4312_s19), 1  ;;  %s4572_s27 = smov 16   ;;  %vm8866_vm8 = vcmask 130048   ;;  %vm1639_vm9 = vcmask 162816   ;;  %vm1664_vm10 = vcmask 195584   ;;  %vm8865_vm11 = vcmask 228352  }
  0x10   : > { %s4350_s20 = sshll.u32 %s9686_s19, 8  ;;  %s4573_s28 = smov 20   ;;  %vm8863_vm12 = vcmask 261120   ;;  %vm8853_vm13 = vcmask 293888   ;;  %vm1764_vm14 = vcmask 326656   ;;  %vm8840_vm15 = vcmask 359424  }
  0x11   : > { %s4635_s23 = scalar_lea.vmem %s8627_s0, %s4350_s20  ;;  %s4574_s29 = smov 24  }
  0x12   : > { %v4638_v0 = vld [vmem:[%s4635_s23 + $0x18] sm:$0xff]  ;;  %v4641_v1 = vld [vmem:[%s4635_s23 + $0x8] sm:$0xff]  ;;  %v4651_v5 = vld [vmem:[%s4635_s23] sm:$0xff]  ;;  %s4575_s30 = smov 28   ;;  %s4576_s6 = smov 32  }
  0x13   : > { %v4644_v2 = vld [vmem:[%s4635_s23 + $0x28] sm:$0xff]  ;;  %v4647_v3 = vrot.slane %v4638_v0, 1  ;;  %v283_v4 = vrot.slane %v4641_v1, 1  ;;  %v4654_v6 = vld [vmem:[%s4635_s23 + $0x10] sm:$0xff]  ;;  %v4657_v7 = vld [vmem:[%s4635_s23 + $0x20] sm:$0xff]  ;;  %v282_v8 = vrot.slane %v4651_v5, 1 }
  0x14   : > { %v4664_v9 = vrot.slane %v4644_v2, 1  ;;  %v285_v11 = vrot.slane %v4654_v6, 1  ;;  %v288_v12 = vrot.slane %v4657_v7, 1  ;;  %v4670_v13 = vld [vmem:[%s4635_s23 + $0x38] sm:$0xff]  ;;  %v4673_v14 = vld [vmem:[%s4635_s23 + $0x30] sm:$0xff]  ;;  %v4691_v19 = vld [vmem:[%s4635_s23 + $0x48] sm:$0xff] }
  0x15   : > { %324 = vrot.lane.b32.xlu1 %v4647_v3, %s4569_s24  ;;  %320 = vrot.lane.b32.xlu0 %v283_v4, %s4569_s24  ;;  %v284_v10 = vsel %vm8854_vm0, %v282_v8, %v283_v4  ;;  %v4687_v17 = vrot.slane %v4670_v13, 1  ;;  %v291_v18 = vrot.slane %v4673_v14, 1  ;;  %v4694_v20 = vld [vmem:[%s4635_s23 + $0x40] sm:$0xff]  ;;  %v4705_v22 = vrot.slane %v4691_v19, 1  ;;  %v4709_v24 = vld [vmem:[%s4635_s23 + $0x58] sm:$0xff]  ;;  %s4577_s7 = smov 36  }
  0x16   : > { %v4680_v15 = vsel %vm8854_vm0, %v285_v11, %v4647_v3  ;;  %v4684_v16 = vsel %vm8854_vm0, %v288_v12, %v4664_v9  ;;  %v294_v23 = vrot.slane %v4694_v20, 1  ;;  %v4712_v25 = vld [vmem:[%s4635_s23 + $0x50] sm:$0xff]  ;;  %v4723_v27 = vrot.slane %v4709_v24, 1  ;;  %v4727_v29 = vld [vmem:[%s4635_s23 + $0x68] sm:$0xff]  ;;  %v4730_v30 = vld [vmem:[%s4635_s23 + $0x60] sm:$0xff]  ;;  %s4578_s8 = smov 40  }
  0x17   : > { %v4702_v21 = vsel %vm8854_vm0, %v291_v18, %v4687_v17  ;;  %8867 = vst [vmem:[#allocation2_spill] sm:$0xff] %v4705_v22  ;;  %v297_v28 = vrot.slane %v4712_v25, 1  ;;  %v4741_v32 = vrot.slane %v4727_v29, 1  ;;  %v300_v33 = vrot.slane %v4730_v30, 1  ;;  %v4745_v34 = vld [vmem:[%s4635_s23 + $0x78] sm:$0xff]  ;;  %v4748_v35 = vld [vmem:[%s4635_s23 + $0x70] sm:$0xff] }
  0x18   : > { %v4720_v26 = vsel %vm8854_vm0, %v294_v23, %v4705_v22  ;;  %8868 = vst [vmem:[#allocation3_spill] sm:$0xff] %v4723_v27  ;;  %v4759_v37 = vrot.slane %v4745_v34, 1  ;;  %v303_v38 = vrot.slane %v4748_v35, 1  ;;  %v4763_v39 = vld [vmem:[%s4635_s23 + $0x88] sm:$0xff]  ;;  %v4766_v40 = vld [vmem:[%s4635_s23 + $0x80] sm:$0xff]  ;;  %v4781_v44 = vld [vmem:[%s4635_s23 + $0x98] sm:$0xff] }
  0x19   : > { %328 = vrot.lane.b32.xlu1 %v4664_v9, %s4569_s24  ;;  %318 = vrot.lane.b32.xlu0 %v284_v10, %s4569_s24  ;;  %v4738_v31 = vsel %vm8854_vm0, %v297_v28, %v4723_v27  ;;  %8869 = vst [vmem:[#allocation4_spill] sm:$0xff] %v4741_v32  ;;  %v4756_v36 = vsel %vm8854_vm0, %v300_v33, %v4741_v32  ;;  %v4777_v42 = vrot.slane %v4763_v39, 1  ;;  %v306_v43 = vrot.slane %v4766_v40, 1  ;;  %v4784_v45 = vld [vmem:[%s4635_s23 + $0x90] sm:$0xff]  ;;  %v4799_v49 = vld [vmem:[%s4635_s23 + $0xa8] sm:$0xff]  ;;  %s4579_s9 = smov 44  }
  0x1a   : > { %8870 = vst [vmem:[#allocation5_spill] sm:$0xff] %v4756_v36  ;;  %8871 = vst [vmem:[#allocation6_spill] sm:$0xff] %v4759_v37  ;;  %v4774_v41 = vsel %vm8854_vm0, %v303_v38, %v4759_v37  ;;  %v4795_v47 = vrot.slane %v4781_v44, 1  ;;  %v309_v48 = vrot.slane %v4784_v45, 1  ;;  %v4802_v50 = vld [vmem:[%s4635_s23 + $0xa0] sm:$0xff]  ;;  %v4813_v52 = vrot.slane %v4799_v49, 1 }
  0x1b   : > { %8872 = vst [vmem:[#allocation7_spill] sm:$0xff] %v4774_v41  ;;  %8873 = vst [vmem:[#allocation8_spill] sm:$0xff] %v4777_v42  ;;  %v4792_v46 = vsel %vm8854_vm0, %v306_v43, %v4777_v42  ;;  %v312_v53 = vrot.slane %v4802_v50, 1  ;;  %v4817_v54 = vld [vmem:[%s4635_s23 + $0xb8] sm:$0xff]  ;;  %v4820_v55 = vld [vmem:[%s4635_s23 + $0xb0] sm:$0xff]  ;;  %v392_v60 = vrot.slane %v4641_v1, 2 }
  0x1c   : > { %8874 = vst [vmem:[#allocation9_spill] sm:$0xff] %v4792_v46  ;;  %8875 = vst [vmem:[#allocation10_spill] sm:$0xff] %v4795_v47  ;;  %v4810_v51 = vsel %vm8854_vm0, %v309_v48, %v4795_v47  ;;  %v4831_v57 = vrot.slane %v4817_v54, 1  ;;  %v315_v58 = vrot.slane %v4820_v55, 1  ;;  %v391_v61 = vrot.slane %v4651_v5, 2  ;;  %s4580_s10 = smov 48  }
  0x1d   : > { %322 = vrot.lane.b32.xlu1 %v4680_v15, %s4569_s24  ;;  %326 = vrot.lane.b32.xlu0 %v4684_v16, %s4569_s24  ;;  %8876 = vst [vmem:[#allocation11_spill] sm:$0xff] %v4810_v51  ;;  %8877 = vst [vmem:[#allocation12_spill] sm:$0xff] %v4813_v52  ;;  %v4828_v56 = vsel %vm8854_vm0, %v312_v53, %v4813_v52  ;;  %v4850_v63 = vrot.slane %v4638_v0, 2  ;;  %v394_v4 = vrot.slane %v4654_v6, 2  ;;  %v4860_v10 = vrot.slane %v4644_v2, 2  ;;  %s4581_s11 = smov 52  }
  0x1e   : > { %8878 = vst [vmem:[#allocation13_spill] sm:$0xff] %v4828_v56  ;;  %8879 = vst [vmem:[#allocation14_spill] sm:$0xff] %v4831_v57  ;;  %v4840_v59 = vsel %vm8854_vm0, %v315_v58, %v4831_v57  ;;  %v393_v62 = vsel %vm390_vm1, %v391_v61, %v392_v60  ;;  %v397_v11 = vrot.slane %v4657_v7, 2  ;;  %v4872_v18 = vrot.slane %v4670_v13, 2  ;;  %s4582_s12 = smov 56   ;;  %s4583_s13 = smov 60  }
  0x1f   : > { %8880 = vst [vmem:[#allocation15_spill] sm:$0xff] %v4840_v59  ;;  %8881 = vst [vmem:[#allocation16_spill] sm:$0xff] %v4850_v63  ;;  %v4857_v8 = vsel %vm390_vm1, %v394_v4, %v4850_v63  ;;  %v400_v23 = vrot.slane %v4673_v14, 2  ;;  %v4884_v33 = vrot.slane %v4691_v19, 2  ;;  %v403_v38 = vrot.slane %v4694_v20, 2  ;;  %s4588_s17 = smov 96  }
  0x20   : > { %8882 = vst [vmem:[#allocation17_spill] sm:$0xff] %v4857_v8  ;;  %8883 = vst [vmem:[#allocation18_spill] sm:$0xff] %v4860_v10  ;;  %v4869_v12 = vsel %vm390_vm1, %v397_v11, %v4860_v10  ;;  %v4896_v48 = vrot.slane %v4709_v24, 2  ;;  %v406_v53 = vrot.slane %v4712_v25, 2  ;;  %v409_v61 = vrot.slane %v4730_v30, 2 }
  0x21   : > { %332 = vrot.lane.b32.xlu1 %v4687_v17, %s4569_s24  ;;  %330 = vrot.lane.b32.xlu0 %v4702_v21, %s4569_s24  ;;  %8884 = vst [vmem:[#allocation19_spill] sm:$0xff] %v4869_v12  ;;  %8885 = vst [vmem:[#allocation20_spill] sm:$0xff] %v4872_v18  ;;  %v4881_v28 = vsel %vm390_vm1, %v400_v23, %v4872_v18  ;;  %v4893_v43 = vsel %vm390_vm1, %v403_v38, %v4884_v33  ;;  %v4920_v4 = vrot.slane %v4745_v34, 2 }
  0x22   : > { %8886 = vst [vmem:[#allocation21_spill] sm:$0xff] %v4881_v28  ;;  %8887 = vst [vmem:[#allocation22_spill] sm:$0xff] %v4884_v33  ;;  %v4905_v58 = vsel %vm390_vm1, %v406_v53, %v4896_v48  ;;  %v412_v11 = vrot.slane %v4748_v35, 2  ;;  %v4932_v38 = vrot.slane %v4763_v39, 2  ;;  %v415_v53 = vrot.slane %v4766_v40, 2 }
  0x23   : > { %8888 = vst [vmem:[#allocation23_spill] sm:$0xff] %v4896_v48  ;;  %8889 = vst [vmem:[#allocation24_spill] sm:$0xff] %v4905_v58 }
  0x24   : > { %8892 = vst [vmem:[#allocation27_spill] sm:$0xff] %v4920_v4  ;;  %v4929_v23 = vsel %vm390_vm1, %v412_v11, %v4920_v4  ;;  %8894 = vst [vmem:[#allocation29_spill] sm:$0xff] %v4932_v38  ;;  %v418_v11 = vrot.slane %v4784_v45, 2 }
  0x25   : > { %336 = vrot.lane.b32.xlu1 %v4705_v22, %s4569_s24  ;;  %334 = vrot.lane.b32.xlu0 %v4720_v26, %s4569_s24  ;;  %8893 = vst [vmem:[#allocation28_spill] sm:$0xff] %v4929_v23 }
  0x29   : > { %340 = vrot.lane.b32.xlu1 %v4723_v27, %s4569_s24  ;;  %338 = vrot.lane.b32.xlu0 %v4738_v31, %s4569_s24 }
  0x2d   : > { %344 = vrot.lane.b32.xlu1 %v4741_v32, %s4569_s24  ;;  %342 = vrot.lane.b32.xlu0 %v4756_v36, %s4569_s24 }
  0x31   : > { %348 = vrot.lane.b32.xlu1 %v4759_v37, %s4569_s24  ;;  %346 = vrot.lane.b32.xlu0 %v4774_v41, %s4569_s24 }
  0x35   : > { %352 = vrot.lane.b32.xlu1 %v4777_v42, %s4569_s24  ;;  %350 = vrot.lane.b32.xlu0 %v4792_v46, %s4569_s24  ;;  %v530_v46 = vrot.slane %v4802_v50, 3 }
  0x39   : > { %356 = vrot.lane.b32.xlu1 %v4795_v47, %s4569_s24  ;;  %354 = vrot.lane.b32.xlu0 %v4810_v51, %s4569_s24  ;;  %v524_v51 = vrot.slane %v4766_v40, 3 }
  0x3d   : > { %360 = vrot.lane.b32.xlu1 %v4813_v52, %s4569_s24  ;;  %358 = vrot.lane.b32.xlu0 %v4828_v56, %s4569_s24 }
  0x41   : > { %364 = vrot.lane.b32.xlu1 %v4831_v57, %s4569_s24  ;;  %362 = vrot.lane.b32.xlu0 %v4840_v59, %s4569_s24  ;;  %v501_v59 = vrot.slane %v4641_v1, 3 }
  0x45   : > { %429 = vrot.lane.b32.xlu1 %v392_v60, %s4570_s25  ;;  %427 = vrot.lane.b32.xlu0 %v393_v62, %s4570_s25  ;;  %v4908_v60 = vrot.slane %v4727_v29, 2 }
  0x47   : > { %8890 = vst [vmem:[#allocation25_spill] sm:$0xff] %v4908_v60  ;;  %v4917_v62 = vsel %vm390_vm1, %v409_v61, %v4908_v60  ;;  %v4941_v61 = vsel %vm390_vm1, %v415_v53, %v4932_v38  ;;  %v421_v53 = vrot.slane %v4802_v50, 2 }
  0x48   : > { %8891 = vst [vmem:[#allocation26_spill] sm:$0xff] %v4917_v62  ;;  %8895 = vst [vmem:[#allocation30_spill] sm:$0xff] %v4941_v61 }
  0x49   : > { %433 = vrot.lane.b32.xlu1 %v4850_v63, %s4570_s25  ;;  %431 = vrot.lane.b32.xlu0 %v4857_v8, %s4570_s25  ;;  %v4968_v63 = vrot.slane %v4817_v54, 2 }
  0x4b   : > { %8900 = vst [vmem:[#allocation35_spill] sm:$0xff] %v4968_v63 }
  0x4d   : > { %437 = vrot.lane.b32.xlu1 %v4860_v10, %s4570_s25  ;;  %435 = vrot.lane.b32.xlu0 %v4869_v12, %s4570_s25 }
  0x51   : > { %441 = vrot.lane.b32.xlu1 %v4872_v18, %s4570_s25  ;;  %439 = vrot.lane.b32.xlu0 %v4881_v28, %s4570_s25  ;;  %v4944_v18 = vrot.slane %v4781_v44, 2  ;;  %v4956_v28 = vrot.slane %v4799_v49, 2 }
  0x53   : > { %8896 = vst [vmem:[#allocation31_spill] sm:$0xff] %v4944_v18  ;;  %v4953_v10 = vsel %vm390_vm1, %v418_v11, %v4944_v18  ;;  %8898 = vst [vmem:[#allocation33_spill] sm:$0xff] %v4956_v28  ;;  %v4965_v12 = vsel %vm390_vm1, %v421_v53, %v4956_v28  ;;  %v424_v11 = vrot.slane %v4820_v55, 2  ;;  %v500_v53 = vrot.slane %v4651_v5, 3 }
  0x54   : > { %8897 = vst [vmem:[#allocation32_spill] sm:$0xff] %v4953_v10  ;;  %8899 = vst [vmem:[#allocation34_spill] sm:$0xff] %v4965_v12 }
  0x55   : > { %445 = vrot.lane.b32.xlu1 %v4884_v33, %s4570_s25  ;;  %443 = vrot.lane.b32.xlu0 %v4893_v43, %s4570_s25  ;;  %v4977_v8 = vsel %vm390_vm1, %v424_v11, %v4968_v63  ;;  %v502_v57 = vsel %vm499_vm2, %v500_v53, %v501_v59 }
  0x56   : > { %8901 = vst [vmem:[#allocation36_spill] sm:$0xff] %v4977_v8 }
  0x59   : > { %449 = vrot.lane.b32.xlu1 %v4896_v48, %s4570_s25  ;;  %447 = vrot.lane.b32.xlu0 %v4905_v58, %s4570_s25 }
  0x5d   : > { %453 = vrot.lane.b32.xlu1 %v4908_v60, %s4570_s25  ;;  %451 = vrot.lane.b32.xlu0 %v4917_v62, %s4570_s25 }
  0x61   : > { %457 = vrot.lane.b32.xlu1 %v4920_v4, %s4570_s25  ;;  %455 = vrot.lane.b32.xlu0 %v4929_v23, %s4570_s25 }
  0x65   : > { %461 = vrot.lane.b32.xlu1 %v4932_v38, %s4570_s25  ;;  %459 = vrot.lane.b32.xlu0 %v4941_v61, %s4570_s25  ;;  %v527_v61 = vrot.slane %v4784_v45, 3 }
  0x69   : > { %465 = vrot.lane.b32.xlu1 %v4944_v18, %s4570_s25  ;;  %463 = vrot.lane.b32.xlu0 %v4953_v10, %s4570_s25  ;;  %v521_v10 = vrot.slane %v4748_v35, 3 }
  0x6d   : > { %469 = vrot.lane.b32.xlu1 %v4956_v28, %s4570_s25  ;;  %467 = vrot.lane.b32.xlu0 %v4965_v12, %s4570_s25  ;;  %v4987_v28 = vrot.slane %v4638_v0, 3  ;;  %v503_v12 = vrot.slane %v4654_v6, 3 }
  0x6f   : > { %8902 = vst [vmem:[#allocation37_spill] sm:$0xff] %v4987_v28  ;;  %v4994_v11 = vsel %vm499_vm2, %v503_v12, %v4987_v28  ;;  %v509_v12 = vrot.slane %v4673_v14, 3 }
  0x70   : > { %8903 = vst [vmem:[#allocation38_spill] sm:$0xff] %v4994_v11 }
  0x71   : > { %473 = vrot.lane.b32.xlu1 %v4968_v63, %s4570_s25  ;;  %471 = vrot.lane.b32.xlu0 %v4977_v8, %s4570_s25  ;;  %v4997_v63 = vrot.slane %v4644_v2, 3  ;;  %v506_v8 = vrot.slane %v4657_v7, 3 }
  0x73   : > { %8904 = vst [vmem:[#allocation39_spill] sm:$0xff] %v4997_v63 }
  0x75   : > { %538 = vrot.lane.b32.xlu1 %v501_v59, %s4571_s26  ;;  %536 = vrot.lane.b32.xlu0 %v502_v57, %s4571_s26  ;;  %v5006_v59 = vsel %vm499_vm2, %v506_v8, %v4997_v63  ;;  %v5009_v57 = vrot.slane %v4670_v13, 3  ;;  %v512_v8 = vrot.slane %v4694_v20, 3 }
  0x76   : > { %8905 = vst [vmem:[#allocation40_spill] sm:$0xff] %v5006_v59 }
  0x77   : > { %8906 = vst [vmem:[#allocation41_spill] sm:$0xff] %v5009_v57  ;;  %v5018_v53 = vsel %vm499_vm2, %v509_v12, %v5009_v57  ;;  %v515_v12 = vrot.slane %v4712_v25, 3 }
  0x78   : > { %8907 = vst [vmem:[#allocation42_spill] sm:$0xff] %v5018_v53 }
  0x79   : > { %542 = vrot.lane.b32.xlu1 %v4987_v28, %s4571_s26  ;;  %540 = vrot.lane.b32.xlu0 %v4994_v11, %s4571_s26  ;;  %v5021_v28 = vrot.slane %v4691_v19, 3 }
  0x7b   : > { %8908 = vst [vmem:[#allocation43_spill] sm:$0xff] %v5021_v28 }
  0x7d   : > { %546 = vrot.lane.b32.xlu1 %v4997_v63, %s4571_s26  ;;  %544 = vrot.lane.b32.xlu0 %v5006_v59, %s4571_s26  ;;  %v5030_v63 = vsel %vm499_vm2, %v512_v8, %v5021_v28  ;;  %v5033_v59 = vrot.slane %v4709_v24, 3  ;;  %v518_v8 = vrot.slane %v4730_v30, 3 }
  0x7f   : > { %8909 = vst [vmem:[#allocation44_spill] sm:$0xff] %v5033_v59 }
  0x81   : > { %550 = vrot.lane.b32.xlu1 %v5009_v57, %s4571_s26  ;;  %548 = vrot.lane.b32.xlu0 %v5018_v53, %s4571_s26  ;;  %v5042_v57 = vsel %vm499_vm2, %v515_v12, %v5033_v59  ;;  %v5045_v53 = vrot.slane %v4727_v29, 3  ;;  %v5061_v12 = vrot.slane %v4745_v34, 3 }
  0x82   : > { %8910 = vst [vmem:[#allocation45_spill] sm:$0xff] %v5042_v57 }
  0x83   : > { %8911 = vst [vmem:[#allocation46_spill] sm:$0xff] %v5045_v53  ;;  %v5058_v52 = vsel %vm499_vm2, %v518_v8, %v5045_v53  ;;  %8915 = vst [vmem:[#allocation50_spill] sm:$0xff] %v5061_v12  ;;  %v5077_v8 = vrot.slane %v4763_v39, 3 }
  0x84   : > { %8914 = vst [vmem:[#allocation49_spill] sm:$0xff] %v5058_v52 }
  0x85   : > { %554 = vrot.lane.b32.xlu1 %v5021_v28, %s4571_s26  ;;  %552 = vrot.lane.b32.xlu0 %v5030_v63, %s4571_s26  ;;  %8919 = vst [vmem:[#allocation54_spill] sm:$0xff] %v5077_v8 }
  0x87   : > { %v5048_v11 = vpop.permute.xlu1 %324  ;;  %v5050_v56 = vpop.permute.xlu0 %320 }
  0x88   : > { %8912 = vst [vmem:[#allocation47_spill] sm:$0xff] %v5048_v11  ;;  %8913 = vst [vmem:[#allocation48_spill] sm:$0xff] %v5050_v56  ;;  %v5074_v56 = vsel %vm499_vm2, %v521_v10, %v5061_v12  ;;  %v5093_v10 = vrot.slane %v4781_v44, 3 }
  0x89   : > { %558 = vrot.lane.b32.xlu1 %v5033_v59, %s4571_s26  ;;  %556 = vrot.lane.b32.xlu0 %v5042_v57, %s4571_s26  ;;  %8918 = vst [vmem:[#allocation53_spill] sm:$0xff] %v5074_v56 }
  0x8a   : > { %8923 = vst [vmem:[#allocation58_spill] sm:$0xff] %v5093_v10 }
  0x8b   : > { %v5064_v18 = vpop.permute.xlu1 %328  ;;  %v5066_v11 = vpop.permute.xlu0 %318 }
  0x8c   : > { %8916 = vst [vmem:[#allocation51_spill] sm:$0xff] %v5064_v18  ;;  %8917 = vst [vmem:[#allocation52_spill] sm:$0xff] %v5066_v11  ;;  %v5090_v11 = vsel %vm499_vm2, %v524_v51, %v5077_v8  ;;  %v5109_v51 = vrot.slane %v4799_v49, 3 }
  0x8d   : > { %562 = vrot.lane.b32.xlu1 %v5045_v53, %s4571_s26  ;;  %560 = vrot.lane.b32.xlu0 %v5058_v52, %s4571_s26  ;;  %8922 = vst [vmem:[#allocation57_spill] sm:$0xff] %v5090_v11 }
  0x8e   : > { %8927 = vst [vmem:[#allocation62_spill] sm:$0xff] %v5109_v51 }
  0x8f   : > { %v5080_v47 = vpop.permute.xlu1 %322  ;;  %v5082_v18 = vpop.permute.xlu0 %326 }
  0x90   : > { %8920 = vst [vmem:[#allocation55_spill] sm:$0xff] %v5080_v47  ;;  %8921 = vst [vmem:[#allocation56_spill] sm:$0xff] %v5082_v18  ;;  %v5106_v18 = vsel %vm499_vm2, %v527_v61, %v5093_v10  ;;  %v5125_v61 = vrot.slane %v4817_v54, 3 }
  0x91   : > { %566 = vrot.lane.b32.xlu1 %v5061_v12, %s4571_s26  ;;  %564 = vrot.lane.b32.xlu0 %v5074_v56, %s4571_s26  ;;  %8926 = vst [vmem:[#allocation61_spill] sm:$0xff] %v5106_v18 }
  0x92   : > { %8931 = vst [vmem:[#allocation66_spill] sm:$0xff] %v5125_v61 }
  0x93   : > { %v5096_v38 = vpop.permute.xlu1 %332  ;;  %v5098_v47 = vpop.permute.xlu0 %330 }
  0x94   : > { %8924 = vst [vmem:[#allocation59_spill] sm:$0xff] %v5096_v38  ;;  %8925 = vst [vmem:[#allocation60_spill] sm:$0xff] %v5098_v47  ;;  %v5122_v47 = vsel %vm499_vm2, %v530_v46, %v5109_v51  ;;  %v610_v46 = vrot.slane %v4641_v1, 4  ;;  %v612_v1 = vrot.slane %v4654_v6, 4 }
  0x95   : > { %570 = vrot.lane.b32.xlu1 %v5077_v8, %s4571_s26  ;;  %568 = vrot.lane.b32.xlu0 %v5090_v11, %s4571_s26  ;;  %8930 = vst [vmem:[#allocation65_spill] sm:$0xff] %v5122_v47  ;;  %v533_v11 = vrot.slane %v4820_v55, 3 }
  0x97   : > { %v5112_v42 = vpop.permute.xlu1 %336  ;;  %v5114_v38 = vpop.permute.xlu0 %334 }
  0x98   : > { %8928 = vst [vmem:[#allocation63_spill] sm:$0xff] %v5112_v42  ;;  %8929 = vst [vmem:[#allocation64_spill] sm:$0xff] %v5114_v38  ;;  %v5138_v38 = vsel %vm499_vm2, %v533_v11, %v5125_v61  ;;  %v5152_v11 = vrot.slane %v4638_v0, 4 }
  0x99   : > { %574 = vrot.lane.b32.xlu1 %v5093_v10, %s4571_s26  ;;  %572 = vrot.lane.b32.xlu0 %v5106_v18, %s4571_s26  ;;  %8934 = vst [vmem:[#allocation69_spill] sm:$0xff] %v5138_v38  ;;  %v609_v18 = vrot.slane %v4651_v5, 4 }
  0x9a   : > { %8937 = vst [vmem:[#allocation72_spill] sm:$0xff] %v5152_v11 }
  0x9b   : > { %v5128_v8 = vpop.permute.xlu1 %340  ;;  %v5130_v42 = vpop.permute.xlu0 %338 }
  0x9c   : > { %8932 = vst [vmem:[#allocation67_spill] sm:$0xff] %v5128_v8  ;;  %8933 = vst [vmem:[#allocation68_spill] sm:$0xff] %v5130_v42  ;;  %v611_v42 = vsel %vm8839_vm3, %v609_v18, %v610_v46  ;;  %v5166_v18 = vrot.slane %v4644_v2, 4 }
  0x9d   : > { %578 = vrot.lane.b32.xlu1 %v5109_v51, %s4571_s26  ;;  %576 = vrot.lane.b32.xlu0 %v5122_v47, %s4571_s26 }
  0x9e   : > { %8940 = vst [vmem:[#allocation75_spill] sm:$0xff] %v5166_v18 }
  0x9f   : > { %v5142_v10 = vpop.permute.xlu1 %344  ;;  %v5144_v56 = vpop.permute.xlu0 %342 }
  0xa0   : > { %8935 = vst [vmem:[#allocation70_spill] sm:$0xff] %v5142_v10  ;;  %8936 = vst [vmem:[#allocation71_spill] sm:$0xff] %v5144_v56  ;;  %v5163_v56 = vsel %vm8839_vm3, %v612_v1, %v5152_v11  ;;  %v615_v10 = vrot.slane %v4657_v7, 4  ;;  %v618_v1 = vrot.slane %v4673_v14, 4 }
  0xa1   : > { %582 = vrot.lane.b32.xlu1 %v5125_v61, %s4571_s26  ;;  %580 = vrot.lane.b32.xlu0 %v5138_v38, %s4571_s26 }
  0xa3   : > { %v5155_v8 = vpop.permute.xlu1 %348  ;;  %v5157_v5 = vpop.permute.xlu0 %346 }
  0xa4   : > { %8938 = vst [vmem:[#allocation73_spill] sm:$0xff] %v5155_v8  ;;  %8939 = vst [vmem:[#allocation74_spill] sm:$0xff] %v5157_v5  ;;  %v621_v8 = vrot.slane %v4694_v20, 4 }
  0xa5   : > { %647 = vrot.lane.b32.xlu1 %v610_v46, %s4572_s27  ;;  %645 = vrot.lane.b32.xlu0 %v611_v42, %s4572_s27  ;;  %v5179_v42 = vsel %vm8839_vm3, %v615_v10, %v5166_v18  ;;  %v5182_v46 = vrot.slane %v4670_v13, 4  ;;  %v5198_v10 = vrot.slane %v4691_v19, 4 }
  0xa6   : > { %8943 = vst [vmem:[#allocation78_spill] sm:$0xff] %v5179_v42 }
  0xa7   : > { %v5169_v38 = vpop.permute.xlu1 %352  ;;  %v5171_v61 = vpop.permute.xlu0 %350  ;;  %8944 = vst [vmem:[#allocation79_spill] sm:$0xff] %v5182_v46  ;;  %8948 = vst [vmem:[#allocation83_spill] sm:$0xff] %v5198_v10 }
  0xa8   : > { %8941 = vst [vmem:[#allocation76_spill] sm:$0xff] %v5169_v38  ;;  %8942 = vst [vmem:[#allocation77_spill] sm:$0xff] %v5171_v61  ;;  %v5195_v61 = vsel %vm8839_vm3, %v618_v1, %v5182_v46  ;;  %v5214_v1 = vrot.slane %v4709_v24, 4 }
  0xa9   : > { %651 = vrot.lane.b32.xlu1 %v5152_v11, %s4572_s27  ;;  %649 = vrot.lane.b32.xlu0 %v5163_v56, %s4572_s27  ;;  %8947 = vst [vmem:[#allocation82_spill] sm:$0xff] %v5195_v61 }
  0xaa   : > { %8952 = vst [vmem:[#allocation87_spill] sm:$0xff] %v5214_v1 }
  0xab   : > { %v5185_v5 = vpop.permute.xlu1 %356  ;;  %v5187_v38 = vpop.permute.xlu0 %354 }
  0xac   : > { %8945 = vst [vmem:[#allocation80_spill] sm:$0xff] %v5185_v5  ;;  %8946 = vst [vmem:[#allocation81_spill] sm:$0xff] %v5187_v38  ;;  %v5211_v38 = vsel %vm8839_vm3, %v621_v8, %v5198_v10  ;;  %v5230_v8 = vrot.slane %v4727_v29, 4 }
  0xad   : > { %655 = vrot.lane.b32.xlu1 %v5166_v18, %s4572_s27  ;;  %653 = vrot.lane.b32.xlu0 %v5179_v42, %s4572_s27  ;;  %8951 = vst [vmem:[#allocation86_spill] sm:$0xff] %v5211_v38  ;;  %v624_v18 = vrot.slane %v4712_v25, 4 }
  0xae   : > { %8956 = vst [vmem:[#allocation91_spill] sm:$0xff] %v5230_v8 }
  0xaf   : > { %v5201_v11 = vpop.permute.xlu1 %360  ;;  %v5203_v5 = vpop.permute.xlu0 %358 }
  0xb0   : > { %8949 = vst [vmem:[#allocation84_spill] sm:$0xff] %v5201_v11  ;;  %8950 = vst [vmem:[#allocation85_spill] sm:$0xff] %v5203_v5  ;;  %v5227_v5 = vsel %vm8839_vm3, %v624_v18, %v5214_v1  ;;  %v5246_v18 = vrot.slane %v4745_v34, 4 }
  0xb1   : > { %659 = vrot.lane.b32.xlu1 %v5182_v46, %s4572_s27  ;;  %657 = vrot.lane.b32.xlu0 %v5195_v61, %s4572_s27  ;;  %8955 = vst [vmem:[#allocation90_spill] sm:$0xff] %v5227_v5  ;;  %v627_v46 = vrot.slane %v4730_v30, 4 }
  0xb2   : > { %8960 = vst [vmem:[#allocation95_spill] sm:$0xff] %v5246_v18 }
  0xb3   : > { %v5217_v42 = vpop.permute.xlu1 %364  ;;  %v5219_v11 = vpop.permute.xlu0 %362 }
  0xb4   : > { %8953 = vst [vmem:[#allocation88_spill] sm:$0xff] %v5217_v42  ;;  %8954 = vst [vmem:[#allocation89_spill] sm:$0xff] %v5219_v11  ;;  %v5243_v11 = vsel %vm8839_vm3, %v627_v46, %v5230_v8  ;;  %v5262_v46 = vrot.slane %v4763_v39, 4 }
  0xb5   : > { %663 = vrot.lane.b32.xlu1 %v5198_v10, %s4572_s27  ;;  %661 = vrot.lane.b32.xlu0 %v5211_v38, %s4572_s27  ;;  %8959 = vst [vmem:[#allocation94_spill] sm:$0xff] %v5243_v11  ;;  %v630_v10 = vrot.slane %v4748_v35, 4 }
  0xb6   : > { %8964 = vst [vmem:[#allocation99_spill] sm:$0xff] %v5262_v46 }
  0xb7   : > { %v5233_v61 = vpop.permute.xlu1 %429  ;;  %v5235_v42 = vpop.permute.xlu0 %427 }
  0xb8   : > { %8957 = vst [vmem:[#allocation92_spill] sm:$0xff] %v5233_v61  ;;  %8958 = vst [vmem:[#allocation93_spill] sm:$0xff] %v5235_v42  ;;  %v5259_v42 = vsel %vm8839_vm3, %v630_v10, %v5246_v18  ;;  %v5278_v10 = vrot.slane %v4781_v44, 4 }
  0xb9   : > { %667 = vrot.lane.b32.xlu1 %v5214_v1, %s4572_s27  ;;  %665 = vrot.lane.b32.xlu0 %v5227_v5, %s4572_s27  ;;  %8963 = vst [vmem:[#allocation98_spill] sm:$0xff] %v5259_v42  ;;  %v633_v1 = vrot.slane %v4766_v40, 4 }
  0xba   : > { %8968 = vst [vmem:[#allocation103_spill] sm:$0xff] %v5278_v10 }
  0xbb   : > { %v5249_v38 = vpop.permute.xlu1 %433  ;;  %v5251_v61 = vpop.permute.xlu0 %431 }
  0xbc   : > { %8961 = vst [vmem:[#allocation96_spill] sm:$0xff] %v5249_v38  ;;  %8962 = vst [vmem:[#allocation97_spill] sm:$0xff] %v5251_v61  ;;  %v5275_v61 = vsel %vm8839_vm3, %v633_v1, %v5262_v46  ;;  %v5294_v1 = vrot.slane %v4799_v49, 4 }
  0xbd   : > { %671 = vrot.lane.b32.xlu1 %v5230_v8, %s4572_s27  ;;  %669 = vrot.lane.b32.xlu0 %v5243_v11, %s4572_s27  ;;  %8967 = vst [vmem:[#allocation102_spill] sm:$0xff] %v5275_v61  ;;  %v636_v8 = vrot.slane %v4784_v45, 4 }
  0xbe   : > { %8972 = vst [vmem:[#allocation107_spill] sm:$0xff] %v5294_v1 }
  0xbf   : > { %v5265_v5 = vpop.permute.xlu1 %437  ;;  %v5267_v38 = vpop.permute.xlu0 %435 }
  0xc0   : > { %8965 = vst [vmem:[#allocation100_spill] sm:$0xff] %v5265_v5  ;;  %8966 = vst [vmem:[#allocation101_spill] sm:$0xff] %v5267_v38  ;;  %v5291_v38 = vsel %vm8839_vm3, %v636_v8, %v5278_v10  ;;  %v5310_v8 = vrot.slane %v4817_v54, 4 }
  0xc1   : > { %675 = vrot.lane.b32.xlu1 %v5246_v18, %s4572_s27  ;;  %673 = vrot.lane.b32.xlu0 %v5259_v42, %s4572_s27  ;;  %8971 = vst [vmem:[#allocation106_spill] sm:$0xff] %v5291_v38  ;;  %v639_v18 = vrot.slane %v4802_v50, 4 }
  0xc2   : > { %8975 = vst [vmem:[#allocation110_spill] sm:$0xff] %v5310_v8 }
  0xc3   : > { %v5281_v11 = vpop.permute.xlu1 %441  ;;  %v5283_v5 = vpop.permute.xlu0 %439 }
  0xc4   : > { %8969 = vst [vmem:[#allocation104_spill] sm:$0xff] %v5281_v11  ;;  %8970 = vst [vmem:[#allocation105_spill] sm:$0xff] %v5283_v5 }
  0xc5   : > { %679 = vrot.lane.b32.xlu1 %v5262_v46, %s4572_s27  ;;  %677 = vrot.lane.b32.xlu0 %v5275_v61, %s4572_s27  ;;  %v5307_v46 = vsel %vm8839_vm3, %v639_v18, %v5294_v1  ;;  %v642_v61 = vrot.slane %v4820_v55, 4 }
  0xc6   : > { %8974 = vst [vmem:[#allocation109_spill] sm:$0xff] %v5307_v46 }
  0xc7   : > { %v5297_v42 = vpop.permute.xlu1 %445  ;;  %v5299_v11 = vpop.permute.xlu0 %443 }
  0xc8   : > { %8973 = vst [vmem:[#allocation108_spill] sm:$0xff] %v5297_v42 }
  0xc9   : > { %683 = vrot.lane.b32.xlu1 %v5278_v10, %s4572_s27  ;;  %681 = vrot.lane.b32.xlu0 %v5291_v38, %s4572_s27  ;;  %v5323_v10 = vsel %vm8839_vm3, %v642_v61, %v5310_v8 }
  0xca   : > { %8977 = vst [vmem:[#allocation112_spill] sm:$0xff] %v5323_v10 }
  0xcb   : > { %v5313_v5 = vpop.permute.xlu1 %449  ;;  %v5315_v42 = vpop.permute.xlu0 %447 }
  0xcc   : > { %8976 = vst [vmem:[#allocation111_spill] sm:$0xff] %v5315_v42 }
  0xcd   : > { %687 = vrot.lane.b32.xlu1 %v5294_v1, %s4572_s27  ;;  %685 = vrot.lane.b32.xlu0 %v5307_v46, %s4572_s27 }
  0xcf   : > { %v5325_v18 = vpop.permute.xlu1 %453  ;;  %v5327_v38 = vpop.permute.xlu0 %451 }
  0xd0   : > { %8978 = vst [vmem:[#allocation113_spill] sm:$0xff] %v5325_v18  ;;  %8979 = vst [vmem:[#allocation114_spill] sm:$0xff] %v5327_v38 }
  0xd1   : > { %691 = vrot.lane.b32.xlu1 %v5310_v8, %s4572_s27  ;;  %689 = vrot.lane.b32.xlu0 %v5323_v10, %s4572_s27 }
  0xd3   : > { %v5333_v42 = vpop.permute.xlu1 %457  ;;  %v5335_v1 = vpop.permute.xlu0 %455 }
  0xd4   : > { %8980 = vst [vmem:[#allocation115_spill] sm:$0xff] %v5333_v42  ;;  %8981 = vst [vmem:[#allocation116_spill] sm:$0xff] %v5335_v1 }
  0xd5   : > { %721 = vrot.lane.b32.xlu1 %v4638_v0, %s4573_s28  ;;  %719 = vrot.lane.b32.xlu0 %v4654_v6, %s4573_s28 }
  0xd7   : > { %v5341_v61 = vpop.permute.xlu1 %461  ;;  %v5343_v46 = vpop.permute.xlu0 %459 }
  0xd8   : > { %8982 = vst [vmem:[#allocation117_spill] sm:$0xff] %v5341_v61  ;;  %8983 = vst [vmem:[#allocation118_spill] sm:$0xff] %v5343_v46  ;;  %v5422_v61 = vld [vmem:[%s4635_s23 + $0xc8] sm:$0xff] }
  0xd9   : > { %725 = vrot.lane.b32.xlu1 %v4644_v2, %s4573_s28  ;;  %723 = vrot.lane.b32.xlu0 %v4657_v7, %s4573_s28 }
  0xdb   : > { %v5349_v8 = vpop.permute.xlu1 %465  ;;  %v5351_v10 = vpop.permute.xlu0 %463 }
  0xdc   : > { %8984 = vst [vmem:[#allocation119_spill] sm:$0xff] %v5349_v8  ;;  %8985 = vst [vmem:[#allocation120_spill] sm:$0xff] %v5351_v10 }
  0xdd   : > { %729 = vrot.lane.b32.xlu1 %v4670_v13, %s4573_s28  ;;  %727 = vrot.lane.b32.xlu0 %v4673_v14, %s4573_s28 }
  0xdf   : > { %v5357_v0 = vpop.permute.xlu1 %469  ;;  %v5359_v6 = vpop.permute.xlu0 %467 }
  0xe0   : > { %8986 = vst [vmem:[#allocation121_spill] sm:$0xff] %v5357_v0  ;;  %8987 = vst [vmem:[#allocation122_spill] sm:$0xff] %v5359_v6 }
  0xe1   : > { %733 = vrot.lane.b32.xlu1 %v4691_v19, %s4573_s28  ;;  %731 = vrot.lane.b32.xlu0 %v4694_v20, %s4573_s28 }
  0xe3   : > { %v5365_v2 = vpop.permute.xlu1 %473  ;;  %v5367_v7 = vpop.permute.xlu0 %471 }
  0xe4   : > { %8988 = vst [vmem:[#allocation123_spill] sm:$0xff] %v5365_v2  ;;  %8989 = vst [vmem:[#allocation124_spill] sm:$0xff] %v5367_v7 }
  0xe5   : > { %737 = vrot.lane.b32.xlu1 %v4709_v24, %s4573_s28  ;;  %735 = vrot.lane.b32.xlu0 %v4712_v25, %s4573_s28 }
  0xe7   : > { %v5373_v13 = vpop.permute.xlu1 %538  ;;  %v5375_v14 = vpop.permute.xlu0 %536 }
  0xe8   : > { %8990 = vst [vmem:[#allocation125_spill] sm:$0xff] %v5373_v13  ;;  %8991 = vst [vmem:[#allocation126_spill] sm:$0xff] %v5375_v14 }
  0xe9   : > { %741 = vrot.lane.b32.xlu1 %v4727_v29, %s4573_s28  ;;  %739 = vrot.lane.b32.xlu0 %v4730_v30, %s4573_s28 }
  0xeb   : > { %v5381_v6 = vpop.permute.xlu1 %542  ;;  %v5383_v2 = vpop.permute.xlu0 %540 }
  0xec   : > { %8992 = vst [vmem:[#allocation127_spill] sm:$0xff] %v5381_v6  ;;  %8993 = vst [vmem:[#allocation128_spill] sm:$0xff] %v5383_v2  ;;  %v5425_v2 = vld [vmem:[%s4635_s23 + $0xc0] sm:$0xff] }
  0xed   : > { %745 = vrot.lane.b32.xlu1 %v4745_v34, %s4573_s28  ;;  %743 = vrot.lane.b32.xlu0 %v4748_v35, %s4573_s28 }
  0xef   : > { %v5389_v7 = vpop.permute.xlu1 %546  ;;  %v5391_v0 = vpop.permute.xlu0 %544 }
  0xf0   : > { %8994 = vst [vmem:[#allocation129_spill] sm:$0xff] %v5389_v7  ;;  %8995 = vst [vmem:[#allocation130_spill] sm:$0xff] %v5391_v0 }
  0xf1   : > { %749 = vrot.lane.b32.xlu1 %v4763_v39, %s4573_s28  ;;  %747 = vrot.lane.b32.xlu0 %v4766_v40, %s4573_s28 }
  0xf3   : > { %v5397_v10 = vpop.permute.xlu1 %550  ;;  %v5399_v8 = vpop.permute.xlu0 %548 }
  0xf5   : > { %753 = vrot.lane.b32.xlu1 %v4781_v44, %s4573_s28  ;;  %751 = vrot.lane.b32.xlu0 %v4784_v45, %s4573_s28 }
  0xf7   : > { %v5405_v7 = vpop.permute.xlu1 %554  ;;  %v5407_v6 = vpop.permute.xlu0 %552 }
  0xf9   : > { %757 = vrot.lane.b32.xlu1 %v4799_v49, %s4573_s28  ;;  %755 = vrot.lane.b32.xlu0 %v4802_v50, %s4573_s28 }
  0xfb   : > { %v5413_v0 = vpop.permute.xlu1 %558  ;;  %v5415_v46 = vpop.permute.xlu0 %556 }
  0xfd   : > { %761 = vrot.lane.b32.xlu1 %v4817_v54, %s4573_s28  ;;  %759 = vrot.lane.b32.xlu0 %v4820_v55, %s4573_s28 }
  0xff   : > { %v5427_v13 = vpop.permute.xlu1 %562  ;;  %v5429_v1 = vpop.permute.xlu0 %560 }
 0x100   : > { %8996 = vst [vmem:[#allocation131_spill] sm:$0xff] %v5427_v13  ;;  %8997 = vst [vmem:[#allocation132_spill] sm:$0xff] %v5429_v1 }
 0x101   : > { %765 = vrot.lane.b32.xlu1 %v5422_v61, %s4573_s28  ;;  %763 = vrot.lane.b32.xlu0 %v5425_v2, %s4573_s28 }
 0x103   : > { %v5435_v42 = vpop.permute.xlu1 %566  ;;  %v5437_v14 = vpop.permute.xlu0 %564 }
 0x104   : > { %8998 = vst [vmem:[#allocation133_spill] sm:$0xff] %v5435_v42  ;;  %8999 = vst [vmem:[#allocation134_spill] sm:$0xff] %v5437_v14 }
 0x105   : > { %796 = vrot.lane.b32.xlu1 %v4647_v3, %s4574_s29  ;;  %794 = vrot.lane.b32.xlu0 %v4680_v15, %s4574_s29 }
 0x107   : > { %v5443_v13 = vpop.permute.xlu1 %570  ;;  %v5445_v1 = vpop.permute.xlu0 %568 }
 0x108   : > { %9000 = vst [vmem:[#allocation135_spill] sm:$0xff] %v5443_v13  ;;  %9001 = vst [vmem:[#allocation136_spill] sm:$0xff] %v5445_v1 }
 0x109   : > { %800 = vrot.lane.b32.xlu1 %v4664_v9, %s4574_s29  ;;  %798 = vrot.lane.b32.xlu0 %v4684_v16, %s4574_s29 }
 0x10b   : > { %v5451_v42 = vpop.permute.xlu1 %574  ;;  %v5453_v14 = vpop.permute.xlu0 %572 }
 0x10c   : > { %9002 = vst [vmem:[#allocation137_spill] sm:$0xff] %v5451_v42  ;;  %9003 = vst [vmem:[#allocation138_spill] sm:$0xff] %v5453_v14  ;;  %v1980_v42 = vrot.slane %v4694_v20, 7  ;;  %v1981_v14 = vrot.slane %v4691_v19, 7  ;;  %v1983_v19 = vrot.slane %v4712_v25, 7  ;;  %v1984_v20 = vrot.slane %v4709_v24, 7 }
 0x10d   : > { %804 = vrot.lane.b32.xlu1 %v4687_v17, %s4574_s29  ;;  %802 = vrot.lane.b32.xlu0 %v4702_v21, %s4574_s29  ;;  %v1986_v24 = vrot.slane %v4730_v30, 7  ;;  %v1987_v25 = vrot.slane %v4727_v29, 7 }
 0x10f   : > { %v5459_v3 = vpop.permute.xlu1 %578  ;;  %v5461_v15 = vpop.permute.xlu0 %576 }
 0x110   : > { %9004 = vst [vmem:[#allocation139_spill] sm:$0xff] %v5459_v3  ;;  %9005 = vst [vmem:[#allocation140_spill] sm:$0xff] %v5461_v15  ;;  %v1982_v15 = vsel %vm1979_vm4, %v1980_v42, %v1981_v14 }
 0x111   : > { %808 = vrot.lane.b32.xlu1 %v4705_v22, %s4574_s29  ;;  %806 = vrot.lane.b32.xlu0 %v4720_v26, %s4574_s29  ;;  %v254_v22 = vld [vmem:[%s4635_s23 + $0xe8] sm:$0xff] }
 0x113   : > { %v5469_v1 = vpop.permute.xlu1 %582  ;;  %v5471_v13 = vpop.permute.xlu0 %580 }
 0x114   : > { %9006 = vst [vmem:[#allocation141_spill] sm:$0xff] %v5469_v1  ;;  %9007 = vst [vmem:[#allocation142_spill] sm:$0xff] %v5471_v13 }
 0x115   : > { %2016 = vrot.lane.b32.xlu1 %v1980_v42, %s4572_s27  ;;  %810 = vrot.lane.b32.xlu0 %v4738_v31, %s4574_s29  ;;  %v1985_v42 = vsel %vm1979_vm4, %v1983_v19, %v1984_v20 }
 0x117   : > { %v5477_v3 = vpop.permute.xlu1 %647  ;;  %v5479_v38 = vpop.permute.xlu0 %645 }
 0x118   : > { %9008 = vst [vmem:[#allocation143_spill] sm:$0xff] %v5477_v3  ;;  %9009 = vst [vmem:[#allocation144_spill] sm:$0xff] %v5479_v38  ;;  %v5781_v38 = vrot.slane %v5422_v61, 3 }
 0x119   : > { %881 = vrot.lane.b32.xlu1 %v4893_v43, %s4575_s30  ;;  %2018 = vrot.lane.b32.xlu0 %v1982_v15, %s4572_s27 }
 0x11a   : > { %9092 = vst [vmem:[#allocation204_spill] sm:$0xff] %v5781_v38 }
 0x11b   : > { %v5486_v13 = vpop.permute.xlu1 %651  ;;  %v5488_v1 = vpop.permute.xlu0 %649 }
 0x11c   : > { %9010 = vst [vmem:[#allocation145_spill] sm:$0xff] %v5486_v13  ;;  %9011 = vst [vmem:[#allocation146_spill] sm:$0xff] %v5488_v1 }
 0x11d   : > { %2020 = vrot.lane.b32.xlu1 %v1983_v19, %s4572_s27  ;;  %883 = vrot.lane.b32.xlu0 %v4884_v33, %s4575_s30  ;;  %v1988_v19 = vsel %vm1979_vm4, %v1986_v24, %v1987_v25 }
 0x11f   : > { %v5494_v14 = vpop.permute.xlu1 %655  ;;  %v5496_v3 = vpop.permute.xlu0 %653 }
 0x120   : > { %9012 = vst [vmem:[#allocation147_spill] sm:$0xff] %v5494_v14  ;;  %9013 = vst [vmem:[#allocation148_spill] sm:$0xff] %v5496_v3 }
 0x121   : > { %956 = vrot.lane.b32.xlu1 %v5030_v63, %s4576_s6  ;;  %2022 = vrot.lane.b32.xlu0 %v1985_v42, %s4572_s27 }
 0x123   : > { %v5503_v15 = vpop.permute.xlu1 %659  ;;  %v5505_v13 = vpop.permute.xlu0 %657 }
 0x124   : > { %9014 = vst [vmem:[#allocation149_spill] sm:$0xff] %v5503_v15  ;;  %9015 = vst [vmem:[#allocation150_spill] sm:$0xff] %v5505_v13  ;;  %v1996_v15 = vrot.slane %v4781_v44, 7 }
 0x125   : > { %812 = vrot.lane.b32.xlu1 %v4723_v27, %s4574_s29  ;;  %958 = vrot.lane.b32.xlu0 %v5021_v28, %s4576_s6 }
 0x127   : > { %v5512_v20 = vpop.permute.xlu1 %663  ;;  %v5514_v14 = vpop.permute.xlu0 %661 }
 0x128   : > { %9016 = vst [vmem:[#allocation151_spill] sm:$0xff] %v5512_v20  ;;  %9017 = vst [vmem:[#allocation152_spill] sm:$0xff] %v5514_v14  ;;  %v9039_v14 = vld [vmem:[#allocation8_spill] sm:$0xff] }
 0x129   : > { %2026 = vrot.lane.b32.xlu1 %v1988_v19, %s4572_s27  ;;  %2024 = vrot.lane.b32.xlu0 %v1986_v24, %s4572_s27 }
 0x12b   : > { %v5518_v29 = vpop.permute.xlu1 %667  ;;  %v5520_v30 = vpop.permute.xlu0 %665 }
 0x12c   : > { %9018 = vst [vmem:[#allocation153_spill] sm:$0xff] %v5518_v29  ;;  %9019 = vst [vmem:[#allocation154_spill] sm:$0xff] %v5520_v30 }
 0x12d   : > { %887 = vrot.lane.b32.xlu1 %v4896_v48, %s4575_s30  ;;  %885 = vrot.lane.b32.xlu0 %v4905_v58, %s4575_s30  ;;  %v253_v58 = vld [vmem:[%s4635_s23 + $0xe0] sm:$0xff] }
 0x12f   : > { %v5526_v42 = vpop.permute.xlu1 %671  ;;  %v5528_v25 = vpop.permute.xlu0 %669 }
 0x130   : > { %9020 = vst [vmem:[#allocation155_spill] sm:$0xff] %v5526_v42  ;;  %9021 = vst [vmem:[#allocation156_spill] sm:$0xff] %v5528_v25 }
 0x131   : > { %816 = vrot.lane.b32.xlu1 %v4741_v32, %s4574_s29  ;;  %814 = vrot.lane.b32.xlu0 %v4756_v36, %s4574_s29  ;;  %v941_v32 = vrot.slane %v5425_v2, 3 }
 0x133   : > { %v5534_v24 = vpop.permute.xlu1 %675  ;;  %v5536_v19 = vpop.permute.xlu0 %673 }
 0x134   : > { %9022 = vst [vmem:[#allocation157_spill] sm:$0xff] %v5534_v24  ;;  %9023 = vst [vmem:[#allocation158_spill] sm:$0xff] %v5536_v19  ;;  %v1989_v24 = vrot.slane %v4748_v35, 7  ;;  %v1990_v19 = vrot.slane %v4745_v34, 7 }
 0x135   : > { %962 = vrot.lane.b32.xlu1 %v5033_v59, %s4576_s6  ;;  %960 = vrot.lane.b32.xlu0 %v5042_v57, %s4576_s6 }
 0x137   : > { %v5542_v29 = vpop.permute.xlu1 %679  ;;  %v5544_v42 = vpop.permute.xlu0 %677 }
 0x138   : > { %9024 = vst [vmem:[#allocation159_spill] sm:$0xff] %v5542_v29  ;;  %9025 = vst [vmem:[#allocation160_spill] sm:$0xff] %v5544_v42  ;;  %v1991_v42 = vsel %vm1979_vm4, %v1989_v24, %v1990_v19  ;;  %v1992_v19 = vrot.slane %v4766_v40, 7 }
 0x139   : > { %891 = vrot.lane.b32.xlu1 %v4908_v60, %s4575_s30  ;;  %889 = vrot.lane.b32.xlu0 %v4917_v62, %s4575_s30 }
 0x13b   : > { %v5552_v25 = vpop.permute.xlu1 %683  ;;  %v5554_v30 = vpop.permute.xlu0 %681 }
 0x13c   : > { %9026 = vst [vmem:[#allocation161_spill] sm:$0xff] %v5552_v25  ;;  %9027 = vst [vmem:[#allocation162_spill] sm:$0xff] %v5554_v30 }
 0x13d   : > { %966 = vrot.lane.b32.xlu1 %v5045_v53, %s4576_s6  ;;  %964 = vrot.lane.b32.xlu0 %v5058_v52, %s4576_s6  ;;  %v5741_v53 = vrot.slane %v5422_v61, 2 }
 0x13f   : > { %v5561_v29 = vpop.permute.xlu1 %687  ;;  %v5563_v20 = vpop.permute.xlu0 %685  ;;  %9084 = vst [vmem:[#allocation198_spill] sm:$0xff] %v5741_v53 }
 0x140   : > { %9028 = vst [vmem:[#allocation163_spill] sm:$0xff] %v5561_v29  ;;  %9029 = vst [vmem:[#allocation164_spill] sm:$0xff] %v5563_v20  ;;  %v1993_v29 = vrot.slane %v4763_v39, 7 }
 0x141   : > { %2030 = vrot.lane.b32.xlu1 %v1991_v42, %s4572_s27  ;;  %2028 = vrot.lane.b32.xlu0 %v1989_v24, %s4572_s27 }
 0x142   : > { %v1994_v42 = vsel %vm1979_vm4, %v1992_v19, %v1993_v29 }
 0x143   : > { %v5567_v34 = vpop.permute.xlu1 %691  ;;  %v5569_v35 = vpop.permute.xlu0 %689 }
 0x144   : > { %9030 = vst [vmem:[#allocation165_spill] sm:$0xff] %v5567_v34  ;;  %9031 = vst [vmem:[#allocation166_spill] sm:$0xff] %v5569_v35  ;;  %v9038_v35 = vld [vmem:[#allocation53_spill] sm:$0xff] }
 0x145   : > { %820 = vrot.lane.b32.xlu1 %v4759_v37, %s4574_s29  ;;  %818 = vrot.lane.b32.xlu0 %v4774_v41, %s4574_s29  ;;  %v251_v41 = vld [vmem:[%s4635_s23 + $0xd0] sm:$0xff] }
 0x146   : > { %v2007_v59 = vrot.slane %v251_v41, 7  ;;  %v1315_v57 = vrot.slane %v251_v41, 3 }
 0x147   : > { %v5577_v30 = vpop.permute.xlu1 %721  ;;  %v5579_v25 = vpop.permute.xlu0 %719 }
 0x148   : > { %9032 = vst [vmem:[#allocation167_spill] sm:$0xff] %v5577_v30  ;;  %9033 = vst [vmem:[#allocation168_spill] sm:$0xff] %v5579_v25 }
 0x149   : > { %895 = vrot.lane.b32.xlu1 %v4920_v4, %s4575_s30  ;;  %893 = vrot.lane.b32.xlu0 %v4929_v23, %s4575_s30  ;;  %v9049_v4 = vld [vmem:[#allocation54_spill] sm:$0xff]  ;;  %v252_v23 = vld [vmem:[%s4635_s23 + $0xd8] sm:$0xff] }
 0x14a   : > { %v2008_v18 = vrot.slane %v252_v23, 7  ;;  %v5833_v48 = vrot.slane %v252_v23, 3 }
 0x14b   : > { %v5586_v24 = vpop.permute.xlu1 %725  ;;  %v5588_v34 = vpop.permute.xlu0 %723 }
 0x14c   : > { %9034 = vst [vmem:[#allocation169_spill] sm:$0xff] %v5586_v24  ;;  %9035 = vst [vmem:[#allocation170_spill] sm:$0xff] %v5588_v34  ;;  %v9043_v24 = vld [vmem:[#allocation29_spill] sm:$0xff] }
 0x14d   : > { %2034 = vrot.lane.b32.xlu1 %v1994_v42, %s4572_s27  ;;  %2032 = vrot.lane.b32.xlu0 %v1992_v19, %s4572_s27  ;;  %v9040_v42 = vld [vmem:[#allocation9_spill] sm:$0xff]  ;;  %v1995_v19 = vrot.slane %v4784_v45, 7  ;;  %9106 = vst [vmem:[#allocation218_spill] sm:$0xff] %v5833_v48 }
 0x14f   : > { %v5592_v39 = vpop.permute.xlu1 %729  ;;  %v5594_v40 = vpop.permute.xlu0 %727  ;;  %v1997_v3 = vsel %vm1979_vm4, %v1995_v19, %v1996_v15  ;;  %v1998_v15 = vrot.slane %v4802_v50, 7 }
 0x150   : > { %9036 = vst [vmem:[#allocation171_spill] sm:$0xff] %v5592_v39  ;;  %9037 = vst [vmem:[#allocation172_spill] sm:$0xff] %v5594_v40  ;;  %v9044_v40 = vld [vmem:[#allocation30_spill] sm:$0xff] }
 0x151   : > { %970 = vrot.lane.b32.xlu1 %v5061_v12, %s4576_s6  ;;  %968 = vrot.lane.b32.xlu0 %v9038_v35, %s4576_s6  ;;  %v866_v35 = vrot.slane %v5425_v2, 2 }
 0x153   : > { %v5600_v20 = vpop.permute.xlu1 %733  ;;  %v5602_v29 = vpop.permute.xlu0 %731 }
 0x155   : > { %824 = vrot.lane.b32.xlu1 %v9039_v14, %s4574_s29  ;;  %822 = vrot.lane.b32.xlu0 %v9040_v42, %s4574_s29 }
 0x157   : > { %v5610_v39 = vpop.permute.xlu1 %737  ;;  %v5612_v13 = vpop.permute.xlu0 %735 }
 0x158   : > { %9041 = vst [vmem:[#allocation173_spill] sm:$0xff] %v5610_v39  ;;  %9042 = vst [vmem:[#allocation174_spill] sm:$0xff] %v5612_v13 }
 0x159   : > { %899 = vrot.lane.b32.xlu1 %v9043_v24, %s4575_s30  ;;  %897 = vrot.lane.b32.xlu0 %v9044_v40, %s4575_s30  ;;  %v9050_v24 = vld [vmem:[#allocation57_spill] sm:$0xff]  ;;  %v1999_v40 = vrot.slane %v4799_v49, 7 }
 0x15b   : > { %v5619_v14 = vpop.permute.xlu1 %741  ;;  %v5621_v12 = vpop.permute.xlu0 %739  ;;  %v2000_v1 = vsel %vm1979_vm4, %v1998_v15, %v1999_v40 }
 0x15c   : > { %9045 = vst [vmem:[#allocation175_spill] sm:$0xff] %v5619_v14  ;;  %9046 = vst [vmem:[#allocation176_spill] sm:$0xff] %v5621_v12 }
 0x15d   : > { %2038 = vrot.lane.b32.xlu1 %v1997_v3, %s4572_s27  ;;  %2036 = vrot.lane.b32.xlu0 %v1995_v19, %s4572_s27  ;;  %v9053_v3 = vld [vmem:[#allocation10_spill] sm:$0xff]  ;;  %v9054_v19 = vld [vmem:[#allocation11_spill] sm:$0xff] }
 0x15f   : > { %v5625_v44 = vpop.permute.xlu1 %745  ;;  %v5627_v45 = vpop.permute.xlu0 %743 }
 0x160   : > { %9047 = vst [vmem:[#allocation177_spill] sm:$0xff] %v5625_v44  ;;  %9048 = vst [vmem:[#allocation178_spill] sm:$0xff] %v5627_v45 }
 0x161   : > { %974 = vrot.lane.b32.xlu1 %v9049_v4, %s4576_s6  ;;  %972 = vrot.lane.b32.xlu0 %v9050_v24, %s4576_s6  ;;  %v9059_v24 = vld [vmem:[#allocation31_spill] sm:$0xff] }
 0x163   : > { %v5635_v34 = vpop.permute.xlu1 %749  ;;  %v5637_v30 = vpop.permute.xlu0 %747 }
 0x164   : > { %9051 = vst [vmem:[#allocation179_spill] sm:$0xff] %v5635_v34  ;;  %9052 = vst [vmem:[#allocation180_spill] sm:$0xff] %v5637_v30  ;;  %v9085_v34 = vld [vmem:[#allocation66_spill] sm:$0xff] }
 0x165   : > { %828 = vrot.lane.b32.xlu1 %v9053_v3, %s4574_s29  ;;  %826 = vrot.lane.b32.xlu0 %v9054_v19, %s4574_s29  ;;  %v9060_v3 = vld [vmem:[#allocation32_spill] sm:$0xff] }
 0x167   : > { %v5644_v4 = vpop.permute.xlu1 %753  ;;  %v5646_v37 = vpop.permute.xlu0 %751 }
 0x168   : > { %9055 = vst [vmem:[#allocation181_spill] sm:$0xff] %v5644_v4  ;;  %9056 = vst [vmem:[#allocation182_spill] sm:$0xff] %v5646_v37  ;;  %v9063_v37 = vld [vmem:[#allocation12_spill] sm:$0xff] }
 0x169   : > { %2042 = vrot.lane.b32.xlu1 %v2000_v1, %s4572_s27  ;;  %2040 = vrot.lane.b32.xlu0 %v1998_v15, %s4572_s27  ;;  %v9064_v1 = vld [vmem:[#allocation13_spill] sm:$0xff] }
 0x16b   : > { %v5650_v49 = vpop.permute.xlu1 %757  ;;  %v5652_v50 = vpop.permute.xlu0 %755 }
 0x16c   : > { %9057 = vst [vmem:[#allocation183_spill] sm:$0xff] %v5650_v49  ;;  %9058 = vst [vmem:[#allocation184_spill] sm:$0xff] %v5652_v50  ;;  %v9067_v50 = vld [vmem:[#allocation58_spill] sm:$0xff] }
 0x16d   : > { %903 = vrot.lane.b32.xlu1 %v9059_v24, %s4575_s30  ;;  %901 = vrot.lane.b32.xlu0 %v9060_v3, %s4575_s30  ;;  %v9068_v24 = vld [vmem:[#allocation61_spill] sm:$0xff] }
 0x16f   : > { %v5658_v19 = vpop.permute.xlu1 %761  ;;  %v5660_v40 = vpop.permute.xlu0 %759 }
 0x170   : > { %9061 = vst [vmem:[#allocation185_spill] sm:$0xff] %v5658_v19  ;;  %9062 = vst [vmem:[#allocation186_spill] sm:$0xff] %v5660_v40  ;;  %v9071_v40 = vld [vmem:[#allocation33_spill] sm:$0xff] }
 0x171   : > { %832 = vrot.lane.b32.xlu1 %v9063_v37, %s4574_s29  ;;  %830 = vrot.lane.b32.xlu0 %v9064_v1, %s4574_s29  ;;  %v9072_v37 = vld [vmem:[#allocation34_spill] sm:$0xff] }
 0x173   : > { %v5666_v15 = vpop.permute.xlu1 %765  ;;  %v5668_v49 = vpop.permute.xlu0 %763 }
 0x174   : > { %9065 = vst [vmem:[#allocation187_spill] sm:$0xff] %v5666_v15  ;;  %9066 = vst [vmem:[#allocation188_spill] sm:$0xff] %v5668_v49  ;;  %v2001_v15 = vrot.slane %v4820_v55, 7  ;;  %v2002_v49 = vrot.slane %v4817_v54, 7 }
 0x175   : > { %978 = vrot.lane.b32.xlu1 %v9067_v50, %s4576_s6  ;;  %976 = vrot.lane.b32.xlu0 %v9068_v24, %s4576_s6 }
 0x176   : > { %v2003_v24 = vsel %vm1979_vm4, %v2001_v15, %v2002_v49  ;;  %v5708_v49 = vrot.slane %v5422_v61, 1 }
 0x177   : > { %v5674_v3 = vpop.permute.xlu1 %796  ;;  %v5676_v19 = vpop.permute.xlu0 %794 }
 0x178   : > { %9069 = vst [vmem:[#allocation189_spill] sm:$0xff] %v5674_v3  ;;  %9070 = vst [vmem:[#allocation190_spill] sm:$0xff] %v5676_v19  ;;  %v1165_v19 = vrot.slane %v251_v41, 1 }
 0x179   : > { %907 = vrot.lane.b32.xlu1 %v9071_v40, %s4575_s30  ;;  %905 = vrot.lane.b32.xlu0 %v9072_v37, %s4575_s30  ;;  %v9077_v37 = vld [vmem:[#allocation14_spill] sm:$0xff]  ;;  %9079 = vst [vmem:[#allocation195_spill] sm:$0xff] %v5708_v49 }
 0x17b   : > { %v5684_v1 = vpop.permute.xlu1 %800  ;;  %v5686_v50 = vpop.permute.xlu0 %798 }
 0x17c   : > { %9073 = vst [vmem:[#allocation191_spill] sm:$0xff] %v5684_v1  ;;  %9074 = vst [vmem:[#allocation192_spill] sm:$0xff] %v5686_v50  ;;  %v9082_v1 = vld [vmem:[#allocation36_spill] sm:$0xff] }
 0x17d   : > { %982 = vrot.lane.b32.xlu1 %v5109_v51, %s4576_s6  ;;  %980 = vrot.lane.b32.xlu0 %v5122_v47, %s4576_s6  ;;  %v9078_v51 = vld [vmem:[#allocation15_spill] sm:$0xff]  ;;  %v791_v47 = vrot.slane %v5425_v2, 1 }
 0x17f   : > { %v5693_v40 = vpop.permute.xlu1 %804  ;;  %v5695_v4 = vpop.permute.xlu0 %802 }
 0x180   : > { %9075 = vst [vmem:[#allocation193_spill] sm:$0xff] %v5693_v40  ;;  %9076 = vst [vmem:[#allocation194_spill] sm:$0xff] %v5695_v4  ;;  %v2005_v4 = vrot.slane %v5422_v61, 7 }
 0x181   : > { %2046 = vrot.lane.b32.xlu1 %v2003_v24, %s4572_s27  ;;  %2044 = vrot.lane.b32.xlu0 %v2001_v15, %s4572_s27  ;;  %v9081_v15 = vld [vmem:[#allocation35_spill] sm:$0xff] }
 0x183   : > { %v5699_v54 = vpop.permute.xlu1 %808  ;;  %v5701_v55 = vpop.permute.xlu0 %806 }
 0x185   : > { %836 = vrot.lane.b32.xlu1 %v9077_v37, %s4574_s29  ;;  %834 = vrot.lane.b32.xlu0 %v9078_v51, %s4574_s29  ;;  %v5721_v37 = vsel %vm8854_vm0, %v791_v47, %v5708_v49  ;;  %v2004_v51 = vrot.slane %v5425_v2, 7  ;;  %v5804_v2 = vrot.slane %v252_v23, 2 }
 0x186   : > { %9083 = vst [vmem:[#allocation197_spill] sm:$0xff] %v5721_v37 }
 0x187   : > { %v5711_v40 = vpop.permute.xlu1 %2016  ;;  %v5713_v24 = vpop.permute.xlu0 %810  ;;  %9098 = vst [vmem:[#allocation210_spill] sm:$0xff] %v5804_v2 }
 0x188   : > { %9080 = vst [vmem:[#allocation196_spill] sm:$0xff] %v5713_v24 }
 0x189   : > { %911 = vrot.lane.b32.xlu1 %v9081_v15, %s4575_s30  ;;  %909 = vrot.lane.b32.xlu0 %v9082_v1, %s4575_s30  ;;  %v2006_v15 = vsel %vm1979_vm4, %v2004_v51, %v2005_v4  ;;  %v9086_v4 = vld [vmem:[#allocation69_spill] sm:$0xff] }
 0x18b   : > { %v5725_v50 = vpop.permute.xlu1 %881  ;;  %v5727_v3 = vpop.permute.xlu0 %2018 }
 0x18d   : > { %1919 = vrot.lane.b32.xlu1 %v5708_v49, %s4569_s24  ;;  %1917 = vrot.lane.b32.xlu0 %v5721_v37, %s4569_s24 }
 0x18f   : > { %v5734_v47 = vpop.permute.xlu1 %2020  ;;  %v5736_v1 = vpop.permute.xlu0 %883 }
 0x191   : > { %2050 = vrot.lane.b32.xlu1 %v2006_v15, %s4572_s27  ;;  %2048 = vrot.lane.b32.xlu0 %v2004_v51, %s4572_s27  ;;  %v5754_v15 = vsel %vm390_vm1, %v866_v35, %v5741_v53 }
 0x192   : > { %9087 = vst [vmem:[#allocation199_spill] sm:$0xff] %v5754_v15 }
 0x193   : > { %v5744_v42 = vpop.permute.xlu1 %956  ;;  %v5746_v30 = vpop.permute.xlu0 %2022 }
 0x195   : > { %986 = vrot.lane.b32.xlu1 %v9085_v34, %s4576_s6  ;;  %984 = vrot.lane.b32.xlu0 %v9086_v4, %s4576_s6  ;;  %v5766_v34 = vrot.slane %v252_v23, 1 }
 0x197   : > { %v5756_v51 = vpop.permute.xlu1 %812  ;;  %v5758_v60 = vpop.permute.xlu0 %958  ;;  %9090 = vst [vmem:[#allocation202_spill] sm:$0xff] %v5766_v34  ;;  %v5778_v35 = vsel %vm8854_vm0, %v1165_v19, %v5766_v34 }
 0x198   : > { %9088 = vst [vmem:[#allocation200_spill] sm:$0xff] %v5756_v51  ;;  %9089 = vst [vmem:[#allocation201_spill] sm:$0xff] %v5758_v60 }
 0x199   : > { %1940 = vrot.lane.b32.xlu1 %v5741_v53, %s4570_s25  ;;  %1938 = vrot.lane.b32.xlu0 %v5754_v15, %s4570_s25  ;;  %9091 = vst [vmem:[#allocation203_spill] sm:$0xff] %v5778_v35 }
 0x19b   : > { %v5768_v4 = vpop.permute.xlu1 %2026  ;;  %v5770_v25 = vpop.permute.xlu0 %2024 }
 0x19d   : > { %840 = vrot.lane.b32.xlu1 %v5708_v49, %s4574_s29  ;;  %838 = vrot.lane.b32.xlu0 %v5721_v37, %s4574_s29  ;;  %v5794_v49 = vsel %vm499_vm2, %v941_v32, %v5781_v38  ;;  %v1240_v37 = vrot.slane %v251_v41, 2 }
 0x19e   : > { %9095 = vst [vmem:[#allocation207_spill] sm:$0xff] %v5794_v49 }
 0x19f   : > { %v5784_v52 = vpop.permute.xlu1 %887  ;;  %v5786_v45 = vpop.permute.xlu0 %885  ;;  %v5816_v32 = vsel %vm390_vm1, %v1240_v37, %v5804_v2 }
 0x1a0   : > { %9093 = vst [vmem:[#allocation205_spill] sm:$0xff] %v5784_v52  ;;  %9094 = vst [vmem:[#allocation206_spill] sm:$0xff] %v5786_v45 }
 0x1a1   : > { %1923 = vrot.lane.b32.xlu1 %v5766_v34, %s4569_s24  ;;  %1921 = vrot.lane.b32.xlu0 %v5778_v35, %s4569_s24  ;;  %9101 = vst [vmem:[#allocation213_spill] sm:$0xff] %v5816_v32 }
 0x1a3   : > { %v5796_v19 = vpop.permute.xlu1 %816  ;;  %v5798_v61 = vpop.permute.xlu0 %814 }
 0x1a4   : > { %9096 = vst [vmem:[#allocation208_spill] sm:$0xff] %v5796_v19  ;;  %9097 = vst [vmem:[#allocation209_spill] sm:$0xff] %v5798_v61 }
 0x1a5   : > { %1961 = vrot.lane.b32.xlu1 %v5781_v38, %s4571_s26  ;;  %1959 = vrot.lane.b32.xlu0 %v5794_v49, %s4571_s26 }
 0x1a7   : > { %v5806_v44 = vpop.permute.xlu1 %962  ;;  %v5808_v62 = vpop.permute.xlu0 %960 }
 0x1a8   : > { %9099 = vst [vmem:[#allocation211_spill] sm:$0xff] %v5806_v44  ;;  %9100 = vst [vmem:[#allocation212_spill] sm:$0xff] %v5808_v62 }
 0x1a9   : > { %915 = vrot.lane.b32.xlu1 %v5741_v53, %s4575_s30  ;;  %913 = vrot.lane.b32.xlu0 %v5754_v15, %s4575_s30  ;;  %v2009_v53 = vsel %vm1979_vm4, %v2007_v59, %v2008_v18  ;;  %v5845_v18 = vsel %vm499_vm2, %v1315_v57, %v5833_v48 }
 0x1aa   : > { %9109 = vst [vmem:[#allocation221_spill] sm:$0xff] %v5845_v18 }
 0x1ab   : > { %v5818_v28 = vpop.permute.xlu1 %891  ;;  %v5820_v36 = vpop.permute.xlu0 %889 }
 0x1ac   : > { %9102 = vst [vmem:[#allocation214_spill] sm:$0xff] %v5818_v28  ;;  %9103 = vst [vmem:[#allocation215_spill] sm:$0xff] %v5820_v36 }
 0x1ad   : > { %1944 = vrot.lane.b32.xlu1 %v5804_v2, %s4570_s25  ;;  %1942 = vrot.lane.b32.xlu0 %v5816_v32, %s4570_s25 }
 0x1af   : > { %v5827_v15 = vpop.permute.xlu1 %966  ;;  %v5829_v37 = vpop.permute.xlu0 %964 }
 0x1b0   : > { %9104 = vst [vmem:[#allocation216_spill] sm:$0xff] %v5827_v15  ;;  %9105 = vst [vmem:[#allocation217_spill] sm:$0xff] %v5829_v37  ;;  %v1915_v37 = vrot.slane %v254_v22, 1  ;;  %v1914_v15 = vrot.slane %v253_v58, 1 }
 0x1b1   : > { %2054 = vrot.lane.b32.xlu1 %v2009_v53, %s4572_s27  ;;  %2052 = vrot.lane.b32.xlu0 %v2007_v59, %s4572_s27 }
 0x1b3   : > { %v5835_v27 = vpop.permute.xlu1 %2030  ;;  %v5837_v33 = vpop.permute.xlu0 %2028 }
 0x1b4   : > { %9107 = vst [vmem:[#allocation219_spill] sm:$0xff] %v5835_v27  ;;  %9108 = vst [vmem:[#allocation220_spill] sm:$0xff] %v5837_v33  ;;  %v2011_v33 = vrot.slane %v254_v22, 7 }
 0x1b5   : > { %990 = vrot.lane.b32.xlu1 %v5781_v38, %s4576_s6  ;;  %988 = vrot.lane.b32.xlu0 %v5794_v49, %s4576_s6  ;;  %v2010_v38 = vrot.slane %v253_v58, 7 }
 0x1b7   : > { %v5847_v53 = vpop.permute.xlu1 %820  ;;  %v5849_v59 = vpop.permute.xlu0 %818  ;;  %v2012_v57 = vsel %vm1979_vm4, %v2010_v38, %v2011_v33 }
 0x1b8   : > { %9110 = vst [vmem:[#allocation222_spill] sm:$0xff] %v5847_v53  ;;  %9111 = vst [vmem:[#allocation223_spill] sm:$0xff] %v5849_v59 }
 0x1b9   : > { %1965 = vrot.lane.b32.xlu1 %v5833_v48, %s4571_s26  ;;  %1963 = vrot.lane.b32.xlu0 %v5845_v18, %s4571_s26 }
 0x1bb   : > { %v5857_v27 = vpop.permute.xlu1 %895  ;;  %v5859_v49 = vpop.permute.xlu0 %893 }
 0x1bc   : > { %9112 = vst [vmem:[#allocation224_spill] sm:$0xff] %v5857_v27  ;;  %9113 = vst [vmem:[#allocation225_spill] sm:$0xff] %v5859_v49 }
 0x1bd   : > { %2090 = vrot.lane.b32.xlu1 %v252_v23, %s4573_s28  ;;  %2088 = vrot.lane.b32.xlu0 %v251_v41, %s4573_s28  ;;  %v1916_v41 = vsel %vm8854_vm0, %v1914_v15, %v1915_v37 }
 0x1bf   : > { %v5864_v59 = vpop.permute.xlu1 %2034  ;;  %v5866_v53 = vpop.permute.xlu0 %2032 }
 0x1c0   : > { %9114 = vst [vmem:[#allocation226_spill] sm:$0xff] %v5866_v53 }
 0x1c1   : > { %2058 = vrot.lane.b32.xlu1 %v2012_v57, %s4572_s27  ;;  %2056 = vrot.lane.b32.xlu0 %v2010_v38, %s4572_s27 }
 0x1c3   : > { %v5870_v36 = vpop.permute.xlu1 %970  ;;  %v5872_v27 = vpop.permute.xlu0 %968 }
 0x1c4   : > { %9115 = vst [vmem:[#allocation227_spill] sm:$0xff] %v5870_v36  ;;  %9116 = vst [vmem:[#allocation228_spill] sm:$0xff] %v5872_v27 }
 0x1c5   : > { %2111 = vrot.lane.b32.xlu1 %v5766_v34, %s4574_s29  ;;  %2109 = vrot.lane.b32.xlu0 %v5778_v35, %s4574_s29  ;;  %v1936_v34 = vrot.slane %v254_v22, 2  ;;  %v1935_v35 = vrot.slane %v253_v58, 2 }
 0x1c7   : > { %v5879_v33 = vpop.permute.xlu1 %824  ;;  %v5881_v23 = vpop.permute.xlu0 %822 }
 0x1c8   : > { %9117 = vst [vmem:[#allocation229_spill] sm:$0xff] %v5879_v33  ;;  %9118 = vst [vmem:[#allocation230_spill] sm:$0xff] %v5881_v23 }
 0x1c9   : > { %1927 = vrot.lane.b32.xlu1 %v1915_v37, %s4569_s24  ;;  %1925 = vrot.lane.b32.xlu0 %v1916_v41, %s4569_s24 }
 0x1cb   : > { %v5885_v38 = vpop.permute.xlu1 %899  ;;  %v5887_v57 = vpop.permute.xlu0 %897 }
 0x1cc   : > { %9119 = vst [vmem:[#allocation231_spill] sm:$0xff] %v5885_v38  ;;  %9120 = vst [vmem:[#allocation232_spill] sm:$0xff] %v5887_v57  ;;  %v1937_v38 = vsel %vm390_vm1, %v1935_v35, %v1936_v34  ;;  %v1956_v35 = vrot.slane %v253_v58, 3 }
 0x1cd   : > { %2094 = vrot.lane.b32.xlu1 %v254_v22, %s4573_s28  ;;  %2092 = vrot.lane.b32.xlu0 %v253_v58, %s4573_s28 }
 0x1cf   : > { %v5891_v53 = vpop.permute.xlu1 %2038  ;;  %v5893_v15 = vpop.permute.xlu0 %2036 }
 0x1d0   : > { %9121 = vst [vmem:[#allocation233_spill] sm:$0xff] %v5891_v53  ;;  %9122 = vst [vmem:[#allocation234_spill] sm:$0xff] %v5893_v15 }
 0x1d1   : > { %2132 = vrot.lane.b32.xlu1 %v5804_v2, %s4575_s30  ;;  %2130 = vrot.lane.b32.xlu0 %v5816_v32, %s4575_s30  ;;  %v1957_v2 = vrot.slane %v254_v22, 3 }
 0x1d3   : > { %v5900_v23 = vpop.permute.xlu1 %974  ;;  %v5902_v57 = vpop.permute.xlu0 %972 }
 0x1d4   : > { %9123 = vst [vmem:[#allocation235_spill] sm:$0xff] %v5900_v23  ;;  %9124 = vst [vmem:[#allocation236_spill] sm:$0xff] %v5902_v57 }
 0x1d5   : > { %1948 = vrot.lane.b32.xlu1 %v1936_v34, %s4570_s25  ;;  %1946 = vrot.lane.b32.xlu0 %v1937_v38, %s4570_s25  ;;  %s4584_s25 = smov 64  }
 0x1d7   : > { %v5906_v53 = vpop.permute.xlu1 %828  ;;  %v5908_v15 = vpop.permute.xlu0 %826 }
 0x1d8   : > { %9125 = vst [vmem:[#allocation237_spill] sm:$0xff] %v5906_v53  ;;  %9126 = vst [vmem:[#allocation238_spill] sm:$0xff] %v5908_v15  ;;  %v1958_v53 = vsel %vm499_vm2, %v1956_v35, %v1957_v2 }
 0x1d9   : > { %2115 = vrot.lane.b32.xlu1 %v1915_v37, %s4574_s29  ;;  %2113 = vrot.lane.b32.xlu0 %v1916_v41, %s4574_s29  ;;  %v255_v37 = vld [vmem:[%s4635_s23 + $0xf0] sm:$0xff]  ;;  %v256_v41 = vld [vmem:[%s4635_s23 + $0xf8] sm:$0xff] }
 0x1da   : > { %v2013_v22 = vrot.slane %v255_v37, 7  ;;  %v2014_v58 = vrot.slane %v256_v41, 7 }
 0x1db   : > { %v5912_v32 = vpop.permute.xlu1 %2042  ;;  %v5914_v23 = vpop.permute.xlu0 %2040 }
 0x1dc   : > { %9127 = vst [vmem:[#allocation239_spill] sm:$0xff] %v5912_v32  ;;  %9128 = vst [vmem:[#allocation240_spill] sm:$0xff] %v5914_v23  ;;  %v2015_v35 = vsel %vm1979_vm4, %v2013_v22, %v2014_v58  ;;  %vm1864_vm4 = vcmask 457728  }
 0x1dd   : > { %2153 = vrot.lane.b32.xlu1 %v5833_v48, %s4576_s6  ;;  %2151 = vrot.lane.b32.xlu0 %v5845_v18, %s4576_s6 }
 0x1df   : > { %v5921_v57 = vpop.permute.xlu1 %903  ;;  %v5923_v15 = vpop.permute.xlu0 %901 }
 0x1e0   : > { %9129 = vst [vmem:[#allocation241_spill] sm:$0xff] %v5921_v57  ;;  %9130 = vst [vmem:[#allocation242_spill] sm:$0xff] %v5923_v15 }
 0x1e1   : > { %1969 = vrot.lane.b32.xlu1 %v1957_v2, %s4571_s26  ;;  %1967 = vrot.lane.b32.xlu0 %v1958_v53, %s4571_s26 }
 0x1e3   : > { %v5929_v23 = vpop.permute.xlu1 %832  ;;  %v5931_v48 = vpop.permute.xlu0 %830 }
 0x1e4   : > { %9131 = vst [vmem:[#allocation243_spill] sm:$0xff] %v5929_v23  ;;  %9132 = vst [vmem:[#allocation244_spill] sm:$0xff] %v5931_v48 }
 0x1e5   : > { %2136 = vrot.lane.b32.xlu1 %v1936_v34, %s4575_s30  ;;  %2134 = vrot.lane.b32.xlu0 %v1937_v38, %s4575_s30  ;;  %v2107_v34 = vrot.slane %v256_v41, 1  ;;  %v2106_v38 = vrot.slane %v255_v37, 1 }
 0x1e7   : > { %v5936_v18 = vpop.permute.xlu1 %978  ;;  %v5938_v32 = vpop.permute.xlu0 %976 }
 0x1e8   : > { %9133 = vst [vmem:[#allocation245_spill] sm:$0xff] %v5936_v18  ;;  %9134 = vst [vmem:[#allocation246_spill] sm:$0xff] %v5938_v32 }
 0x1e9   : > { %2062 = vrot.lane.b32.xlu1 %v2015_v35, %s4572_s27  ;;  %2060 = vrot.lane.b32.xlu0 %v2013_v22, %s4572_s27  ;;  %v2108_v22 = vsel %vm8854_vm0, %v2106_v38, %v2107_v34  ;;  %v2128_v35 = vrot.slane %v256_v41, 2 }
 0x1eb   : > { %v5942_v15 = vpop.permute.xlu1 %907  ;;  %v5944_v57 = vpop.permute.xlu0 %905 }
 0x1ec   : > { %9135 = vst [vmem:[#allocation247_spill] sm:$0xff] %v5942_v15  ;;  %9136 = vst [vmem:[#allocation248_spill] sm:$0xff] %v5944_v57  ;;  %v2127_v15 = vrot.slane %v255_v37, 2 }
 0x1ed   : > { %2157 = vrot.lane.b32.xlu1 %v1957_v2, %s4576_s6  ;;  %2155 = vrot.lane.b32.xlu0 %v1958_v53, %s4576_s6  ;;  %v2149_v53 = vrot.slane %v256_v41, 3 }
 0x1ee   : > { %v2129_v2 = vsel %vm390_vm1, %v2127_v15, %v2128_v35  ;;  %vm1814_vm1 = vcmask 392192  }
 0x1ef   : > { %v5948_v48 = vpop.permute.xlu1 %982  ;;  %v5950_v58 = vpop.permute.xlu0 %980 }
 0x1f0   : > { %9137 = vst [vmem:[#allocation249_spill] sm:$0xff] %v5948_v48  ;;  %9138 = vst [vmem:[#allocation250_spill] sm:$0xff] %v5950_v58  ;;  %v2148_v58 = vrot.slane %v255_v37, 3 }
 0x1f1   : > { %2098 = vrot.lane.b32.xlu1 %v256_v41, %s4573_s28  ;;  %2096 = vrot.lane.b32.xlu0 %v255_v37, %s4573_s28  ;;  %v9147_v41 = vld [vmem:[#allocation38_spill] sm:$0xff] }
 0x1f2   : > { %v2150_v38 = vsel %vm499_vm2, %v2148_v58, %v2149_v53  ;;  %vm1839_vm2 = vcmask 424960  }
 0x1f3   : > { %v5955_v23 = vpop.permute.xlu1 %2046  ;;  %v5957_v57 = vpop.permute.xlu0 %2044 }
 0x1f4   : > { %9139 = vst [vmem:[#allocation251_spill] sm:$0xff] %v5955_v23  ;;  %9140 = vst [vmem:[#allocation252_spill] sm:$0xff] %v5957_v57 }
 0x1f5   : > { %2119 = vrot.lane.b32.xlu1 %v2107_v34, %s4574_s29  ;;  %2117 = vrot.lane.b32.xlu0 %v2108_v22, %s4574_s29  ;;  %v9148_v22 = vld [vmem:[#allocation17_spill] sm:$0xff] }
 0x1f7   : > { %v5962_v48 = vpop.permute.xlu1 %836  ;;  %v5964_v32 = vpop.permute.xlu0 %834 }
 0x1f8   : > { %9141 = vst [vmem:[#allocation253_spill] sm:$0xff] %v5962_v48  ;;  %9142 = vst [vmem:[#allocation254_spill] sm:$0xff] %v5964_v32  ;;  %v9183_v32 = vld [vmem:[#allocation59_spill] sm:$0xff] }
 0x1f9   : > { %2140 = vrot.lane.b32.xlu1 %v2128_v35, %s4575_s30  ;;  %2138 = vrot.lane.b32.xlu0 %v2129_v2, %s4575_s30  ;;  %v9151_v2 = vld [vmem:[#allocation16_spill] sm:$0xff] }
 0x1fb   : > { %v5969_v57 = vpop.permute.xlu1 %911  ;;  %v5971_v34 = vpop.permute.xlu0 %909 }
 0x1fc   : > { %9143 = vst [vmem:[#allocation255_spill] sm:$0xff] %v5969_v57  ;;  %9144 = vst [vmem:[#allocation256_spill] sm:$0xff] %v5971_v34  ;;  %v9169_v34 = vld [vmem:[#allocation18_spill] sm:$0xff]  ;;  %v9178_v57 = vld [vmem:[#allocation39_spill] sm:$0xff] }
 0x1fd   : > { %2161 = vrot.lane.b32.xlu1 %v2149_v53, %s4576_s6  ;;  %2159 = vrot.lane.b32.xlu0 %v2150_v38, %s4576_s6 }
 0x1ff   : > { %v5975_v15 = vpop.permute.xlu1 %1919  ;;  %v5977_v37 = vpop.permute.xlu0 %1917 }
 0x200   : > { %9145 = vst [vmem:[#allocation257_spill] sm:$0xff] %v5975_v15  ;;  %9146 = vst [vmem:[#allocation258_spill] sm:$0xff] %v5977_v37  ;;  %v5996_v37 = vld [vmem:[%s4635_s23 + $0x20] sm:$0xff]  ;;  %v9158_v15 = vld [vmem:[#allocation40_spill] sm:$0xff] }
 0x201   : > { %944 = vrot.lane.b32.xlu1 %v9147_v41, %s4576_s6  ;;  %869 = vrot.lane.b32.xlu0 %v9148_v22, %s4575_s30  ;;  %9154 = vst [vmem:[#allocation260_spill] sm:$0xff] %v5996_v37  ;;  %v9155_v41 = vld [vmem:[#allocation19_spill] sm:$0xff] }
 0x203   : > { %v5983_v58 = vpop.permute.xlu1 %2050  ;;  %v5985_v35 = vpop.permute.xlu0 %2048 }
 0x204   : > { %9149 = vst [vmem:[#allocation38_spill] sm:$0xff] %v5983_v58  ;;  %9150 = vst [vmem:[#allocation17_spill] sm:$0xff] %v5985_v35 }
 0x205   : > { %871 = vrot.lane.b32.xlu1 %v9151_v2, %s4575_s30  ;;  %1019 = vrot.lane.b32.xlu0 %v5163_v56, %s4577_s7  ;;  %v9159_v56 = vld [vmem:[#allocation37_spill] sm:$0xff] }
 0x207   : > { %v5991_v53 = vpop.permute.xlu1 %986  ;;  %v5993_v38 = vpop.permute.xlu0 %984 }
 0x208   : > { %9152 = vst [vmem:[#allocation16_spill] sm:$0xff] %v5991_v53  ;;  %9153 = vst [vmem:[#allocation259_spill] sm:$0xff] %v5993_v38  ;;  %v9162_v38 = vld [vmem:[#allocation21_spill] sm:$0xff]  ;;  %v9165_v53 = vld [vmem:[#allocation78_spill] sm:$0xff] }
 0x209   : > { %1093 = vrot.lane.b32.xlu1 %v5996_v37, %s4578_s8  ;;  %873 = vrot.lane.b32.xlu0 %v9155_v41, %s4575_s30 }
 0x20b   : > { %v6002_v22 = vpop.permute.xlu1 %1940  ;;  %v6004_v2 = vpop.permute.xlu0 %1938 }
 0x20c   : > { %9156 = vst [vmem:[#allocation19_spill] sm:$0xff] %v6002_v22  ;;  %9157 = vst [vmem:[#allocation261_spill] sm:$0xff] %v6004_v2 }
 0x20d   : > { %948 = vrot.lane.b32.xlu1 %v9158_v15, %s4576_s6  ;;  %946 = vrot.lane.b32.xlu0 %v9159_v56, %s4576_s6  ;;  %v9166_v56 = vld [vmem:[#allocation72_spill] sm:$0xff] }
 0x20f   : > { %v6010_v35 = vpop.permute.xlu1 %840  ;;  %v6012_v58 = vpop.permute.xlu0 %838 }
 0x210   : > { %9160 = vst [vmem:[#allocation40_spill] sm:$0xff] %v6010_v35  ;;  %9161 = vst [vmem:[#allocation37_spill] sm:$0xff] %v6012_v58 }
 0x211   : > { %877 = vrot.lane.b32.xlu1 %v9162_v38, %s4575_s30  ;;  %1168 = vrot.lane.b32.xlu0 %v4684_v16, %s4579_s9 }
 0x213   : > { %v6018_v22 = vpop.permute.xlu1 %1923  ;;  %v6020_v2 = vpop.permute.xlu0 %1921 }
 0x214   : > { %9163 = vst [vmem:[#allocation21_spill] sm:$0xff] %v6018_v22  ;;  %9164 = vst [vmem:[#allocation262_spill] sm:$0xff] %v6020_v2  ;;  %v4530_v22 = vld [vmem:[%s4635_s23 + $0x28] sm:$0xff] }
 0x215   : > { %1023 = vrot.lane.b32.xlu1 %v9165_v53, %s4577_s7  ;;  %1021 = vrot.lane.b32.xlu0 %v9166_v56, %s4577_s7  ;;  %v9172_v56 = vld [vmem:[#allocation42_spill] sm:$0xff] }
 0x217   : > { %v6026_v35 = vpop.permute.xlu1 %1961  ;;  %v6028_v58 = vpop.permute.xlu0 %1959 }
 0x218   : > { %9167 = vst [vmem:[#allocation78_spill] sm:$0xff] %v6026_v35  ;;  %9168 = vst [vmem:[#allocation72_spill] sm:$0xff] %v6028_v58 }
 0x219   : > { %875 = vrot.lane.b32.xlu1 %v9169_v34, %s4575_s30  ;;  %1243 = vrot.lane.b32.xlu0 %v9155_v41, %s4580_s10  ;;  %v4531_v41 = vld [vmem:[%s4635_s23 + $0x30] sm:$0xff] }
 0x21b   : > { %v6034_v16 = vpop.permute.xlu1 %915  ;;  %v6036_v2 = vpop.permute.xlu0 %913 }
 0x21c   : > { %9170 = vst [vmem:[#allocation18_spill] sm:$0xff] %v6034_v16  ;;  %9171 = vst [vmem:[#allocation263_spill] sm:$0xff] %v6036_v2 }
 0x21d   : > { %1095 = vrot.lane.b32.xlu1 %v4530_v22, %s4578_s8  ;;  %952 = vrot.lane.b32.xlu0 %v9172_v56, %s4576_s6  ;;  %v9177_v22 = vld [vmem:[#allocation82_spill] sm:$0xff] }
 0x21f   : > { %v6042_v35 = vpop.permute.xlu1 %1944  ;;  %v6044_v58 = vpop.permute.xlu0 %1942 }
 0x220   : > { %9173 = vst [vmem:[#allocation42_spill] sm:$0xff] %v6042_v35  ;;  %9174 = vst [vmem:[#allocation264_spill] sm:$0xff] %v6044_v58 }
 0x221   : > { %1318 = vrot.lane.b32.xlu1 %v9158_v15, %s4581_s11  ;;  %1097 = vrot.lane.b32.xlu0 %v4531_v41, %s4578_s8 }
 0x223   : > { %v6050_v16 = vpop.permute.xlu1 %2054  ;;  %v6052_v2 = vpop.permute.xlu0 %2052 }
 0x224   : > { %9175 = vst [vmem:[#allocation265_spill] sm:$0xff] %v6050_v16  ;;  %9176 = vst [vmem:[#allocation266_spill] sm:$0xff] %v6052_v2  ;;  %v6071_v16 = vld [vmem:[%s4635_s23 + $0x38] sm:$0xff] }
 0x225   : > { %1027 = vrot.lane.b32.xlu1 %v9177_v22, %s4577_s7  ;;  %950 = vrot.lane.b32.xlu0 %v9178_v57, %s4576_s6  ;;  %v1547_v48 = vsel %vm1539_vm5, %v6071_v16, %v9183_v32  ;;  %v9187_v32 = vld [vmem:[#allocation105_spill] sm:$0xff] }
 0x227   : > { %v6058_v35 = vpop.permute.xlu1 %990  ;;  %v6060_v58 = vpop.permute.xlu0 %988 }
 0x228   : > { %9179 = vst [vmem:[#allocation82_spill] sm:$0xff] %v6058_v35  ;;  %9180 = vst [vmem:[#allocation39_spill] sm:$0xff] %v6060_v58  ;;  %v9184_v35 = vld [vmem:[#allocation104_spill] sm:$0xff] }
 0x229   : > { %1172 = vrot.lane.b32.xlu1 %v4702_v21, %s4579_s9  ;;  %1170 = vrot.lane.b32.xlu0 %v4664_v9, %s4579_s9  ;;  %v1572_v58 = vsel %vm1564_vm6, %v1547_v48, %v9184_v35  ;;  %v9185_v21 = vld [vmem:[#allocation75_spill] sm:$0xff]  ;;  %v9186_v9 = vld [vmem:[#allocation60_spill] sm:$0xff] }
 0x22b   : > { %v6066_v15 = vpop.permute.xlu1 %1965  ;;  %v6068_v2 = vpop.permute.xlu0 %1963 }
 0x22c   : > { %9181 = vst [vmem:[#allocation267_spill] sm:$0xff] %v6066_v15  ;;  %9182 = vst [vmem:[#allocation268_spill] sm:$0xff] %v6068_v2  ;;  %v1546_v2 = vsel %vm1539_vm5, %v4531_v41, %v9186_v9  ;;  %v6086_v15 = vsel %vm8861_vm7, %v1572_v58, %v5397_v10  ;;  %v6107_v58 = vld [vmem:[%s4635_s23 + $0x40] sm:$0xff] }
 0x22d   : > { %1025 = vrot.lane.b32.xlu1 %v9185_v21, %s4577_s7  ;;  %1393 = vrot.lane.b32.xlu0 %v9165_v53, %s4582_s12  ;;  %v1571_v48 = vsel %vm1564_vm6, %v1546_v2, %v9187_v32  ;;  %v2188_v35 = vsel %vm8866_vm8, %v6086_v15, %v5727_v3 }
 0x22e   : > { %v6099_v53 = vsel %vm8861_vm7, %v1571_v48, %v5399_v8  ;;  %v2212_v3 = vsel %vm1639_vm9, %v2188_v35, %v5600_v20 }
 0x22f   : > { %v6093_v23 = vpop.permute.xlu1 %2090  ;;  %v6095_v37 = vpop.permute.xlu0 %2088  ;;  %v2187_v10 = vsel %vm8866_vm8, %v6099_v53, %v5711_v40  ;;  %v2236_v40 = vsel %vm1664_vm10, %v2212_v3, %v5699_v54 }
 0x230   : > { %9188 = vst [vmem:[#allocation59_spill] sm:$0xff] %v6093_v23  ;;  %9189 = vst [vmem:[#allocation104_spill] sm:$0xff] %v6095_v37  ;;  %v2211_v9 = vsel %vm1639_vm9, %v2187_v10, %v5602_v29  ;;  %v2260_v35 = vsel %vm8865_vm11, %v2236_v40, %v5736_v1  ;;  %v2500_v40 = vld [vmem:[%s8628_s1] sm:$0xff]  ;;  %v9256_v37 = vld [vmem:[#allocation44_spill] sm:$0xff] }
 0x231   : > { %1245 = vrot.lane.b32.xlu1 %v9169_v34, %s4580_s10  ;;  %1101 = vrot.lane.b32.xlu0 %v6107_v58, %s4578_s8  ;;  %v2235_v34 = vsel %vm1664_vm10, %v2211_v9, %v5701_v55  ;;  %v6134_v10 = vsel %vm8863_vm12, %v2260_v35, %v5758_v60  ;;  %v9257_v23 = vld [vmem:[#allocation26_spill] sm:$0xff]  ;;  %v9312_v60 = vld [vmem:[#allocation167_spill] sm:$0xff] }
 0x232   : > { %v8820_v35 = vrot.slane %v6134_v10, 1 }
 0x233   : > { %v6113_v2 = vpop.permute.xlu1 %2058  ;;  %v6115_v8 = vpop.permute.xlu0 %2056 }
 0x234   : > { %9190 = vst [vmem:[#allocation75_spill] sm:$0xff] %v6113_v2  ;;  %9191 = vst [vmem:[#allocation60_spill] sm:$0xff] %v6115_v8 }
 0x235   : > { %1467 = vrot.lane.b32.xlu1 %v4531_v41, %s4583_s13  ;;  %1247 = vrot.lane.b32.xlu0 %v9162_v38, %s4580_s10  ;;  %v2259_v38 = vsel %vm8865_vm11, %v2235_v34, %v5725_v50 }
 0x236   : > { %v2283_v41 = vsel %vm8863_vm12, %v2259_v38, %v5744_v42 }
 0x237   : > { %v6126_v32 = vpop.permute.xlu1 %2111  ;;  %v6128_v48 = vpop.permute.xlu0 %2109  ;;  %v2331_v34 = vrot.slane %v2283_v41, 1  ;;  %v9198_v41 = vld [vmem:[#allocation20_spill] sm:$0xff] }
 0x238   : > { %9192 = vst [vmem:[#allocation105_spill] sm:$0xff] %v6126_v32  ;;  %9193 = vst [vmem:[#allocation269_spill] sm:$0xff] %v6128_v48  ;;  %v9255_v48 = vld [vmem:[#allocation114_spill] sm:$0xff] }
 0x239   : > { %1176 = vrot.lane.b32.xlu1 %v4720_v26, %s4579_s9  ;;  %1099 = vrot.lane.b32.xlu0 %v6071_v16, %s4578_s8  ;;  %v2501_v26 = vld [vmem:[%s8628_s1 + $0x8] sm:$0xff] }
 0x23a   : > { %v4436_v8 = vpack.c.bf16 %v2501_v26, %v2500_v40  ;;  %v2503_v40 = vld [vmem:[%s8628_s1 + $0x18] sm:$0xff] }
 0x23b   : > { %v6144_v3 = vpop.permute.xlu1 %1927  ;;  %v6146_v9 = vpop.permute.xlu0 %1925 }
 0x23c   : > { %9194 = vst [vmem:[#allocation270_spill] sm:$0xff] %v6144_v3  ;;  %9195 = vst [vmem:[#allocation271_spill] sm:$0xff] %v6146_v9  ;;  %4437 = vmatprep.subr.bf16.mxu0 %v4436_v8  ;;  %v2502_v3 = vld [vmem:[%s8628_s1 + $0x10] sm:$0xff] }
 0x23d   : > { %1322 = vrot.lane.b32.xlu1 %v9172_v56, %s4581_s11  ;;  %1320 = vrot.lane.b32.xlu0 %v9178_v57, %s4581_s11  ;;  %v2333_v56 = vsel %vm8854_vm0, %v2331_v34, %v8820_v35  ;;  %v4440_v57 = vpack.c.bf16 %v2503_v40, %v2502_v3  ;;  %v2505_v3 = vld [vmem:[%s8628_s1 + $0x28] sm:$0xff]  ;;  %v9207_v35 = vld [vmem:[#allocation64_spill] sm:$0xff] }
 0x23e   : > { %4439 = vmatpush3.bf16.msra.mxu0 %v4436_v8 }
 0x23f   : > { %v6159_v38 = vpop.permute.xlu1 %2094  ;;  %v6161_v9 = vpop.permute.xlu0 %2092  ;;  %4441 = vmatprep.subr.bf16.mxu0 %v4440_v57 }
 0x240   : > { %9196 = vst [vmem:[#allocation272_spill] sm:$0xff] %v6159_v38  ;;  %9197 = vst [vmem:[#allocation273_spill] sm:$0xff] %v6161_v9  ;;  %v2504_v9 = vld [vmem:[%s8628_s1 + $0x20] sm:$0xff] }
 0x241   : > { %879 = vrot.lane.b32.xlu1 %v9198_v41, %s4575_s30  ;;  %2367 = vrot.lane.b32.xlu0 %v2333_v56, %s4584_s25  ;;  %v4444_v34 = vpack.c.bf16 %v2505_v3, %v2504_v9  ;;  %v2507_v9 = vld [vmem:[%s8628_s1 + $0x38] sm:$0xff] }
 0x242   : > { %4443 = vmatpush3.bf16.msra.mxu0 %v4440_v57  ;;  %v2506_v57 = vld [vmem:[%s8628_s1 + $0x30] sm:$0xff] }
 0x243   : > { %v6175_v8 = vpop.permute.xlu1 %2132  ;;  %v6177_v26 = vpop.permute.xlu0 %2130  ;;  %4445 = vmatprep.subr.bf16.mxu0 %v4444_v34  ;;  %v4448_v3 = vpack.c.bf16 %v2507_v9, %v2506_v57  ;;  %v2509_v57 = vld [vmem:[%s8628_s1 + $0x48] sm:$0xff] }
 0x244   : > { %9199 = vst [vmem:[#allocation20_spill] sm:$0xff] %v6175_v8  ;;  %9200 = vst [vmem:[#allocation274_spill] sm:$0xff] %v6177_v26  ;;  %v9254_v26 = vld [vmem:[#allocation113_spill] sm:$0xff] }
 0x245   : > { %1251 = vrot.lane.b32.xlu1 %v4893_v43, %s4580_s10  ;;  %1174 = vrot.lane.b32.xlu0 %v4687_v17, %s4579_s9 }
 0x246   : > { %4447 = vmatpush3.bf16.msra.mxu0 %v4444_v34  ;;  %v2508_v34 = vld [vmem:[%s8628_s1 + $0x40] sm:$0xff] }
 0x247   : > { %v6189_v40 = vpop.permute.xlu1 %1948  ;;  %v6191_v56 = vpop.permute.xlu0 %1946  ;;  %4449 = vmatprep.subr.bf16.mxu0 %v4448_v3  ;;  %v4452_v9 = vpack.c.bf16 %v2509_v57, %v2508_v34  ;;  %v2510_v34 = vld [vmem:[%s8628_s1 + $0x50] sm:$0xff]  ;;  %v2511_v57 = vld [vmem:[%s8628_s1 + $0x58] sm:$0xff] }
 0x248   : > { %9201 = vst [vmem:[#allocation275_spill] sm:$0xff] %v6189_v40  ;;  %9202 = vst [vmem:[#allocation276_spill] sm:$0xff] %v6191_v56  ;;  %v1548_v56 = vsel %vm1539_vm5, %v6107_v58, %v9207_v35  ;;  %v9210_v35 = vld [vmem:[#allocation63_spill] sm:$0xff] }
 0x249   : > { %1397 = vrot.lane.b32.xlu1 %v9177_v22, %s4582_s12  ;;  %1395 = vrot.lane.b32.xlu0 %v9185_v21, %s4582_s12  ;;  %v9205_v22 = vld [vmem:[#allocation86_spill] sm:$0xff]  ;;  %v9206_v21 = vld [vmem:[#allocation41_spill] sm:$0xff] }
 0x24a   : > { %4451 = vmatpush3.bf16.msra.mxu0 %v4448_v3  ;;  %v1573_v3 = vsel %vm1564_vm6, %v1548_v56, %v5299_v11  ;;  %v4456_v56 = vpack.c.bf16 %v2511_v57, %v2510_v34 }
 0x24b   : > { %v6203_v17 = vpop.permute.xlu1 %2115  ;;  %v6205_v43 = vpop.permute.xlu0 %2113  ;;  %4453 = vmatprep.subr.bf16.mxu0 %v4452_v9  ;;  %v6240_v11 = vsel %vm8861_vm7, %v1573_v3, %v5407_v6 }
 0x24c   : > { %9203 = vst [vmem:[#allocation277_spill] sm:$0xff] %v6203_v17  ;;  %9204 = vst [vmem:[#allocation278_spill] sm:$0xff] %v6205_v43  ;;  %v6233_v17 = vld [vmem:[%s4635_s23 + $0x48] sm:$0xff] }
 0x24d   : > { %1031 = vrot.lane.b32.xlu1 %v9205_v22, %s4577_s7  ;;  %954 = vrot.lane.b32.xlu0 %v9206_v21, %s4576_s6  ;;  %v1549_v38 = vsel %vm1539_vm5, %v6233_v17, %v9210_v35  ;;  %9211 = vst [vmem:[#allocation64_spill] sm:$0xff] %v6240_v11 }
 0x24e   : > { %4455 = vmatpush3.bf16.msra.mxu0 %v4452_v9  ;;  %v9212_v9 = vld [vmem:[#allocation108_spill] sm:$0xff] }
 0x24f   : > { %v6222_v40 = vpop.permute.xlu1 %2153  ;;  %v6224_v43 = vpop.permute.xlu0 %2151  ;;  %v1574_v2 = vsel %vm1564_vm6, %v1549_v38, %v9212_v9  ;;  %4457 = vmatprep.subr.bf16.mxu0 %v4456_v56  ;;  %v9218_v9 = vld [vmem:[#allocation79_spill] sm:$0xff] }
 0x250   : > { %9208 = vst [vmem:[#allocation86_spill] sm:$0xff] %v6222_v40  ;;  %9209 = vst [vmem:[#allocation41_spill] sm:$0xff] %v6224_v43  ;;  %v2189_v43 = vsel %vm8866_vm8, %v6240_v11, %v5734_v47  ;;  %v6253_v35 = vsel %vm8861_vm7, %v1574_v2, %v5405_v7  ;;  %v2512_v7 = vld [vmem:[%s8628_s1 + $0x60] sm:$0xf] }
 0x251   : > { %1326 = vrot.lane.b32.xlu1 %v5030_v63, %s4581_s11  ;;  %1249 = vrot.lane.b32.xlu0 %v9198_v41, %s4580_s10  ;;  %9213 = vst [vmem:[#allocation63_spill] sm:$0xff] %v6253_v35  ;;  %v2190_v6 = vsel %vm8866_vm8, %v6253_v35, %v5746_v30  ;;  %v2213_v63 = vsel %vm1639_vm9, %v2189_v43, %v5612_v13  ;;  %v9309_v13 = vld [vmem:[#allocation128_spill] sm:$0xff] }
 0x252   : > { %4459 = vmatpush3.bf16.msra.mxu0 %v4456_v56  ;;  %v2214_v30 = vsel %vm1639_vm9, %v2190_v6, %v5610_v39  ;;  %v2237_v2 = vsel %vm1664_vm10, %v2213_v63, %v5713_v24  ;;  %v4535_v56 = vld [vmem:[%s4635_s23 + $0x50] sm:$0xff] }
 0x253   : > { %v6258_v38 = vpop.permute.xlu1 %1969  ;;  %v6260_v3 = vpop.permute.xlu0 %1967  ;;  %4407 = vmatprep.subr.msk.mxu0 %vm8839_vm3, %v2512_v7  ;;  %v2238_v47 = vsel %vm1664_vm10, %v2214_v30, %v5756_v51  ;;  %v2261_v43 = vsel %vm8865_vm11, %v2237_v2, %v5786_v45  ;;  %v9307_v45 = vld [vmem:[#allocation97_spill] sm:$0xff] }
 0x254   : > { %9214 = vst [vmem:[#allocation108_spill] sm:$0xff] %v6258_v38  ;;  %9215 = vst [vmem:[#allocation279_spill] sm:$0xff] %v6260_v3  ;;  %v2285_v57 = vsel %vm8863_vm12, %v2261_v43, %v5808_v62  ;;  %v9223_v43 = vrot.slane %v6134_v10, 1 }
 0x255   : > { %1471 = vrot.lane.b32.xlu1 %v6107_v58, %s4583_s13  ;;  %1469 = vrot.lane.b32.xlu0 %v6071_v16, %s4583_s13  ;;  %v2262_v16 = vsel %vm8865_vm11, %v2238_v47, %v5784_v52  ;;  %v2334_v30 = vrot.slane %v2285_v57, 1 }
 0x256   : > { %4408 = vmatpush3.msk.msra.mxu0 %vm8839_vm3, %v2512_v7  ;;  %v6289_v34 = vsel %vm8863_vm12, %v2262_v16, %v5806_v44  ;;  %vm1889_vm3 = vcmask 490496  }
 0x257   : > { %v6278_v41 = vpop.permute.xlu1 %2136  ;;  %v6280_v58 = vpop.permute.xlu0 %2134  ;;  %v2335_v7 = vrot.slane %v6289_v34, 1 }
 0x258   : > { %9216 = vst [vmem:[#allocation280_spill] sm:$0xff] %v6278_v41  ;;  %9217 = vst [vmem:[#allocation281_spill] sm:$0xff] %v6280_v58  ;;  %v9247_v58 = vld [vmem:[#allocation23_spill] sm:$0xff] }
 0x259   : > { %1105 = vrot.lane.b32.xlu1 %v4535_v56, %s4578_s8  ;;  %1029 = vrot.lane.b32.xlu0 %v9218_v9, %s4577_s7  ;;  %v2336_v16 = vsel %vm8854_vm0, %v2334_v30, %v2335_v7  ;;  %v6328_v30 = vld [vmem:[%s4635_s23 + $0x58] sm:$0xff] }
 0x25b   : > { %v6297_v6 = vpop.permute.xlu1 %2062  ;;  %v6299_v63 = vpop.permute.xlu0 %2060 }
 0x25c   : > { %9219 = vst [vmem:[#allocation79_spill] sm:$0xff] %v6297_v6  ;;  %9220 = vst [vmem:[#allocation282_spill] sm:$0xff] %v6299_v63  ;;  %v9231_v6 = vld [vmem:[#allocation111_spill] sm:$0xff] }
 0x25d   : > { %1401 = vrot.lane.b32.xlu1 %v9205_v22, %s4582_s12  ;;  %1324 = vrot.lane.b32.xlu0 %v9206_v21, %s4581_s11  ;;  %v9226_v22 = vld [vmem:[#allocation83_spill] sm:$0xff] }
 0x25f   : > { %v6306_v47 = vpop.permute.xlu1 %2157  ;;  %v6308_v2 = vpop.permute.xlu0 %2155 }
 0x260   : > { %9221 = vst [vmem:[#allocation283_spill] sm:$0xff] %v6306_v47  ;;  %9222 = vst [vmem:[#allocation284_spill] sm:$0xff] %v6308_v2 }
 0x261   : > { %2371 = vrot.lane.b32.xlu1 %v2336_v16, %s4584_s25  ;;  %2369 = vrot.lane.b32.xlu0 %v9223_v43, %s4584_s25  ;;  %v9229_v16 = vld [vmem:[#allocation67_spill] sm:$0xff]  ;;  %v9230_v43 = vld [vmem:[#allocation68_spill] sm:$0xff] }
 0x262   : > { %v1551_v10 = vsel %vm1539_vm5, %v6328_v30, %v9229_v16 }
 0x263   : > { %v6315_v34 = vpop.permute.xlu1 %2098  ;;  %v6317_v57 = vpop.permute.xlu0 %2096 }
 0x264   : > { %9224 = vst [vmem:[#allocation285_spill] sm:$0xff] %v6315_v34  ;;  %9225 = vst [vmem:[#allocation286_spill] sm:$0xff] %v6317_v57  ;;  %v1550_v34 = vsel %vm1539_vm5, %v4535_v56, %v9230_v43  ;;  %v1576_v57 = vsel %vm1564_vm6, %v1551_v10, %v5313_v5  ;;  %v9239_v10 = vld [vmem:[#allocation215_spill] sm:$0xff] }
 0x265   : > { %1103 = vrot.lane.b32.xlu1 %v6233_v17, %s4578_s8  ;;  %1033 = vrot.lane.b32.xlu0 %v9226_v22, %s4577_s7  ;;  %v1575_v3 = vsel %vm1564_vm6, %v1550_v34, %v9231_v6 }
 0x266   : > { %v6349_v16 = vsel %vm8861_vm7, %v1575_v3, %v5415_v46 }
 0x267   : > { %v6323_v21 = vpop.permute.xlu1 %2119  ;;  %v6325_v63 = vpop.permute.xlu0 %2117  ;;  %9233 = vst [vmem:[#allocation68_spill] sm:$0xff] %v6349_v16  ;;  %v2191_v6 = vsel %vm8866_vm8, %v6349_v16, %v5770_v25  ;;  %v9277_v16 = vld [vmem:[#allocation190_spill] sm:$0xff] }
 0x268   : > { %9227 = vst [vmem:[#allocation83_spill] sm:$0xff] %v6323_v21  ;;  %9228 = vst [vmem:[#allocation287_spill] sm:$0xff] %v6325_v63  ;;  %v6345_v63 = vsel %vm8861_vm7, %v1576_v57, %v5413_v0  ;;  %v2215_v0 = vsel %vm1639_vm9, %v2191_v6, %v5621_v12  ;;  %v4537_v21 = vld [vmem:[%s4635_s23 + $0x60] sm:$0xff] }
 0x269   : > { %1399 = vrot.lane.b32.xlu1 %v9218_v9, %s4582_s12  ;;  %1180 = vrot.lane.b32.xlu0 %v4738_v31, %s4579_s9  ;;  %9232 = vst [vmem:[#allocation67_spill] sm:$0xff] %v6345_v63  ;;  %v2192_v5 = vsel %vm8866_vm8, %v6345_v63, %v5768_v4  ;;  %v9236_v31 = vld [vmem:[#allocation90_spill] sm:$0xff]  ;;  %v2239_v25 = vsel %vm1664_vm10, %v2215_v0, %v5798_v61  ;;  %v9253_v63 = vld [vmem:[#allocation71_spill] sm:$0xff] }
 0x26a   : > { %v2216_v46 = vsel %vm1639_vm9, %v2192_v5, %v5619_v14  ;;  %v2263_v43 = vsel %vm8865_vm11, %v2239_v25, %v9239_v10  ;;  %v9240_v5 = vld [vmem:[#allocation216_spill] sm:$0xff]  ;;  %v9242_v0 = vld [vmem:[#allocation2_spill] sm:$0xff]  ;;  %v6453_v14 = vld [vmem:[%s4635_s23 + $0x68] sm:$0xff]  ;;  %v1552_v40 = vsel %vm1539_vm5, %v4537_v21, %v9253_v63 }
 0x26b   : > { %v6357_v9 = vpop.permute.xlu1 %2140  ;;  %v6359_v34 = vpop.permute.xlu0 %2138  ;;  %v2240_v4 = vsel %vm1664_vm10, %v2216_v46, %v5796_v19  ;;  %v1577_v32 = vsel %vm1564_vm6, %v1552_v40, %v9255_v48  ;;  %v9262_v63 = vld [vmem:[#allocation219_spill] sm:$0xff]  ;;  %v9265_v40 = vld [vmem:[#allocation178_spill] sm:$0xff] }
 0x26c   : > { %9234 = vst [vmem:[#allocation111_spill] sm:$0xff] %v6357_v9  ;;  %9235 = vst [vmem:[#allocation288_spill] sm:$0xff] %v6359_v34  ;;  %v9241_v34 = vld [vmem:[#allocation217_spill] sm:$0xff] }
 0x26d   : > { %1035 = vrot.lane.b32.xlu1 %v9236_v31, %s4577_s7  ;;  %1475 = vrot.lane.b32.xlu0 %v4535_v56, %s4583_s13  ;;  %v2264_v56 = vsel %vm8865_vm11, %v2240_v4, %v5818_v28  ;;  %v2287_v46 = vsel %vm8863_vm12, %v2263_v43, %v9241_v34  ;;  %v9250_v28 = vld [vmem:[#allocation94_spill] sm:$0xff]  ;;  %v9258_v34 = vld [vmem:[#allocation131_spill] sm:$0xff] }
 0x26e   : > { %v6382_v6 = vsel %vm8863_vm12, %v2264_v56, %v9240_v5  ;;  %v2337_v25 = vrot.slane %v2287_v46, 1  ;;  %v9243_v56 = vld [vmem:[#allocation24_spill] sm:$0xff] }
 0x26f   : > { %v6372_v3 = vpop.permute.xlu1 %2161  ;;  %v6374_v57 = vpop.permute.xlu0 %2159  ;;  %v8821_v4 = vrot.slane %v6382_v6, 1 }
 0x270   : > { %9237 = vst [vmem:[#allocation90_spill] sm:$0xff] %v6372_v3  ;;  %9238 = vst [vmem:[#allocation289_spill] sm:$0xff] %v6374_v57 }
 0x271   : > { %1178 = vrot.lane.b32.xlu1 %v9242_v0, %s4579_s9  ;;  %1107 = vrot.lane.b32.xlu0 %v6328_v30, %s4578_s8  ;;  %v2339_v0 = vsel %vm8854_vm0, %v2337_v25, %v8821_v4  ;;  %v9246_v25 = vld [vmem:[#allocation45_spill] sm:$0xff] }
 0x273   : > { %v6390_v57 = vpop.permute.xlu1 %944  ;;  %v6392_v3 = vpop.permute.xlu0 %869 }
 0x275   : > { %1473 = vrot.lane.b32.xlu1 %v6233_v17, %s4583_s13  ;;  %1255 = vrot.lane.b32.xlu0 %v9243_v56, %s4580_s10  ;;  %v9244_v17 = vld [vmem:[#allocation22_spill] sm:$0xff]  ;;  %v9245_v56 = vld [vmem:[#allocation3_spill] sm:$0xff] }
 0x277   : > { %v6399_v43 = vpop.permute.xlu1 %871  ;;  %v6401_v9 = vpop.permute.xlu0 %1019 }
 0x279   : > { %1109 = vrot.lane.b32.xlu1 %v4537_v21, %s4578_s8  ;;  %2375 = vrot.lane.b32.xlu0 %v2339_v0, %s4584_s25 }
 0x27b   : > { %v6409_v46 = vpop.permute.xlu1 %1093  ;;  %v6411_v38 = vpop.permute.xlu0 %873 }
 0x27d   : > { %1253 = vrot.lane.b32.xlu1 %v9244_v17, %s4580_s10  ;;  %1182 = vrot.lane.b32.xlu0 %v9245_v56, %s4579_s9  ;;  %v9248_v17 = vld [vmem:[#allocation5_spill] sm:$0xff] }
 0x27f   : > { %v6417_v2 = vpop.permute.xlu1 %948  ;;  %v6419_v47 = vpop.permute.xlu0 %946 }
 0x281   : > { %2373 = vrot.lane.b32.xlu1 %v2335_v7, %s4584_s25  ;;  %1330 = vrot.lane.b32.xlu0 %v9246_v25, %s4581_s11  ;;  %v9249_v7 = vld [vmem:[#allocation43_spill] sm:$0xff] }
 0x283   : > { %v6424_v0 = vpop.permute.xlu1 %877  ;;  %v6426_v4 = vpop.permute.xlu0 %1168 }
 0x285   : > { %1257 = vrot.lane.b32.xlu1 %v9247_v58, %s4580_s10  ;;  %1184 = vrot.lane.b32.xlu0 %v9248_v17, %s4579_s9  ;;  %v9251_v58 = vld [vmem:[#allocation87_spill] sm:$0xff] }
 0x287   : > { %v6432_v56 = vpop.permute.xlu1 %1023  ;;  %v6434_v5 = vpop.permute.xlu0 %1021 }
 0x289   : > { %1405 = vrot.lane.b32.xlu1 %v9236_v31, %s4582_s12  ;;  %1328 = vrot.lane.b32.xlu0 %v9249_v7, %s4581_s11  ;;  %v9252_v31 = vld [vmem:[#allocation70_spill] sm:$0xff] }
 0x28a   : > { %v1553_v7 = vsel %vm1539_vm5, %v6453_v14, %v9252_v31  ;;  %v9260_v31 = vld [vmem:[#allocation132_spill] sm:$0xff] }
 0x28b   : > { %v6440_v25 = vpop.permute.xlu1 %875  ;;  %v6442_v41 = vpop.permute.xlu0 %1243  ;;  %v1578_v8 = vsel %vm1564_vm6, %v1553_v7, %v9254_v26  ;;  %v6474_v10 = vsel %vm8861_vm7, %v1577_v32, %v9260_v31  ;;  %v9263_v7 = vld [vmem:[#allocation220_spill] sm:$0xff]  ;;  %v9264_v32 = vld [vmem:[#allocation177_spill] sm:$0xff]  ;;  %v9266_v31 = vld [vmem:[#allocation222_spill] sm:$0xff] }
 0x28c   : > { %v6470_v44 = vsel %vm8861_vm7, %v1578_v8, %v9258_v34  ;;  %9261 = vst [vmem:[#allocation24_spill] sm:$0xff] %v6474_v10 }
 0x28d   : > { %1039 = vrot.lane.b32.xlu1 %v9250_v28, %s4577_s7  ;;  %1037 = vrot.lane.b32.xlu0 %v9251_v58, %s4577_s7  ;;  %9259 = vst [vmem:[#allocation2_spill] sm:$0xff] %v6470_v44  ;;  %v2194_v26 = vsel %vm8866_vm8, %v6470_v44, %v9262_v63  ;;  %v9267_v44 = vld [vmem:[#allocation223_spill] sm:$0xff] }
 0x28e   : > { %v2218_v8 = vsel %vm1639_vm9, %v2194_v26, %v9264_v32  ;;  %v4540_v32 = vld [vmem:[%s4635_s23] sm:$0xff] }
 0x28f   : > { %v6448_v17 = vpop.permute.xlu1 %1095  ;;  %v6450_v19 = vpop.permute.xlu0 %952  ;;  %v2242_v63 = vsel %vm1664_vm10, %v2218_v8, %v9266_v31  ;;  %v6512_v8 = vld [vmem:[%s4635_s23 + $0x70] sm:$0xff] }
 0x291   : > { %1332 = vrot.lane.b32.xlu1 %v9256_v37, %s4581_s11  ;;  %1259 = vrot.lane.b32.xlu0 %v9257_v23, %s4580_s10  ;;  %v2193_v37 = vsel %vm8866_vm8, %v6474_v10, %v9263_v7 }
 0x292   : > { %v2217_v34 = vsel %vm1639_vm9, %v2193_v37, %v9265_v40  ;;  %v9272_v40 = vld [vmem:[#allocation126_spill] sm:$0xff] }
 0x293   : > { %v6482_v48 = vpop.permute.xlu1 %1318  ;;  %v6484_v23 = vpop.permute.xlu0 %1097  ;;  %v2241_v7 = vsel %vm1664_vm10, %v2217_v34, %v9267_v44 }
 0x295   : > { %1479 = vrot.lane.b32.xlu1 %v4537_v21, %s4583_s13  ;;  %1403 = vrot.lane.b32.xlu0 %v9226_v22, %s4582_s12  ;;  %v9268_v21 = vld [vmem:[#allocation224_spill] sm:$0xff]  ;;  %v2265_v22 = vsel %vm8865_vm11, %v2241_v7, %v5859_v49 }
 0x296   : > { %v2266_v61 = vsel %vm8865_vm11, %v2242_v63, %v9268_v21  ;;  %v2289_v37 = vsel %vm8863_vm12, %v2265_v22, %v5872_v27  ;;  %v9269_v22 = vld [vmem:[#allocation49_spill] sm:$0xff] }
 0x297   : > { %v6497_v10 = vpop.permute.xlu1 %1027  ;;  %v6499_v52 = vpop.permute.xlu0 %950  ;;  %v6507_v26 = vsel %vm8863_vm12, %v2266_v61, %v5870_v36  ;;  %v2340_v61 = vrot.slane %v2289_v37, 1  ;;  %v9270_v37 = vld [vmem:[#allocation52_spill] sm:$0xff] }
 0x298   : > { %v8835_v7 = vrot.slane %v6507_v26, 1  ;;  %v1540_v27 = vsel %vm1539_vm5, %v4540_v32, %v9270_v37  ;;  %v9276_v32 = vld [vmem:[#allocation168_spill] sm:$0xff] }
 0x299   : > { %1113 = vrot.lane.b32.xlu1 %v6512_v8, %s4578_s8  ;;  %1111 = vrot.lane.b32.xlu0 %v6453_v14, %s4578_s8 }
 0x29a   : > { %v2342_v31 = vsel %vm8854_vm0, %v2340_v61, %v8835_v7  ;;  %v9273_v61 = vld [vmem:[#allocation4_spill] sm:$0xff] }
 0x29b   : > { %v6518_v34 = vpop.permute.xlu1 %1172  ;;  %v6520_v63 = vpop.permute.xlu0 %1170 }
 0x29d   : > { %1407 = vrot.lane.b32.xlu1 %v9251_v58, %s4582_s12  ;;  %1334 = vrot.lane.b32.xlu0 %v9269_v22, %s4581_s11  ;;  %v9271_v22 = vld [vmem:[#allocation93_spill] sm:$0xff] }
 0x29e   : > { %v1565_v44 = vsel %vm1564_vm6, %v1540_v27, %v9271_v22 }
 0x29f   : > { %v6527_v36 = vpop.permute.xlu1 %1025  ;;  %v1394_v21 = vpop.permute.xlu0 %1393  ;;  %v1590_v51 = vsel %vm8861_vm7, %v1565_v44, %v9272_v40  ;;  %v9278_v40 = vld [vmem:[#allocation7_spill] sm:$0xff] }
 0x2a1   : > { %2379 = vrot.lane.b32.xlu1 %v2342_v31, %s4584_s25  ;;  %1477 = vrot.lane.b32.xlu0 %v6328_v30, %s4583_s13  ;;  %v9274_v31 = vld [vmem:[#allocation98_spill] sm:$0xff]  ;;  %v9275_v30 = vld [vmem:[#allocation144_spill] sm:$0xff] }
 0x2a2   : > { %v1615_v7 = vsel %vm8866_vm8, %v1590_v51, %v9275_v30  ;;  %v6590_v30 = vld [vmem:[%s4635_s23 + $0x80] sm:$0xff] }
 0x2a3   : > { %v6538_v58 = vpop.permute.xlu1 %1245  ;;  %v6540_v49 = vpop.permute.xlu0 %1101  ;;  %v1640_v37 = vsel %vm1639_vm9, %v1615_v7, %v9276_v32 }
 0x2a4   : > { %v1665_v27 = vsel %vm1664_vm10, %v1640_v37, %v9277_v16 }
 0x2a5   : > { %1186 = vrot.lane.b32.xlu1 %v9273_v61, %s4579_s9  ;;  %1043 = vrot.lane.b32.xlu0 %v9274_v31, %s4577_s7  ;;  %v1690_v44 = vsel %vm8865_vm11, %v1665_v27, %v6392_v3  ;;  %v6601_v27 = vld [vmem:[%s4635_s23 + $0x78] sm:$0xff] }
 0x2a6   : > { %v1715_v22 = vsel %vm8863_vm12, %v1690_v44, %v6390_v57  ;;  %v9281_v44 = vld [vmem:[#allocation73_spill] sm:$0xff] }
 0x2a7   : > { %v1468_v12 = vpop.permute.xlu1 %1467  ;;  %v6554_v39 = vpop.permute.xlu0 %1247  ;;  %v1740_v16 = vsel %vm8853_vm13, %v1715_v22, %v6401_v9 }
 0x2a8   : > { %v1765_v3 = vsel %vm1764_vm14, %v1740_v16, %v6409_v46  ;;  %v9280_v46 = vld [vmem:[#allocation91_spill] sm:$0xff] }
 0x2a9   : > { %1409 = vrot.lane.b32.xlu1 %v9250_v28, %s4582_s12  ;;  %1188 = vrot.lane.b32.xlu0 %v9278_v40, %s4579_s9  ;;  %v9279_v28 = vrot.slane %v6382_v6, 1  ;;  %v1790_v57 = vsel %vm8840_vm15, %v1765_v3, %v6426_v4  ;;  %vm8841_vm15 = vcmask 523264   ;;  %v9282_v40 = vld [vmem:[#allocation74_spill] sm:$0xff]  ;;  %v9284_v3 = vld [vmem:[#allocation116_spill] sm:$0xff] }
 0x2aa   : > { %v1815_v6 = vsel %vm1814_vm1, %v1790_v57, %v6442_v41  ;;  %v1554_v22 = vsel %vm1539_vm5, %v6512_v8, %v9282_v40  ;;  %v9289_v40 = vld [vmem:[#allocation134_spill] sm:$0xff] }
 0x2ab   : > { %v6564_v51 = vpop.permute.xlu1 %1176  ;;  %v6566_v7 = vpop.permute.xlu0 %1099 }
 0x2ad   : > { %2377 = vrot.lane.b32.xlu1 %v9279_v28, %s4584_s25  ;;  %1481 = vrot.lane.b32.xlu0 %v6453_v14, %s4583_s13  ;;  %v1840_v14 = vsel %vm1839_vm2, %v1815_v6, %v6482_v48  ;;  %v1555_v48 = vsel %vm1539_vm5, %v6601_v27, %v9281_v44  ;;  %v9283_v28 = vld [vmem:[#allocation115_spill] sm:$0xff]  ;;  %v9285_v6 = vld [vmem:[#allocation28_spill] sm:$0xff] }
 0x2ae   : > { %v1865_v4 = vsel %vm1864_vm4, %v1840_v14, %v1394_v21  ;;  %v1580_v21 = vsel %vm1564_vm6, %v1555_v48, %v9283_v28  ;;  %v9286_v14 = vld [vmem:[#allocation25_spill] sm:$0xff]  ;;  %v9291_v48 = vld [vmem:[#allocation226_spill] sm:$0xff] }
 0x2af   : > { %v6581_v61 = vpop.permute.xlu1 %1322  ;;  %v6583_v9 = vpop.permute.xlu0 %1320  ;;  %v1890_v32 = vsel %vm1889_vm3, %v1865_v4, %v1468_v12  ;;  %v1579_v12 = vsel %vm1564_vm6, %v1554_v22, %v9284_v3  ;;  %v9287_v4 = vld [vmem:[#allocation133_spill] sm:$0xff] }
 0x2b0   : > { %v6620_v44 = vsel %vm8861_vm7, %v1580_v21, %v9287_v4  ;;  %v9292_v21 = vrot.slane %v6507_v26, 1 }
 0x2b1   : > { %1117 = vrot.lane.b32.xlu1 %v6590_v30, %s4578_s8  ;;  %1041 = vrot.lane.b32.xlu0 %v9280_v46, %s4577_s7  ;;  %9288 = vst [vmem:[#allocation22_spill] sm:$0xff] %v6620_v44 }
 0x2b3   : > { %v6598_v37 = vpop.permute.xlu1 %879  ;;  %v2368_v41 = vpop.permute.xlu0 %2367 }
 0x2b4   : > { %v2440_v16 = vsel %vm8841_vm15, %v1890_v32, %v2368_v41  ;;  %v6624_v32 = vsel %vm8861_vm7, %v1579_v12, %v9289_v40  ;;  %v2196_v41 = vsel %vm8866_vm8, %v6620_v44, %v5864_v59  ;;  %vm2538_vm15 = vcmask 818176   ;;  %v9293_v12 = vld [vmem:[#allocation179_spill] sm:$0xff] }
 0x2b5   : > { %v2488_v57 = vcombine.high %v2440_v16, %v2440_v16  ;;  %1263 = vrot.lane.b32.xlu1 %v9285_v6, %s4580_s10  ;;  %1261 = vrot.lane.b32.xlu0 %v9286_v14, %s4580_s10  ;;  %9290 = vst [vmem:[#allocation3_spill] sm:$0xff] %v6624_v32  ;;  %v2195_v22 = vsel %vm8866_vm8, %v6624_v32, %v9291_v48  ;;  %v9294_v14 = vld [vmem:[#allocation180_spill] sm:$0xff] }
 0x2b6   : > { %v2220_v59 = vsel %vm1639_vm9, %v2196_v41, %v9293_v12  ;;  %v2219_v4 = vsel %vm1639_vm9, %v2195_v22, %v9294_v14  ;;  %v9297_v41 = vld [vmem:[#allocation232_spill] sm:$0xff]  ;;  %v9298_v22 = vld [vmem:[#allocation235_spill] sm:$0xff] }
 0x2b7   : > { %v6632_v28 = vpop.permute.xlu1 %1251  ;;  %v6634_v3 = vpop.permute.xlu0 %1174  ;;  %v2520_v6 = vcombine.low %v2440_v16, %v2488_v57  ;;  %v2244_v40 = vsel %vm1664_vm10, %v2220_v59, %v5879_v33  ;;  %v9295_v16 = vld [vmem:[#allocation230_spill] sm:$0xff]  ;;  %v9299_v59 = vld [vmem:[#allocation236_spill] sm:$0xff] }
 0x2b8   : > { %v2243_v57 = vsel %vm1664_vm10, %v2219_v4, %v9295_v16  ;;  %v9300_v4 = vld [vmem:[#allocation9_spill] sm:$0xff]  ;;  %v9303_v16 = vld [vmem:[#allocation48_spill] sm:$0xff] }
 0x2b9   : > { %2381 = vrot.lane.b32.xlu1 %v9292_v21, %s4584_s25  ;;  %1483 = vrot.lane.b32.xlu0 %v6512_v8, %s4583_s13  ;;  %v9296_v21 = vld [vmem:[#allocation231_spill] sm:$0xff]  ;;  %v2267_v12 = vsel %vm8865_vm11, %v2243_v57, %v9297_v41  ;;  %v9301_v41 = vld [vmem:[#allocation53_spill] sm:$0xff]  ;;  %v4544_v32 = vld [vmem:[%s4635_s23 + $0x10] sm:$0xff] }
 0x2ba   : > { %4409 = vmatprep.mubr.msk.f32.mxu0 %vm2538_vm15, %v2520_v6  ;;  %v2268_v8 = vsel %vm8865_vm11, %v2244_v40, %v9296_v21  ;;  %v2291_v33 = vsel %vm8863_vm12, %v2267_v12, %v9299_v59  ;;  %v4543_v59 = vld [vmem:[%s4635_s23 + $0x8] sm:$0xff] }
 0x2bb   : > { %v6650_v48 = vpop.permute.xlu1 %1397  ;;  %v6652_v26 = vpop.permute.xlu0 %1395  ;;  %v6660_v6 = vsel %vm8863_vm12, %v2268_v8, %v9298_v22  ;;  %v2343_v21 = vrot.slane %v2291_v33, 1  ;;  %v9302_v8 = vld [vmem:[#allocation46_spill] sm:$0xff]  ;;  %v1541_v14 = vsel %vm1539_vm5, %v4543_v59, %v9303_v16  ;;  %v9304_v33 = vld [vmem:[#allocation55_spill] sm:$0xff] }
 0x2bc   : > { %v8849_v57 = vrot.slane %v6660_v6, 1  ;;  %v1542_v35 = vsel %vm1539_vm5, %v4544_v32, %v9304_v33  ;;  %v9310_v32 = vld [vmem:[#allocation143_spill] sm:$0xff] }
 0x2bd   : > { %1192 = vrot.lane.b32.xlu1 %v9300_v4, %s4579_s9  ;;  %1115 = vrot.lane.b32.xlu0 %v6601_v27, %s4578_s8  ;;  %v1567_v24 = vsel %vm1564_vm6, %v1542_v35, %v9307_v45  ;;  %v9316_v35 = vld [vmem:[#allocation192_spill] sm:$0xff] }
 0x2be   : > { %v2345_v4 = vsel %vm8854_vm0, %v2343_v21, %v8849_v57  ;;  %v9308_v21 = vld [vmem:[#allocation125_spill] sm:$0xff]  ;;  %v1592_v16 = vsel %vm8861_vm7, %v1567_v24, %v9309_v13 }
 0x2bf   : > { %v6668_v44 = vpop.permute.xlu1 %1031  ;;  %v6670_v40 = vpop.permute.xlu0 %954  ;;  %v9315_v13 = vld [vmem:[#allocation189_spill] sm:$0xff] }
 0x2c1   : > { %1338 = vrot.lane.b32.xlu1 %v9301_v41, %s4581_s11  ;;  %1336 = vrot.lane.b32.xlu0 %v9302_v8, %s4581_s11  ;;  %v9305_v41 = vld [vmem:[#allocation6_spill] sm:$0xff]  ;;  %v9306_v8 = vld [vmem:[#allocation92_spill] sm:$0xff] }
 0x2c2   : > { %v1566_v62 = vsel %vm1564_vm6, %v1541_v14, %v9306_v8  ;;  %v9313_v8 = vld [vmem:[#allocation170_spill] sm:$0xff] }
 0x2c3   : > { %v6677_v12 = vpop.permute.xlu1 %1326  ;;  %v6679_v22 = vpop.permute.xlu0 %1249  ;;  %v1591_v57 = vsel %vm8861_vm7, %v1566_v62, %v9308_v21  ;;  %v9314_v62 = vld [vmem:[#allocation30_spill] sm:$0xff] }
 0x2c4   : > { %v1616_v33 = vsel %vm8866_vm8, %v1591_v57, %v9310_v32 }
 0x2c5   : > { %1190 = vrot.lane.b32.xlu1 %v9305_v41, %s4579_s9  ;;  %2383 = vrot.lane.b32.xlu0 %v2345_v4, %s4584_s25  ;;  %v9311_v41 = vld [vmem:[#allocation146_spill] sm:$0xff]  ;;  %v1641_v14 = vsel %vm1639_vm9, %v1616_v33, %v9312_v60 }
 0x2c6   : > { %v1617_v4 = vsel %vm8866_vm8, %v1592_v16, %v9311_v41  ;;  %v1666_v24 = vsel %vm1664_vm10, %v1641_v14, %v9315_v13  ;;  %v6742_v14 = vld [vmem:[%s4635_s23 + $0x88] sm:$0xff] }
 0x2c7   : > { %v1472_v59 = vpop.permute.xlu1 %1471  ;;  %v1470_v11 = vpop.permute.xlu0 %1469  ;;  %v1642_v45 = vsel %vm1639_vm9, %v1617_v4, %v9313_v8  ;;  %v1691_v21 = vsel %vm8865_vm11, %v1666_v24, %v6399_v43  ;;  %v9317_v43 = vld [vmem:[#allocation102_spill] sm:$0xff] }
 0x2c8   : > { %v1667_v57 = vsel %vm1664_vm10, %v1642_v45, %v9316_v35  ;;  %v1716_v33 = vsel %vm8863_vm12, %v1691_v21, %v6419_v47  ;;  %v9318_v47 = vld [vmem:[#allocation76_spill] sm:$0xff]  ;;  %v9323_v35 = vld [vmem:[#allocation118_spill] sm:$0xff] }
 0x2c9   : > { %1411 = vrot.lane.b32.xlu1 %v9280_v46, %s4582_s12  ;;  %1267 = vrot.lane.b32.xlu0 %v9314_v62, %s4580_s10  ;;  %v1692_v60 = vsel %vm8865_vm11, %v1667_v57, %v6411_v38  ;;  %v1741_v4 = vsel %vm8853_vm13, %v1716_v33, %v6434_v5  ;;  %v9322_v62 = vld [vmem:[#allocation117_spill] sm:$0xff]  ;;  %v9326_v33 = vld [vmem:[#allocation135_spill] sm:$0xff] }
 0x2ca   : > { %v1717_v46 = vsel %vm8863_vm12, %v1692_v60, %v6417_v2  ;;  %v1766_v38 = vsel %vm1764_vm14, %v1741_v4, %v6448_v17  ;;  %v9321_v17 = vld [vmem:[#allocation77_spill] sm:$0xff] }
 0x2cb   : > { %v6721_v16 = vpop.permute.xlu1 %1105  ;;  %v6723_v32 = vpop.permute.xlu0 %1029  ;;  %v1742_v41 = vsel %vm8853_vm13, %v1717_v46, %v6432_v56  ;;  %v1557_v56 = vsel %vm1539_vm5, %v6742_v14, %v9318_v47  ;;  %vm9319_vm13 = vcmask 359424   ;;  %v9324_v60 = vld [vmem:[#allocation57_spill] sm:$0xff]  ;;  %v9325_v46 = vld [vmem:[#allocation27_spill] sm:$0xff] }
 0x2cc   : > { %v1767_v2 = vsel %vm1764_vm14, %v1742_v41, %v6484_v23  ;;  %vm9320_vm0 = vmmov %vm9319_vm13  ;;  %v1556_v23 = vsel %vm1539_vm5, %v6590_v30, %v9321_v17  ;;  %v1582_v13 = vsel %vm1564_vm6, %v1557_v56, %v9322_v62  ;;  %v9329_v4 = vld [vmem:[#allocation233_spill] sm:$0xff] }
 0x2cd   : > { %1047 = vrot.lane.b32.xlu1 %v9317_v43, %s4577_s7  ;;  %1413 = vrot.lane.b32.xlu0 %v9274_v31, %s4582_s12  ;;  %v1792_v5 = vsel %vm9319_vm13, %v1767_v2, %v6518_v34  ;;  %v1791_v8 = vsel %vm9320_vm0, %v1766_v38, %v6520_v63  ;;  %v1581_v63 = vsel %vm1564_vm6, %v1556_v23, %v9323_v35  ;;  %v9330_v2 = vld [vmem:[#allocation234_spill] sm:$0xff]  ;;  %vm9331_vm0 = vcmask 523264   ;;  %v9333_v62 = vld [vmem:[#allocation181_spill] sm:$0xff] }
 0x2ce   : > { %v1816_v24 = vsel %vm1814_vm1, %v1791_v8, %v6538_v58  ;;  %v1817_v34 = vsel %vm1814_vm1, %v1792_v5, %v6554_v39  ;;  %v6776_v58 = vsel %vm8861_vm7, %v1582_v13, %v9326_v33  ;;  %v9327_v39 = vld [vmem:[#allocation136_spill] sm:$0xff]  ;;  %vm9332_vm13 = vmmov %vm9331_vm0  ;;  %v9336_v35 = vld [vmem:[#allocation238_spill] sm:$0xff] }
 0x2cf   : > { %v6751_v45 = vpop.permute.xlu1 %1401  ;;  %v6753_v31 = vpop.permute.xlu0 %1324  ;;  %v1842_v57 = vsel %vm1839_vm2, %v1817_v34, %v6581_v61  ;;  %v1841_v21 = vsel %vm1839_vm2, %v1816_v24, %v6583_v9  ;;  %v6780_v41 = vsel %vm8861_vm7, %v1581_v63, %v9327_v39  ;;  %v2198_v38 = vsel %vm8866_vm8, %v6776_v58, %v9329_v4  ;;  %v9335_v24 = vld [vmem:[#allocation237_spill] sm:$0xff]  ;;  %v9339_v39 = vld [vmem:[#allocation246_spill] sm:$0xff]  ;;  %v9340_v4 = vld [vmem:[#allocation95_spill] sm:$0xff] }
 0x2d0   : > { %9328 = vst [vmem:[#allocation45_spill] sm:$0xff] %v6780_v41  ;;  %v1867_v61 = vsel %vm1864_vm4, %v1842_v57, %v6650_v48  ;;  %v1866_v9 = vsel %vm1864_vm4, %v1841_v21, %v6652_v26  ;;  %v2197_v47 = vsel %vm8866_vm8, %v6780_v41, %v9330_v2  ;;  %v9337_v21 = vld [vmem:[#allocation241_spill] sm:$0xff]  ;;  %v9360_v41 = vld [vmem:[#allocation120_spill] sm:$0xff] }
 0x2d1   : > { %1342 = vrot.lane.b32.xlu1 %v9324_v60, %s4581_s11  ;;  %1265 = vrot.lane.b32.xlu0 %v9325_v46, %s4580_s10  ;;  %v1892_v56 = vsel %vm1889_vm3, %v1867_v61, %v1472_v59  ;;  %v1891_v5 = vsel %vm1889_vm3, %v1866_v9, %v1470_v11  ;;  %v2222_v59 = vsel %vm1639_vm9, %v2198_v38, %v9333_v62  ;;  %v9334_v11 = vld [vmem:[#allocation182_spill] sm:$0xff]  ;;  %v4546_v9 = vld [vmem:[%s4635_s23 + $0x90] sm:$0xff] }
 0x2d2   : > { %v2221_v13 = vsel %vm1639_vm9, %v2197_v47, %v9334_v11  ;;  %v2246_v34 = vsel %vm1664_vm10, %v2222_v59, %v9335_v24  ;;  %v9338_v60 = vld [vmem:[#allocation242_spill] sm:$0xff]  ;;  %v9407_v24 = vld [vmem:[#allocation147_spill] sm:$0xff] }
 0x2d3   : > { %v2372_v8 = vpop.permute.xlu1 %2371  ;;  %v2370_v17 = vpop.permute.xlu0 %2369  ;;  %v2245_v63 = vsel %vm1664_vm10, %v2221_v13, %v9336_v35  ;;  %v9356_v35 = vld [vmem:[#allocation81_spill] sm:$0xff] }
 0x2d4   : > { %v6795_v23 = vsel %vm9331_vm0, %v1892_v56, %v2372_v8  ;;  %v2441_v48 = vsel %vm9332_vm13, %v1891_v5, %v2370_v17  ;;  %v2269_v46 = vsel %vm8865_vm11, %v2245_v63, %v9338_v60  ;;  %v9341_v5 = vld [vmem:[#allocation50_spill] sm:$0xff]  ;;  %vm9344_vm0 = vcmask 1046528  }
 0x2d5   : > { %v2521_v26 = vcombine.low %v2441_v48, %v6795_v23  ;;  %1487 = vrot.lane.b32.xlu1 %v6590_v30, %s4583_s13  ;;  %1485 = vrot.lane.b32.xlu0 %v6601_v27, %s4583_s13  ;;  %v2270_v27 = vsel %vm8865_vm11, %v2246_v34, %v9337_v21  ;;  %v2293_v61 = vsel %vm8863_vm12, %v2269_v46, %v9339_v39  ;;  %v9342_v48 = vld [vmem:[#allocation56_spill] sm:$0xff]  ;;  %v9345_v34 = vld [vmem:[#allocation101_spill] sm:$0xff]  ;;  %v9351_v39 = vld [vmem:[#allocation194_spill] sm:$0xff]  ;;  %vm9359_vm13 = vcmask 293888  }
 0x2d6   : > { %v6822_v33 = vsel %vm8863_vm12, %v2270_v27, %v5936_v18  ;;  %v2346_v56 = vrot.slane %v2293_v61, 1  ;;  %v9347_v27 = vld [vmem:[#allocation130_spill] sm:$0xff]  ;;  %v9348_v61 = vld [vmem:[#allocation148_spill] sm:$0xff] }
 0x2d7   : > { %v6811_v57 = vpop.permute.xlu1 %1103  ;;  %4410 = vmatmul.mubr.msk.f32.vlgmr.msra.gmra.mrb[0].mxu0 %vm2538_vm15, %v2521_v26  ;;  %v6814_v30 = vpop.permute.xlu0 %1033  ;;  %v8855_v47 = vrot.slane %v6822_v33, 1  ;;  %v9343_v26 = vld [vmem:[#allocation260_spill] sm:$0xff]  ;;  %v9401_v18 = vld [vmem:[#allocation34_spill] sm:$0xff] }
 0x2d8   : > { %v1544_v59 = vsel %vm1539_vm5, %v9343_v26, %v9342_v48 }
 0x2d9   : > { %1121 = vrot.lane.b32.xlu1 %v4546_v9, %s4578_s8  ;;  %1045 = vrot.lane.b32.xlu0 %v9340_v4, %s4577_s7  ;;  %v2348_v13 = vsel %vm9344_vm0, %v2346_v56, %v8855_v47  ;;  %v1569_v63 = vsel %vm1564_vm6, %v1544_v59, %v9345_v34  ;;  %v9349_v56 = vld [vmem:[#allocation172_spill] sm:$0xff]  ;;  %v4547_v59 = vld [vmem:[%s4635_s23 + $0x18] sm:$0xff]  ;;  %v9350_v34 = vld [vmem:[#allocation47_spill] sm:$0xff]  ;;  %vm9368_vm0 = vcmask 359424  }
 0x2da   : > { %v1594_v46 = vsel %vm8861_vm7, %v1569_v63, %v9347_v27  ;;  %v9352_v63 = vld [vmem:[#allocation99_spill] sm:$0xff] }
 0x2db   : > { %v6830_v38 = vpop.permute.xlu1 %1399  ;;  %v6832_v2 = vpop.permute.xlu0 %1180 }
 0x2dd   : > { %1417 = vrot.lane.b32.xlu1 %v9317_v43, %s4582_s12  ;;  %1340 = vrot.lane.b32.xlu0 %v9341_v5, %s4581_s11  ;;  %v9346_v43 = vrot.slane %v6660_v6, 1  ;;  %v1619_v5 = vsel %vm8866_vm8, %v1594_v46, %v9348_v61  ;;  %v6877_v61 = vld [vmem:[%s4635_s23 + $0x98] sm:$0xff] }
 0x2de   : > { %v1644_v47 = vsel %vm1639_vm9, %v1619_v5, %v9349_v56  ;;  %v9354_v5 = vld [vmem:[#allocation80_spill] sm:$0xff] }
 0x2df   : > { %v6839_v8 = vpop.permute.xlu1 %1035  ;;  %v1476_v17 = vpop.permute.xlu0 %1475  ;;  %v1669_v6 = vsel %vm1664_vm10, %v1644_v47, %v9351_v39  ;;  %v1559_v56 = vsel %vm1539_vm5, %v6877_v61, %v9354_v5 }
 0x2e0   : > { %v1694_v46 = vsel %vm8865_vm11, %v1669_v6, %v6424_v0  ;;  %v9358_v6 = vld [vmem:[#allocation145_spill] sm:$0xff] }
 0x2e1   : > { %2387 = vrot.lane.b32.xlu1 %v2348_v13, %s4584_s25  ;;  %2385 = vrot.lane.b32.xlu0 %v9346_v43, %s4584_s25  ;;  %v1543_v13 = vsel %vm1539_vm5, %v4547_v59, %v9350_v34  ;;  %v9353_v43 = vld [vmem:[#allocation96_spill] sm:$0xff]  ;;  %v9355_v59 = vld [vmem:[#allocation127_spill] sm:$0xff]  ;;  %v1719_v47 = vsel %vm8863_vm12, %v1694_v46, %v6450_v19 }
 0x2e2   : > { %v1568_v27 = vsel %vm1564_vm6, %v1543_v13, %v9353_v43  ;;  %v1558_v13 = vsel %vm1539_vm5, %v4546_v9, %v9356_v35  ;;  %v9357_v43 = vld [vmem:[#allocation119_spill] sm:$0xff]  ;;  %v1744_v5 = vsel %vm9359_vm13, %v1719_v47, %v6497_v10  ;;  %v9365_v10 = vld [vmem:[#allocation138_spill] sm:$0xff] }
 0x2e3   : > { %v6857_v48 = vpop.permute.xlu1 %1178  ;;  %v6859_v26 = vpop.permute.xlu0 %1107  ;;  %v1593_v39 = vsel %vm8861_vm7, %v1568_v27, %v9355_v59  ;;  %v1584_v0 = vsel %vm1564_vm6, %v1559_v56, %v9357_v43  ;;  %v1583_v27 = vsel %vm1564_vm6, %v1558_v13, %v9360_v41  ;;  %v9361_v59 = vld [vmem:[#allocation169_spill] sm:$0xff]  ;;  %v1769_v46 = vsel %vm1764_vm14, %v1744_v5, %v6540_v49  ;;  %v9362_v35 = vld [vmem:[#allocation11_spill] sm:$0xff]  ;;  %v9370_v43 = vld [vmem:[#allocation240_spill] sm:$0xff] }
 0x2e4   : > { %v1618_v11 = vsel %vm8866_vm8, %v1593_v39, %v9358_v6  ;;  %v9363_v56 = vld [vmem:[#allocation137_spill] sm:$0xff]  ;;  %v6912_v47 = vsel %vm8861_vm7, %v1583_v27, %v9365_v10  ;;  %v9367_v41 = vld [vmem:[#allocation191_spill] sm:$0xff]  ;;  %v1794_v49 = vsel %vm9368_vm0, %v1769_v46, %v6564_v51  ;;  %v9373_v10 = vld [vmem:[#allocation184_spill] sm:$0xff] }
 0x2e5   : > { %1119 = vrot.lane.b32.xlu1 %v6742_v14, %s4578_s8  ;;  %1049 = vrot.lane.b32.xlu0 %v9352_v63, %s4577_s7  ;;  %v1643_v19 = vsel %vm1639_vm9, %v1618_v11, %v9361_v59  ;;  %v6908_v39 = vsel %vm8861_vm7, %v1584_v0, %v9363_v56  ;;  %9366 = vst [vmem:[#allocation5_spill] sm:$0xff] %v6912_v47  ;;  %v9369_v13 = vld [vmem:[#allocation239_spill] sm:$0xff] }
 0x2e6   : > { %9364 = vst [vmem:[#allocation23_spill] sm:$0xff] %v6908_v39  ;;  %v1668_v11 = vsel %vm1664_vm10, %v1643_v19, %v9367_v41  ;;  %v2199_v6 = vsel %vm8866_vm8, %v6912_v47, %v9370_v43  ;;  %v1819_v5 = vsel %vm1814_vm1, %v1794_v49, %v6632_v28  ;;  %v9372_v28 = vld [vmem:[#allocation183_spill] sm:$0xff] }
 0x2e7   : > { %v1474_v34 = vpop.permute.xlu1 %1473  ;;  %v6886_v60 = vpop.permute.xlu0 %1255  ;;  %v1693_v0 = vsel %vm8865_vm11, %v1668_v11, %v6440_v25  ;;  %v1844_v19 = vsel %vm1839_vm2, %v1819_v5, %v6677_v12  ;;  %v9371_v25 = vld [vmem:[#allocation106_spill] sm:$0xff]  ;;  %v9399_v47 = vld [vmem:[#allocation139_spill] sm:$0xff] }
 0x2e8   : > { %v1718_v51 = vsel %vm8863_vm12, %v1693_v0, %v6499_v52  ;;  %v2223_v52 = vsel %vm1639_vm9, %v2199_v6, %v9373_v10  ;;  %v9377_v6 = vld [vmem:[#allocation247_spill] sm:$0xff]  ;;  %v9378_v0 = vld [vmem:[#allocation248_spill] sm:$0xff]  ;;  %v9398_v10 = vld [vmem:[#allocation122_spill] sm:$0xff] }
 0x2e9   : > { %1415 = vrot.lane.b32.xlu1 %v9340_v4, %s4582_s12  ;;  %1196 = vrot.lane.b32.xlu0 %v9362_v35, %s4579_s9  ;;  %v2200_v4 = vsel %vm8866_vm8, %v6908_v39, %v9369_v13  ;;  %v1743_v46 = vsel %vm9359_vm13, %v1718_v51, %v6527_v36  ;;  %v1869_v35 = vsel %vm1864_vm4, %v1844_v19, %v6751_v45  ;;  %v9374_v36 = vld [vmem:[#allocation243_spill] sm:$0xff]  ;;  %v9375_v45 = vld [vmem:[#allocation244_spill] sm:$0xff]  ;;  %vm9376_vm13 = vcmask 523264   ;;  %v9379_v51 = vld [vmem:[#allocation249_spill] sm:$0xff] }
 0x2ea   : > { %v2224_v56 = vsel %vm1639_vm9, %v2200_v4, %v9372_v28  ;;  %v1768_v12 = vsel %vm1764_vm14, %v1743_v46, %v6566_v7  ;;  %v1894_v41 = vsel %vm1889_vm3, %v1869_v35, %v1476_v17  ;;  %v2247_v49 = vsel %vm1664_vm10, %v2223_v52, %v9375_v45  ;;  %v9381_v35 = vld [vmem:[#allocation8_spill] sm:$0xff]  ;;  %v9400_v39 = vld [vmem:[#allocation58_spill] sm:$0xff] }
 0x2eb   : > { %v6928_v27 = vpop.permute.xlu1 %1109  ;;  %v2376_v59 = vpop.permute.xlu0 %2375  ;;  %v2248_v11 = vsel %vm1664_vm10, %v2224_v56, %v9374_v36  ;;  %v2271_v17 = vsel %vm8865_vm11, %v2247_v49, %v9378_v0  ;;  %v2489_v52 = vcombine.high %v6795_v23, %v6795_v23  ;;  %v4551_v0 = vld [vmem:[%s4635_s23 + $0x28] sm:$0xff] }
 0x2ec   : > { %v2444_v13 = vsel %vm9376_vm13, %v1894_v41, %v2376_v59  ;;  %v2272_v7 = vsel %vm8865_vm11, %v2248_v11, %v9377_v6  ;;  %v9397_v36 = vld [vmem:[#allocation51_spill] sm:$0xff] }
 0x2ed   : > { %1051 = vrot.lane.b32.xlu1 %v9371_v25, %s4577_s7  ;;  %1491 = vrot.lane.b32.xlu0 %v4546_v9, %s4583_s13  ;;  %v1793_v9 = vsel %vm9368_vm0, %v1768_v12, %v6634_v3  ;;  %v6967_v19 = vsel %vm8863_vm12, %v2272_v7, %v9379_v51  ;;  %v9380_v3 = vld [vmem:[#allocation250_spill] sm:$0xff]  ;;  %vm9382_vm0 = vmmov %vm9376_vm13  ;;  %vm9384_vm13 = vcmask 1046528   ;;  %v1545_v45 = vsel %vm1539_vm5, %v4551_v0, %v9397_v36  ;;  %v9404_v36 = vld [vmem:[#allocation251_spill] sm:$0xff] }
 0x2ee   : > { %v1818_v5 = vsel %vm1814_vm1, %v1793_v9, %v6679_v22  ;;  %v2295_v59 = vsel %vm8863_vm12, %v2271_v17, %v9380_v3  ;;  %v2490_v22 = vcombine.high %v2444_v13, %v2444_v13  ;;  %v9396_v3 = vld [vmem:[#allocation121_spill] sm:$0xff] }
 0x2ef   : > { %v6955_v4 = vpop.permute.xlu1 %1253  ;;  %v6957_v43 = vpop.permute.xlu0 %1182  ;;  %v1843_v46 = vsel %vm1839_vm2, %v1818_v5, %v6753_v31  ;;  %v8857_v31 = vrot.slane %v6967_v19, 1  ;;  %v2349_v49 = vrot.slane %v2295_v59, 1  ;;  %v4549_v59 = vld [vmem:[%s4635_s23 + $0xa0] sm:$0xff]  ;;  %v9405_v0 = vld [vmem:[#allocation129_spill] sm:$0xff] }
 0x2f0   : > { %v1868_v56 = vsel %vm1864_vm4, %v1843_v46, %v6830_v38  ;;  %v9383_v38 = vld [vmem:[#allocation32_spill] sm:$0xff]  ;;  %v2523_v17 = vcombine.low %v2444_v13, %v2490_v22  ;;  %v9385_v46 = vld [vmem:[#allocation29_spill] sm:$0xff] }
 0x2f1   : > { %1194 = vrot.lane.b32.xlu1 %v9381_v35, %s4579_s9  ;;  %1123 = vrot.lane.b32.xlu0 %v6877_v61, %s4578_s8  ;;  %v1893_v12 = vsel %vm1889_vm3, %v1868_v56, %v1474_v34  ;;  %v2351_v5 = vsel %vm9384_vm13, %v2349_v49, %v8857_v31  ;;  %v9386_v35 = vld [vmem:[#allocation10_spill] sm:$0xff] }
 0x2f3   : > { %v2374_v41 = vpop.permute.xlu1 %2373  ;;  %v6982_v11 = vpop.permute.xlu0 %1330 }
 0x2f4   : > { %v2443_v9 = vsel %vm9382_vm0, %v1893_v12, %v2374_v41  ;;  %v9388_v12 = vld [vmem:[#allocation61_spill] sm:$0xff]  ;;  %vm9419_vm0 = vcmask 293888  }
 0x2f5   : > { %v2522_v7 = vcombine.low %v2489_v52, %v2443_v9  ;;  %1489 = vrot.lane.b32.xlu1 %v6742_v14, %s4583_s13  ;;  %1271 = vrot.lane.b32.xlu0 %v9383_v38, %s4580_s10  ;;  %v9387_v52 = vrot.slane %v6822_v33, 1  ;;  %v9389_v9 = vld [vmem:[#allocation31_spill] sm:$0xff]  ;;  %v9391_v33 = vld [vmem:[#allocation54_spill] sm:$0xff]  ;;  %vm9420_vm13 = vmmov %vm9419_vm0 }
 0x2f7   : > { %v6990_v23 = vpop.permute.xlu1 %1257  ;;  %4412 = vmatprep.mubr.msk.f32.mxu0 %vm2538_vm15, %v2522_v7  ;;  %v6993_v34 = vpop.permute.xlu0 %1184  ;;  %v9390_v7 = vld [vmem:[#allocation13_spill] sm:$0xff] }
 0x2f8   : > { %4413 = vmatmul.mubr.msk.f32.gmra.mrb[2].mxu0 %vm2538_vm15, %v2523_v17 }
 0x2f9   : > { %1125 = vrot.lane.b32.xlu1 %v4549_v59, %s4578_s8  ;;  %2391 = vrot.lane.b32.xlu0 %v2351_v5, %s4584_s25 }
 0x2fb   : > { %v7002_v14 = vpop.permute.xlu1 %1405  ;;  %v7004_v13 = vpop.permute.xlu0 %1328 }
 0x2fd   : > { %1269 = vrot.lane.b32.xlu1 %v9385_v46, %s4580_s10  ;;  %1198 = vrot.lane.b32.xlu0 %v9386_v35, %s4579_s9  ;;  %v9392_v35 = vld [vmem:[#allocation109_spill] sm:$0xff] }
 0x2ff   : > { %v7010_v56 = vpop.permute.xlu1 %1039  ;;  %v7012_v22 = vpop.permute.xlu0 %1037 }
 0x301   : > { %2389 = vrot.lane.b32.xlu1 %v9387_v52, %s4584_s25  ;;  %1346 = vrot.lane.b32.xlu0 %v9388_v12, %s4581_s11  ;;  %v9393_v52 = vld [vmem:[#allocation103_spill] sm:$0xff] }
 0x302   : > { %v7044_v12 = vld [vmem:[%s4635_s23 + $0xa8] sm:$0xff] }
 0x303   : > { %v7019_v41 = vpop.permute.xlu1 %1332  ;;  %v7021_v49 = vpop.permute.xlu0 %1259 }
 0x305   : > { %1273 = vrot.lane.b32.xlu1 %v9389_v9, %s4580_s10  ;;  %1200 = vrot.lane.b32.xlu0 %v9390_v7, %s4579_s9  ;;  %v9394_v9 = vld [vmem:[#allocation84_spill] sm:$0xff] }
 0x306   : > { %v1561_v7 = vsel %vm1539_vm5, %v7044_v12, %v9394_v9 }
 0x307   : > { %v7027_v38 = vpop.permute.xlu1 %1479  ;;  %v7029_v17 = vpop.permute.xlu0 %1403  ;;  %v1586_v6 = vsel %vm1564_vm6, %v1561_v7, %v9396_v3  ;;  %v9403_v7 = vld [vmem:[#allocation140_spill] sm:$0xff] }
 0x308   : > { %v7064_v9 = vsel %vm8861_vm7, %v1586_v6, %v9399_v47  ;;  %v9406_v6 = vld [vmem:[#allocation252_spill] sm:$0xff] }
 0x309   : > { %1421 = vrot.lane.b32.xlu1 %v9371_v25, %s4582_s12  ;;  %1344 = vrot.lane.b32.xlu0 %v9391_v33, %s4581_s11  ;;  %v9395_v33 = vld [vmem:[#allocation85_spill] sm:$0xff] }
 0x30a   : > { %v1560_v51 = vsel %vm1539_vm5, %v4549_v59, %v9395_v33  ;;  %v9402_v33 = vld [vmem:[#allocation100_spill] sm:$0xff] }
 0x30b   : > { %v7035_v5 = vpop.permute.xlu1 %1113  ;;  %v7037_v46 = vpop.permute.xlu0 %1111  ;;  %v1585_v28 = vsel %vm1564_vm6, %v1560_v51, %v9398_v10  ;;  %v1570_v3 = vsel %vm1564_vm6, %v1545_v45, %v9402_v33  ;;  %v2202_v10 = vsel %vm8866_vm8, %v7064_v9, %v9404_v36  ;;  %v9408_v33 = vld [vmem:[#allocation150_spill] sm:$0xff] }
 0x30c   : > { %v7074_v21 = vsel %vm8861_vm7, %v1585_v28, %v9403_v7  ;;  %v1595_v47 = vsel %vm8861_vm7, %v1570_v3, %v9405_v0  ;;  %v1621_v28 = vsel %vm8866_vm8, %v6099_v53, %v9408_v33  ;;  %v9409_v7 = vld [vmem:[#allocation171_spill] sm:$0xff]  ;;  %v9410_v3 = vld [vmem:[#allocation185_spill] sm:$0xff]  ;;  %vm9421_vm7 = vcmask 359424  }
 0x30d   : > { %1055 = vrot.lane.b32.xlu1 %v9392_v35, %s4577_s7  ;;  %1053 = vrot.lane.b32.xlu0 %v9393_v52, %s4577_s7  ;;  %v1620_v45 = vsel %vm8866_vm8, %v1595_v47, %v9407_v24  ;;  %v1646_v36 = vsel %vm1639_vm9, %v1621_v28, %v5602_v29  ;;  %v2226_v0 = vsel %vm1639_vm9, %v2202_v10, %v9410_v3  ;;  %v9412_v47 = vld [vmem:[#allocation186_spill] sm:$0xff]  ;;  %v9413_v33 = vld [vmem:[#allocation253_spill] sm:$0xff] }
 0x30e   : > { %v1645_v62 = vsel %vm1639_vm9, %v1620_v45, %v9409_v7  ;;  %v1671_v53 = vsel %vm1664_vm10, %v1646_v36, %v5701_v55  ;;  %v2250_v29 = vsel %vm1664_vm10, %v2226_v0, %v9413_v33  ;;  %v9416_v0 = vld [vmem:[#allocation256_spill] sm:$0xff] }
 0x30f   : > { %v7049_v25 = vpop.permute.xlu1 %1407  ;;  %v7051_v31 = vpop.permute.xlu0 %1334  ;;  %v1696_v10 = vsel %vm8865_vm11, %v1671_v53, %v5725_v50  ;;  %v9417_v50 = vld [vmem:[#allocation16_spill] sm:$0xff] }
 0x311   : > { %1348 = vrot.lane.b32.xlu1 %v9400_v39, %s4581_s11  ;;  %1275 = vrot.lane.b32.xlu0 %v9401_v18, %s4580_s10  ;;  %v2201_v39 = vsel %vm8866_vm8, %v7074_v21, %v9406_v6  ;;  %v9411_v6 = vld [vmem:[#allocation193_spill] sm:$0xff] }
 0x312   : > { %v1670_v24 = vsel %vm1664_vm10, %v1645_v62, %v9411_v6  ;;  %v2225_v45 = vsel %vm1639_vm9, %v2201_v39, %v9412_v47  ;;  %v1721_v39 = vsel %vm8863_vm12, %v1696_v10, %v5744_v42  ;;  %v7135_v42 = vld [vmem:[%s4635_s23 + $0xb0] sm:$0xff] }
 0x313   : > { %v2380_v51 = vpop.permute.xlu1 %2379  ;;  %v1478_v18 = vpop.permute.xlu0 %1477  ;;  %v1695_v62 = vsel %vm8865_vm11, %v1670_v24, %v6598_v37  ;;  %v1746_v24 = vsel %vm9419_vm0, %v1721_v39, %v6668_v44  ;;  %vm9422_vm0 = vmmov %vm9421_vm7 }
 0x315   : > { %1495 = vrot.lane.b32.xlu1 %v4549_v59, %s4583_s13  ;;  %1419 = vrot.lane.b32.xlu0 %v9352_v63, %s4582_s12  ;;  %v9414_v59 = vld [vmem:[#allocation254_spill] sm:$0xff]  ;;  %v9415_v63 = vld [vmem:[#allocation255_spill] sm:$0xff] }
 0x316   : > { %v2249_v28 = vsel %vm1664_vm10, %v2225_v45, %v9414_v59  ;;  %v2274_v7 = vsel %vm8865_vm11, %v2250_v29, %v9415_v63  ;;  %v1720_v45 = vsel %vm8863_vm12, %v1695_v62, %v6670_v40  ;;  %v9418_v29 = vld [vmem:[#allocation259_spill] sm:$0xff]  ;;  %v1771_v40 = vsel %vm1764_vm14, %v1746_v24, %v6721_v16 }
 0x317   : > { %v7114_v55 = vpop.permute.xlu1 %1186  ;;  %v7116_v36 = vpop.permute.xlu0 %1043  ;;  %v2273_v6 = vsel %vm8865_vm11, %v2249_v28, %v9416_v0  ;;  %v7124_v53 = vsel %vm8863_vm12, %v2274_v7, %v9417_v50  ;;  %v1745_v63 = vsel %vm9420_vm13, %v1720_v45, %v6723_v32  ;;  %v1796_v44 = vsel %vm9421_vm7, %v1771_v40, %v6832_v2 }
 0x318   : > { %v2297_v37 = vsel %vm8863_vm12, %v2273_v6, %v9418_v29  ;;  %v1770_v10 = vsel %vm1764_vm14, %v1745_v63, %v6811_v57  ;;  %v2353_v62 = vrot.slane %v7124_v53, 1  ;;  %v1821_v6 = vsel %vm1814_vm1, %v1796_v44, %v6886_v60  ;;  %v9428_v44 = vld [vmem:[#allocation201_spill] sm:$0xff]  ;;  %v9460_v53 = vld [vmem:[#allocation18_spill] sm:$0xff] }
 0x319   : > { %1129 = vrot.lane.b32.xlu1 %v7135_v42, %s4578_s8  ;;  %1127 = vrot.lane.b32.xlu0 %v7044_v12, %s4578_s8  ;;  %v1795_v32 = vsel %vm9422_vm0, %v1770_v10, %v6857_v48  ;;  %v2352_v39 = vrot.slane %v2297_v37, 1  ;;  %v1846_v57 = vsel %vm1839_vm2, %v1821_v6, %v6982_v11  ;;  %v9423_v48 = vld [vmem:[#allocation65_spill] sm:$0xff]  ;;  %vm9425_vm7 = vcmask 523264  }
 0x31a   : > { %v1820_v16 = vsel %vm1814_vm1, %v1795_v32, %v6955_v4  ;;  %v1871_v63 = vsel %vm1864_vm4, %v1846_v57, %v7002_v14  ;;  %vm9426_vm13 = vmmov %vm9425_vm7  ;;  %vm9427_vm0 = vcmask 1046528  }
 0x31b   : > { %v7149_v28 = vpop.permute.xlu1 %1409  ;;  %v7151_v7 = vpop.permute.xlu0 %1188  ;;  %v1845_v2 = vsel %vm1839_vm2, %v1820_v16, %v7004_v13  ;;  %v1896_v4 = vsel %vm1889_vm3, %v1871_v63, %v7027_v38  ;;  %v9424_v13 = vld [vmem:[#allocation149_spill] sm:$0xff]  ;;  %v2354_v14 = vsel %vm9427_vm0, %v2352_v39, %v2353_v62  ;;  %vm9436_vm0 = vcmask 523264  }
 0x31c   : > { %v1870_v60 = vsel %vm1864_vm4, %v1845_v2, %v7029_v17  ;;  %v2446_v24 = vsel %vm9425_vm7, %v1896_v4, %v2380_v51  ;;  %vm9429_vm7 = vcmask 293888   ;;  %v9433_v2 = vld [vmem:[#allocation15_spill] sm:$0xff]  ;;  %v9434_v4 = vld [vmem:[#allocation152_spill] sm:$0xff] }
 0x31d   : > { %1423 = vrot.lane.b32.xlu1 %v9393_v52, %s4582_s12  ;;  %1350 = vrot.lane.b32.xlu0 %v9423_v48, %s4581_s11  ;;  %v1895_v11 = vsel %vm1889_vm3, %v1870_v60, %v1478_v18  ;;  %v1622_v52 = vsel %vm8866_vm8, %v6086_v15, %v9424_v13 }
 0x31e   : > { %v1647_v17 = vsel %vm1639_vm9, %v1622_v52, %v5600_v20  ;;  %v9438_v52 = vrot.slane %v6967_v19, 1 }
 0x31f   : > { %v2378_v45 = vpop.permute.xlu1 %2377  ;;  %v1482_v37 = vpop.permute.xlu0 %1481  ;;  %v1672_v15 = vsel %vm1664_vm10, %v1647_v17, %v5699_v54  ;;  %v9431_v54 = vld [vmem:[#allocation112_spill] sm:$0xff] }
 0x320   : > { %v2445_v40 = vsel %vm9426_vm13, %v1895_v11, %v2378_v45  ;;  %v1697_v51 = vsel %vm8865_vm11, %v1672_v15, %v5736_v1  ;;  %vm9432_vm13 = vcmask 359424   ;;  %v9437_v45 = vld [vmem:[#allocation174_spill] sm:$0xff] }
 0x321   : > { %v2524_v38 = vcombine.low %v2445_v40, %v2446_v24  ;;  %2395 = vrot.lane.b32.xlu1 %v2354_v14, %s4584_s25  ;;  %1493 = vrot.lane.b32.xlu0 %v6877_v61, %s4583_s13  ;;  %v1722_v20 = vsel %vm8863_vm12, %v1697_v51, %v9428_v44  ;;  %v9430_v61 = vld [vmem:[#allocation12_spill] sm:$0xff]  ;;  %v7247_v51 = vld [vmem:[%s4635_s23 + $0xc0] sm:$0xff] }
 0x322   : > { %v1747_v32 = vsel %vm9429_vm7, %v1722_v20, %v6814_v30 }
 0x323   : > { %v7190_v18 = vpop.permute.xlu1 %1117  ;;  %4415 = vmatprep.mubr.msk.f32.mxu0 %vm2538_vm15, %v2524_v38  ;;  %v7193_v10 = vpop.permute.xlu0 %1041  ;;  %v1772_v1 = vsel %vm1764_vm14, %v1747_v32, %v6859_v26  ;;  %v9441_v38 = vld [vmem:[#allocation212_spill] sm:$0xff] }
 0x324   : > { %v1797_v39 = vsel %vm9432_vm13, %v1772_v1, %v6957_v43  ;;  %v2491_v43 = vcombine.high %v2446_v24, %v2446_v24  ;;  %v9440_v24 = vld [vmem:[#allocation206_spill] sm:$0xff]  ;;  %v7262_v1 = vld [vmem:[%s4635_s23 + $0xb8] sm:$0xff] }
 0x325   : > { %1202 = vrot.lane.b32.xlu1 %v9430_v61, %s4579_s9  ;;  %1059 = vrot.lane.b32.xlu0 %v9431_v54, %s4577_s7  ;;  %v1822_v57 = vsel %vm1814_vm1, %v1797_v39, %v6990_v23  ;;  %v9435_v23 = vld [vmem:[#allocation64_spill] sm:$0xff] }
 0x326   : > { %v1847_v30 = vsel %vm1839_vm2, %v1822_v57, %v7019_v41  ;;  %v1623_v11 = vsel %vm8866_vm8, %v9435_v23, %v9434_v4  ;;  %v9444_v57 = vld [vmem:[#allocation89_spill] sm:$0xff] }
 0x327   : > { %v7207_v6 = vpop.permute.xlu1 %1263  ;;  %v7209_v16 = vpop.permute.xlu0 %1261  ;;  %v1872_v26 = vsel %vm1864_vm4, %v1847_v30, %v7049_v25  ;;  %v9439_v25 = vld [vmem:[#allocation196_spill] sm:$0xff]  ;;  %v1562_v30 = vsel %vm1539_vm5, %v7135_v42, %v9444_v57  ;;  %v9448_v4 = vld [vmem:[#allocation33_spill] sm:$0xff] }
 0x328   : > { %v1897_v48 = vsel %vm1889_vm3, %v1872_v26, %v1482_v37  ;;  %v9446_v26 = vld [vmem:[#allocation124_spill] sm:$0xff]  ;;  %v9449_v23 = vld [vmem:[#allocation141_spill] sm:$0xff] }
 0x329   : > { %1425 = vrot.lane.b32.xlu1 %v9392_v35, %s4582_s12  ;;  %1204 = vrot.lane.b32.xlu0 %v9433_v2, %s4579_s9  ;;  %v1648_v35 = vsel %vm1639_vm9, %v1623_v11, %v9437_v45  ;;  %v9445_v2 = vld [vmem:[#allocation123_spill] sm:$0xff] }
 0x32a   : > { %v1673_v37 = vsel %vm1664_vm10, %v1648_v35, %v9439_v25  ;;  %v9453_v35 = vld [vmem:[#allocation38_spill] sm:$0xff] }
 0x32b   : > { %v2382_v63 = vpop.permute.xlu1 %2381  ;;  %v1484_v60 = vpop.permute.xlu0 %1483  ;;  %v1698_v40 = vsel %vm8865_vm11, %v1673_v37, %v9440_v24 }
 0x32c   : > { %v2447_v41 = vsel %vm9436_vm0, %v1897_v48, %v2382_v63  ;;  %v1723_v19 = vsel %vm8863_vm12, %v1698_v40, %v9441_v38  ;;  %v9447_v63 = vld [vmem:[#allocation36_spill] sm:$0xff]  ;;  %vm9450_vm0 = vcmask 97280  }
 0x32d   : > { %v2525_v13 = vcombine.low %v2491_v43, %v2447_v41  ;;  %2393 = vrot.lane.b32.xlu1 %v9438_v52, %s4584_s25  ;;  %1497 = vrot.lane.b32.xlu0 %v7044_v12, %s4583_s13  ;;  %v1748_v15 = vsel %vm9429_vm7, %v1723_v19, %v6839_v8  ;;  %v9442_v12 = vld [vmem:[#allocation107_spill] sm:$0xff]  ;;  %v9443_v8 = vld [vmem:[#allocation88_spill] sm:$0xff]  ;;  %v1587_v43 = vsel %vm1564_vm6, %v1562_v30, %v9446_v26  ;;  %vm9452_vm7 = vmmov %vm9450_vm0 }
 0x32e   : > { %v1773_v44 = vsel %vm1764_vm14, %v1748_v15, %v6928_v27  ;;  %v1563_v39 = vsel %vm1539_vm5, %v7262_v1, %v9443_v8  ;;  %v9457_v15 = vld [vmem:[#allocation188_spill] sm:$0xff]  ;;  %v9459_v8 = vld [vmem:[#allocation37_spill] sm:$0xff] }
 0x32f   : > { %v7237_v14 = vpop.permute.xlu1 %1192  ;;  %4416 = vmatmul.mubr.msk.f32.gmra.mrb[4].mxu0 %vm2538_vm15, %v2525_v13  ;;  %v7240_v17 = vpop.permute.xlu0 %1115  ;;  %v1798_v20 = vsel %vm9432_vm13, %v1773_v44, %v6993_v34  ;;  %v1588_v34 = vsel %vm1564_vm6, %v1563_v39, %v9445_v2  ;;  %v9454_v13 = vld [vmem:[#allocation17_spill] sm:$0xff]  ;;  %vm9455_vm13 = vcmask 523264  }
 0x330   : > { %v1823_v27 = vsel %vm1814_vm1, %v1798_v20, %v7021_v49  ;;  %v7284_v11 = vsel %vm9450_vm0, %v1588_v34, %v9449_v23  ;;  %v9451_v49 = vld [vmem:[#allocation142_spill] sm:$0xff]  ;;  %vm9467_vm0 = vcmask 1046528  }
 0x331   : > { %1133 = vrot.lane.b32.xlu1 %v7247_v51, %s4578_s8  ;;  %1057 = vrot.lane.b32.xlu0 %v9442_v12, %s4577_s7  ;;  %v1848_v48 = vsel %vm1839_vm2, %v1823_v27, %v7051_v31  ;;  %v7288_v41 = vsel %vm9452_vm7, %v1587_v43, %v9451_v49  ;;  %v2204_v31 = vsel %vm8866_vm8, %v7284_v11, %v9453_v35  ;;  %v9462_v34 = vld [vmem:[#allocation82_spill] sm:$0xff]  ;;  %v9463_v43 = vld [vmem:[#allocation39_spill] sm:$0xff]  ;;  %v9465_v35 = vld [vmem:[#allocation69_spill] sm:$0xff]  ;;  %vm9478_vm7 = vcmask 1043456  }
 0x332   : > { %v1873_v45 = vsel %vm1864_vm4, %v1848_v48, %v7149_v28  ;;  %v2203_v52 = vsel %vm8866_vm8, %v7288_v41, %v9454_v13  ;;  %v9456_v28 = vld [vmem:[#allocation187_spill] sm:$0xff] }
 0x333   : > { %v7257_v32 = vpop.permute.xlu1 %1338  ;;  %v7259_v61 = vpop.permute.xlu0 %1336  ;;  %v1898_v25 = vsel %vm1889_vm3, %v1873_v45, %v1484_v60  ;;  %v2228_v19 = vsel %vm1639_vm9, %v2204_v31, %v9456_v28  ;;  %v2227_v44 = vsel %vm1639_vm9, %v2203_v52, %v9457_v15  ;;  %v9458_v60 = vld [vmem:[#allocation40_spill] sm:$0xff]  ;;  %v9466_v31 = vld [vmem:[#allocation62_spill] sm:$0xff] }
 0x334   : > { %v2252_v20 = vsel %vm1664_vm10, %v2228_v19, %v9458_v60  ;;  %v2251_v39 = vsel %vm1664_vm10, %v2227_v44, %v9459_v8  ;;  %v9533_v60 = vld [vmem:[#allocation75_spill] sm:$0xff] }
 0x335   : > { %1279 = vrot.lane.b32.xlu1 %v9447_v63, %s4580_s10  ;;  %1277 = vrot.lane.b32.xlu0 %v9448_v4, %s4580_s10  ;;  %v9464_v63 = vld [vmem:[#allocation197_spill] sm:$0xff] }
 0x337   : > { %v7299_v37 = vpop.permute.xlu1 %1190  ;;  %v2384_v24 = vpop.permute.xlu0 %2383 }
 0x338   : > { %v2448_v40 = vsel %vm9455_vm13, %v1898_v25, %v2384_v24  ;;  %v9468_v24 = vld [vmem:[#allocation14_spill] sm:$0xff]  ;;  %vm9483_vm13 = vcmask 293888  }
 0x339   : > { %v2492_v38 = vcombine.high %v2448_v40, %v2448_v40  ;;  %2397 = vrot.lane.b32.xlu1 %v2353_v62, %s4584_s25  ;;  %1499 = vrot.lane.b32.xlu0 %v7135_v42, %s4583_s13  ;;  %v2276_v62 = vsel %vm8865_vm11, %v2252_v20, %v9460_v53  ;;  %v9461_v42 = vld [vmem:[#allocation263_spill] sm:$0xff] }
 0x33a   : > { %v2275_v2 = vsel %vm8865_vm11, %v2251_v39, %v9461_v42  ;;  %v7323_v26 = vsel %vm8863_vm12, %v2276_v62, %v9462_v34  ;;  %v9469_v39 = vld [vmem:[#allocation151_spill] sm:$0xff] }
 0x33b   : > { %v2526_v57 = vcombine.low %v2448_v40, %v2492_v38  ;;  %v1412_v30 = vpop.permute.xlu1 %1411  ;;  %v7315_v27 = vpop.permute.xlu0 %1267  ;;  %v2299_v48 = vsel %vm8863_vm12, %v2275_v2, %v9463_v43  ;;  %v8862_v49 = vrot.slane %v7323_v26, 1  ;;  %v1016_v40 = vrot.slane %v7247_v51, 4  ;;  %v7351_v38 = vld [vmem:[%s4635_s23 + $0xc8] sm:$0xff]  ;;  %v9471_v2 = vld [vmem:[#allocation154_spill] sm:$0xff] }
 0x33c   : > { %v2355_v45 = vrot.slane %v2299_v48, 1  ;;  %v7354_v19 = vrot.slane %v7351_v38, 4  ;;  %v9472_v48 = vld [vmem:[#allocation68_spill] sm:$0xff] }
 0x33d   : > { %1208 = vrot.lane.b32.xlu1 %v9464_v63, %s4579_s9  ;;  %1131 = vrot.lane.b32.xlu0 %v7262_v1, %s4578_s8  ;;  %v1625_v63 = vsel %vm8866_vm8, %v9472_v48, %v9471_v2  ;;  %v9479_v48 = vld [vmem:[#allocation205_spill] sm:$0xff] }
 0x33e   : > { %4418 = vmatprep.mubr.msk.f32.mxu0 %vm2538_vm15, %v2526_v57  ;;  %v2357_v25 = vsel %vm9467_vm0, %v2355_v45, %v8862_v49  ;;  %v9470_v57 = vld [vmem:[#allocation63_spill] sm:$0xff]  ;;  %v9473_v45 = vld [vmem:[#allocation173_spill] sm:$0xff]  ;;  %v9476_v49 = vld [vmem:[#allocation200_spill] sm:$0xff]  ;;  %v1018_v2 = vsel %vm9478_vm7, %v1016_v40, %v7354_v19  ;;  %vm9485_vm7 = vcmask 359424  }
 0x33f   : > { %v7332_v4 = vpop.permute.xlu1 %1047  ;;  %v1414_v23 = vpop.permute.xlu0 %1413  ;;  %v1624_v62 = vsel %vm8866_vm8, %v9470_v57, %v9469_v39  ;;  %v9477_v39 = vld [vmem:[#allocation209_spill] sm:$0xff]  ;;  %vm9484_vm0 = vmmov %vm9483_vm13 }
 0x341   : > { %1354 = vrot.lane.b32.xlu1 %v9465_v35, %s4581_s11  ;;  %1352 = vrot.lane.b32.xlu0 %v9466_v31, %s4581_s11  ;;  %v1649_v35 = vsel %vm1639_vm9, %v1624_v62, %v9473_v45  ;;  %v9474_v31 = vld [vmem:[#allocation176_spill] sm:$0xff]  ;;  %v9480_v45 = vld [vmem:[#allocation215_spill] sm:$0xff] }
 0x342   : > { %v1674_v34 = vsel %vm1664_vm10, %v1649_v35, %v9476_v49  ;;  %v9482_v49 = vld [vmem:[#allocation217_spill] sm:$0xff] }
 0x343   : > { %v7339_v13 = vpop.permute.xlu1 %1342  ;;  %v7341_v52 = vpop.permute.xlu0 %1265  ;;  %v1699_v62 = vsel %vm8865_vm11, %v1674_v34, %v9479_v48 }
 0x345   : > { %1206 = vrot.lane.b32.xlu1 %v9468_v24, %s4579_s9  ;;  %2399 = vrot.lane.b32.xlu0 %v2357_v25, %s4584_s25  ;;  %v1650_v25 = vsel %vm1639_vm9, %v1625_v63, %v9474_v31  ;;  %v9475_v24 = vld [vmem:[#allocation199_spill] sm:$0xff] }
 0x346   : > { %v1675_v57 = vsel %vm1664_vm10, %v1650_v25, %v9477_v39 }
 0x347   : > { %v1488_v44 = vpop.permute.xlu1 %1487  ;;  %v1486_v20 = vpop.permute.xlu0 %1485  ;;  %v1700_v63 = vsel %vm8865_vm11, %v1675_v57, %v9480_v45 }
 0x348   : > { %v1725_v35 = vsel %vm8863_vm12, %v1700_v63, %v9482_v49  ;;  %v9492_v49 = vld [vmem:[#allocation261_spill] sm:$0xff] }
 0x349   : > { %1427 = vrot.lane.b32.xlu1 %v9442_v12, %s4582_s12  ;;  %1283 = vrot.lane.b32.xlu0 %v9475_v24, %s4580_s10  ;;  %v9481_v24 = vld [vmem:[#allocation211_spill] sm:$0xff]  ;;  %v1750_v25 = vsel %vm9483_vm13, %v1725_v35, %v7010_v56 }
 0x34a   : > { %v1724_v53 = vsel %vm8863_vm12, %v1699_v62, %v9481_v24  ;;  %v1775_v34 = vsel %vm1764_vm14, %v1750_v25, %v7035_v5  ;;  %vm9486_vm12 = vmmov %vm9485_vm7  ;;  %v9489_v62 = vld [vmem:[#allocation257_spill] sm:$0xff]  ;;  %v9491_v24 = vld [vmem:[#allocation19_spill] sm:$0xff] }
 0x34b   : > { %v7380_v31 = vpop.permute.xlu1 %1121  ;;  %v7382_v12 = vpop.permute.xlu0 %1045  ;;  %v1749_v40 = vsel %vm9484_vm0, %v1724_v53, %v7012_v22  ;;  %v1800_v56 = vsel %vm9486_vm12, %v1775_v34, %v7151_v7  ;;  %v9488_v7 = vld [vmem:[#allocation35_spill] sm:$0xff]  ;;  %v2170_v45 = vsel %vm1539_vm5, %v7351_v38, %v9489_v62  ;;  %vm9494_vm12 = vcmask 97280  }
 0x34c   : > { %v1774_v39 = vsel %vm1764_vm14, %v1749_v40, %v7037_v46  ;;  %v1825_v53 = vsel %vm1814_vm1, %v1800_v56, %v7207_v6  ;;  %v9490_v6 = vld [vmem:[#allocation258_spill] sm:$0xff]  ;;  %vm9496_vm13 = vmmov %vm9494_vm12  ;;  %vm9497_vm0 = vcmask 523264  }
 0x34d   : > { %1063 = vrot.lane.b32.xlu1 %v1018_v2, %s4577_s7  ;;  %1429 = vrot.lane.b32.xlu0 %v9431_v54, %s4582_s12  ;;  %v1799_v57 = vsel %vm9485_vm7, %v1774_v39, %v7114_v55  ;;  %v1850_v5 = vsel %vm1839_vm2, %v1825_v53, %v7257_v32  ;;  %v9487_v55 = vld [vmem:[#allocation207_spill] sm:$0xff]  ;;  %v9495_v53 = vld [vmem:[#allocation72_spill] sm:$0xff]  ;;  %vm9498_vm7 = vmmov %vm9497_vm0 }
 0x34e   : > { %v1824_v54 = vsel %vm1814_vm1, %v1799_v57, %v7209_v16  ;;  %v2169_v16 = vsel %vm1539_vm5, %v7247_v51, %v9490_v6  ;;  %v1875_v32 = vsel %vm1864_vm4, %v1850_v5, %v1414_v23  ;;  %v9493_v57 = vld [vmem:[#allocation78_spill] sm:$0xff]  ;;  %v9499_v5 = vld [vmem:[#allocation265_spill] sm:$0xff] }
 0x34f   : > { %v7403_v48 = vpop.permute.xlu1 %1417  ;;  %v7405_v22 = vpop.permute.xlu0 %1340  ;;  %v1849_v46 = vsel %vm1839_vm2, %v1824_v54, %v7259_v61  ;;  %v2176_v61 = vsel %vm1564_vm6, %v2170_v45, %v9491_v24  ;;  %v2175_v35 = vsel %vm1564_vm6, %v2169_v16, %v9492_v49  ;;  %v1900_v25 = vsel %vm1889_vm3, %v1875_v32, %v1488_v44  ;;  %v9502_v45 = vld [vmem:[#allocation104_spill] sm:$0xff]  ;;  %v9503_v16 = vld [vmem:[#allocation105_spill] sm:$0xff] }
 0x350   : > { %v1874_v63 = vsel %vm1864_vm4, %v1849_v46, %v1412_v30  ;;  %v2182_v56 = vsel %vm9494_vm12, %v2176_v61, %v9493_v57  ;;  %v2181_v30 = vsel %vm9496_vm13, %v2175_v35, %v9495_v53  ;;  %v9504_v32 = vld [vmem:[#allocation269_spill] sm:$0xff]  ;;  %v9505_v49 = vld [vmem:[#allocation20_spill] sm:$0xff]  ;;  %v9506_v35 = vld [vmem:[#allocation274_spill] sm:$0xff]  ;;  %vm9508_vm12 = vcmask 261120  }
 0x351   : > { %1358 = vrot.lane.b32.xlu1 %v9487_v55, %s4581_s11  ;;  %1281 = vrot.lane.b32.xlu0 %v9488_v7, %s4580_s10  ;;  %v1899_v40 = vsel %vm1889_vm3, %v1874_v63, %v1486_v20  ;;  %v2206_v46 = vsel %vm8866_vm8, %v2182_v56, %v9499_v5  ;;  %v9500_v55 = vld [vmem:[#allocation266_spill] sm:$0xff]  ;;  %v9501_v7 = vld [vmem:[#allocation59_spill] sm:$0xff]  ;;  %vm9510_vm13 = vmmov %vm9508_vm12 }
 0x352   : > { %v2205_v44 = vsel %vm8866_vm8, %v2181_v30, %v9500_v55  ;;  %v2230_v62 = vsel %vm1639_vm9, %v2206_v46, %v9501_v7  ;;  %v7474_v56 = vld [vmem:[%s4635_s23 + $0xd0] sm:$0xff]  ;;  %v9511_v53 = vld [vmem:[#allocation110_spill] sm:$0xff] }
 0x353   : > { %v2388_v34 = vpop.permute.xlu1 %2387  ;;  %v2386_v39 = vpop.permute.xlu0 %2385  ;;  %v2229_v6 = vsel %vm1639_vm9, %v2205_v44, %v9502_v45  ;;  %v2254_v63 = vsel %vm1664_vm10, %v2230_v62, %v9503_v16  ;;  %v9512_v55 = vld [vmem:[#allocation66_spill] sm:$0xff]  ;;  %v9514_v62 = vrot.slane %v7323_v26, 1  ;;  %v9515_v45 = vld [vmem:[#allocation156_spill] sm:$0xff] }
 0x354   : > { %v7438_v23 = vsel %vm9497_vm0, %v1900_v25, %v2388_v34  ;;  %v2449_v54 = vsel %vm9498_vm7, %v1899_v40, %v2386_v39  ;;  %v2253_v24 = vsel %vm1664_vm10, %v2229_v6, %v9504_v32  ;;  %v9507_v40 = vld [vmem:[#allocation86_spill] sm:$0xff]  ;;  %v9509_v39 = vld [vmem:[#allocation41_spill] sm:$0xff]  ;;  %vm9513_vm0 = vcmask 1046528   ;;  %v9516_v6 = vld [vmem:[#allocation24_spill] sm:$0xff] }
 0x355   : > { %v2527_v20 = vcombine.low %v2449_v54, %v7438_v23  ;;  %1503 = vrot.lane.b32.xlu1 %v7247_v51, %s4583_s13  ;;  %1501 = vrot.lane.b32.xlu0 %v7262_v1, %s4583_s13  ;;  %v2278_v1 = vsel %vm8865_vm11, %v2254_v63, %v9505_v49  ;;  %v2277_v25 = vsel %vm8865_vm11, %v2253_v24, %v9506_v35  ;;  %v9517_v32 = vld [vmem:[#allocation178_spill] sm:$0xff]  ;;  %v9518_v49 = vld [vmem:[#allocation223_spill] sm:$0xff]  ;;  %v7509_v35 = vld [vmem:[%s4635_s23 + $0xd8] sm:$0xff] }
 0x356   : > { %v7469_v34 = vsel %vm9508_vm12, %v2278_v1, %v9507_v40  ;;  %v2301_v57 = vsel %vm9510_vm13, %v2277_v25, %v9509_v39  ;;  %v9519_v25 = vld [vmem:[#allocation21_spill] sm:$0xff]  ;;  %vm9526_vm7 = vmmov %vm9508_vm12  ;;  %vm9529_vm12 = vcmask 97280  }
 0x357   : > { %v7458_v61 = vpop.permute.xlu1 %1119  ;;  %4419 = vmatmul.mubr.msk.f32.gmra.mrb[6].mxu0 %vm2538_vm15, %v2527_v20  ;;  %v7461_v51 = vpop.permute.xlu0 %1049  ;;  %v8864_v5 = vrot.slane %v7469_v34, 1  ;;  %v2358_v46 = vrot.slane %v2301_v57, 1  ;;  %v2172_v26 = vsel %vm1539_vm5, %v7509_v35, %v9519_v25  ;;  %v9520_v40 = vld [vmem:[#allocation225_spill] sm:$0xff]  ;;  %v9521_v57 = vld [vmem:[#allocation262_spill] sm:$0xff]  ;;  %v9528_v25 = vld [vmem:[#allocation267_spill] sm:$0xff] }
 0x358   : > { %vm9532_vm13 = vmmov %vm9529_vm12 }
 0x359   : > { %1137 = vrot.lane.b32.xlu1 %v7474_v56, %s4578_s8  ;;  %1061 = vrot.lane.b32.xlu0 %v9511_v53, %s4577_s7  ;;  %v2360_v7 = vsel %vm9513_vm0, %v2358_v46, %v8864_v5  ;;  %v2171_v46 = vsel %vm1539_vm5, %v7474_v56, %v9521_v57  ;;  %v9530_v57 = vld [vmem:[#allocation175_spill] sm:$0xff]  ;;  %vm9534_vm0 = vcmask 293888  }
 0x35b   : > { %v7480_v30 = vpop.permute.xlu1 %1415  ;;  %v7482_v54 = vpop.permute.xlu0 %1196 }
 0x35d   : > { %1433 = vrot.lane.b32.xlu1 %v1018_v2, %s4582_s12  ;;  %1356 = vrot.lane.b32.xlu0 %v9512_v55, %s4581_s11  ;;  %v1627_v2 = vsel %vm8866_vm8, %v9516_v6, %v9515_v45  ;;  %v9522_v55 = vld [vmem:[#allocation42_spill] sm:$0xff]  ;;  %v9524_v45 = vld [vmem:[#allocation67_spill] sm:$0xff] }
 0x35e   : > { %v1652_v24 = vsel %vm1639_vm9, %v1627_v2, %v9517_v32  ;;  %v9525_v2 = vld [vmem:[#allocation228_spill] sm:$0xff] }
 0x35f   : > { %v7488_v44 = vpop.permute.xlu1 %1051  ;;  %v1492_v20 = vpop.permute.xlu0 %1491  ;;  %v1677_v1 = vsel %vm1664_vm10, %v1652_v24, %v9518_v49  ;;  %v9527_v24 = vld [vmem:[#allocation264_spill] sm:$0xff] }
 0x360   : > { %v1702_v39 = vsel %vm8865_vm11, %v1677_v1, %v9520_v40  ;;  %v2177_v49 = vsel %vm1564_vm6, %v2171_v46, %v9527_v24 }
 0x361   : > { %2403 = vrot.lane.b32.xlu1 %v2360_v7, %s4584_s25  ;;  %2401 = vrot.lane.b32.xlu0 %v9514_v62, %s4584_s25  ;;  %v2178_v7 = vsel %vm1564_vm6, %v2172_v26, %v9522_v55  ;;  %v9523_v62 = vld [vmem:[#allocation153_spill] sm:$0xff]  ;;  %v1727_v32 = vsel %vm9526_vm7, %v1702_v39, %v9525_v2  ;;  %v9531_v26 = vld [vmem:[#allocation268_spill] sm:$0xff]  ;;  %vm9541_vm7 = vcmask 359424  }
 0x362   : > { %v1626_v6 = vsel %vm8866_vm8, %v9524_v45, %v9523_v62  ;;  %v2184_v1 = vsel %vm9529_vm12, %v2178_v7, %v9528_v25  ;;  %v2183_v55 = vsel %vm9532_vm13, %v2177_v49, %v9531_v26  ;;  %v1752_v39 = vsel %vm9534_vm0, %v1727_v32, %v7116_v36  ;;  %v9535_v45 = vld [vmem:[#allocation60_spill] sm:$0xff]  ;;  %v9539_v25 = vld [vmem:[#allocation273_spill] sm:$0xff]  ;;  %v9542_v26 = vld [vmem:[#allocation214_spill] sm:$0xff] }
 0x363   : > { %v7500_v16 = vpop.permute.xlu1 %1194  ;;  %v7502_v63 = vpop.permute.xlu0 %1123  ;;  %v1651_v50 = vsel %vm1639_vm9, %v1626_v6, %v9530_v57  ;;  %v2208_v62 = vsel %vm8866_vm8, %v2184_v1, %v9533_v60  ;;  %v2207_v46 = vsel %vm8866_vm8, %v2183_v55, %v9535_v45  ;;  %v9536_v2 = vld [vmem:[#allocation272_spill] sm:$0xff]  ;;  %v1777_v24 = vsel %vm1764_vm14, %v1752_v39, %v7190_v18  ;;  %v9537_v6 = vld [vmem:[#allocation203_spill] sm:$0xff]  ;;  %v9540_v32 = vld [vmem:[#allocation277_spill] sm:$0xff] }
 0x364   : > { %v2232_v7 = vsel %vm1639_vm9, %v2208_v62, %v9536_v2  ;;  %v9538_v49 = vld [vmem:[#allocation208_spill] sm:$0xff]  ;;  %v2231_v36 = vsel %vm1639_vm9, %v2207_v46, %v9539_v25  ;;  %v1802_v57 = vsel %vm9541_vm7, %v1777_v24, %v7237_v14  ;;  %v9543_v55 = vld [vmem:[#allocation278_spill] sm:$0xff]  ;;  %vm9546_vm12 = vcmask 261120   ;;  %v9548_v24 = vld [vmem:[#allocation283_spill] sm:$0xff] }
 0x365   : > { %1135 = vrot.lane.b32.xlu1 %v7351_v38, %s4578_s8  ;;  %1065 = vrot.lane.b32.xlu0 %v7354_v19, %s4577_s7  ;;  %v1676_v60 = vsel %vm1664_vm10, %v1651_v50, %v9538_v49  ;;  %v2256_v1 = vsel %vm1664_vm10, %v2232_v7, %v9540_v32  ;;  %v9544_v62 = vld [vmem:[#allocation280_spill] sm:$0xff]  ;;  %v1827_v50 = vsel %vm1814_vm1, %v1802_v57, %v7315_v27  ;;  %vm9549_vm13 = vmmov %vm9546_vm12  ;;  %vm9552_vm7 = vcmask 293888  }
 0x366   : > { %v1701_v18 = vsel %vm8865_vm11, %v1676_v60, %v9542_v26  ;;  %v2280_v39 = vsel %vm8865_vm11, %v2256_v1, %v9544_v62  ;;  %v9545_v2 = vld [vmem:[#allocation216_spill] sm:$0xff]  ;;  %v1852_v60 = vsel %vm1839_vm2, %v1827_v50, %v7339_v13  ;;  %vm9551_vm0 = vmmov %vm9546_vm12  ;;  %v2493_v50 = vcombine.high %v7438_v23, %v7438_v23 }
 0x367   : > { %v1490_v40 = vpop.permute.xlu1 %1489  ;;  %v7534_v5 = vpop.permute.xlu0 %1271  ;;  %v1726_v7 = vsel %vm9546_vm12, %v1701_v18, %v9545_v2  ;;  %v7578_v49 = vsel %vm9549_vm13, %v2280_v39, %v9548_v24  ;;  %v9550_v25 = vld [vmem:[#allocation284_spill] sm:$0xff]  ;;  %v1877_v32 = vsel %vm1864_vm4, %v1852_v60, %v7403_v48  ;;  %vm9553_vm12 = vcmask 359424   ;;  %v9560_v24 = vld [vmem:[#allocation202_spill] sm:$0xff] }
 0x368   : > { %v1751_v27 = vsel %vm9552_vm7, %v1726_v7, %v7193_v10  ;;  %v1902_v13 = vsel %vm1889_vm3, %v1877_v32, %v1492_v20  ;;  %vm9554_vm13 = vcmask 523264   ;;  %v2362_v48 = vrot.slane %v7578_v49, 1  ;;  %v9555_v20 = vld [vmem:[#allocation213_spill] sm:$0xff]  ;;  %v9604_v49 = vld [vmem:[#allocation227_spill] sm:$0xff] }
 0x369   : > { %1431 = vrot.lane.b32.xlu1 %v9511_v53, %s4582_s12  ;;  %1212 = vrot.lane.b32.xlu0 %v9537_v6, %s4579_s9  ;;  %v2255_v53 = vsel %vm1664_vm10, %v2231_v36, %v9543_v55  ;;  %v9547_v6 = vld [vmem:[#allocation281_spill] sm:$0xff]  ;;  %v1776_v1 = vsel %vm1764_vm14, %v1751_v27, %v7240_v17  ;;  %vm9558_vm7 = vcmask 1046528   ;;  %v1390_v27 = vrot.slane %v7474_v56, 4 }
 0x36a   : > { %v2279_v14 = vsel %vm8865_vm11, %v2255_v53, %v9547_v6  ;;  %v1801_v57 = vsel %vm9553_vm12, %v1776_v1, %v7299_v37  ;;  %v9556_v37 = vld [vmem:[#allocation195_spill] sm:$0xff]  ;;  %v1391_v32 = vrot.slane %v7509_v35, 4  ;;  %vm9567_vm12 = vcmask 1043456  }
 0x36b   : > { %v7570_v45 = vpop.permute.xlu1 %1125  ;;  %v2392_v46 = vpop.permute.xlu0 %2391  ;;  %v2303_v36 = vsel %vm9551_vm0, %v2279_v14, %v9550_v25  ;;  %v1826_v53 = vsel %vm1814_vm1, %v1801_v57, %v7341_v52  ;;  %vm9557_vm0 = vmmov %vm9554_vm13  ;;  %v9561_v25 = vrot.slane %v7469_v34, 1  ;;  %v9563_v57 = vld [vmem:[#allocation204_spill] sm:$0xff] }
 0x36c   : > { %v2452_v26 = vsel %vm9554_vm13, %v1902_v13, %v2392_v46  ;;  %v2361_v55 = vrot.slane %v2303_v36, 1  ;;  %v1851_v17 = vsel %vm1839_vm2, %v1826_v53, %v7405_v22  ;;  %v9562_v36 = vld [vmem:[#allocation221_spill] sm:$0xff]  ;;  %v9565_v53 = vld [vmem:[#allocation270_spill] sm:$0xff]  ;;  %vm9571_vm13 = vcmask 97280  }
 0x36d   : > { %1139 = vrot.lane.b32.xlu1 %v7509_v35, %s4578_s8  ;;  %1507 = vrot.lane.b32.xlu0 %v7474_v56, %s4583_s13  ;;  %v1876_v62 = vsel %vm1864_vm4, %v1851_v17, %v7480_v30  ;;  %v2494_v39 = vcombine.high %v2452_v26, %v2452_v26  ;;  %v4559_v17 = vld [vmem:[%s4635_s23 + $0xe0] sm:$0xff]  ;;  %v1392_v56 = vsel %vm9567_vm12, %v1390_v27, %v1391_v32 }
 0x36e   : > { %v1901_v46 = vsel %vm1889_vm3, %v1876_v62, %v1490_v40  ;;  %v2363_v7 = vsel %vm9558_vm7, %v2361_v55, %v2362_v48  ;;  %v9559_v40 = vld [vmem:[#allocation198_spill] sm:$0xff]  ;;  %v4558_v55 = vld [vmem:[%s4635_s23 + $0xe8] sm:$0xff] }
 0x36f   : > { %v7598_v10 = vpop.permute.xlu1 %1269  ;;  %v7600_v18 = vpop.permute.xlu0 %1198  ;;  %v2529_v30 = vcombine.low %v2452_v26, %v2494_v39  ;;  %v9564_v26 = vld [vmem:[#allocation210_spill] sm:$0xff]  ;;  %v2174_v34 = vsel %vm1539_vm5, %v4558_v55, %v9565_v53  ;;  %v9568_v62 = vld [vmem:[#allocation275_spill] sm:$0xff] }
 0x370   : > { %v2180_v39 = vsel %vm1564_vm6, %v2174_v34, %v9568_v62  ;;  %v9578_v34 = vld [vmem:[#allocation286_spill] sm:$0xff] }
 0x371   : > { %1287 = vrot.lane.b32.xlu1 %v9555_v20, %s4580_s10  ;;  %1210 = vrot.lane.b32.xlu0 %v9556_v37, %s4579_s9  ;;  %v9566_v20 = vld [vmem:[#allocation271_spill] sm:$0xff] }
 0x372   : > { %v2173_v37 = vsel %vm1539_vm5, %v4559_v17, %v9566_v20  ;;  %vm9584_vm5 = vcmask 261120  }
 0x373   : > { %v2390_v2 = vpop.permute.xlu1 %2389  ;;  %v7616_v52 = vpop.permute.xlu0 %1346  ;;  %vm9598_vm12 = vmmov %vm9584_vm5 }
 0x374   : > { %v2451_v22 = vsel %vm9557_vm0, %v1901_v46, %v2390_v2  ;;  %vm9573_vm0 = vmmov %vm9571_vm13 }
 0x375   : > { %v2528_v6 = vcombine.low %v2493_v50, %v2451_v22  ;;  %2407 = vrot.lane.b32.xlu1 %v2363_v7, %s4584_s25  ;;  %1505 = vrot.lane.b32.xlu0 %v7351_v38, %s4583_s13  ;;  %v9569_v50 = vld [vmem:[#allocation276_spill] sm:$0xff] }
 0x376   : > { %v2179_v46 = vsel %vm1564_vm6, %v2173_v37, %v9569_v50  ;;  %v9570_v7 = vld [vmem:[#allocation108_spill] sm:$0xff]  ;;  %v9579_v37 = vld [vmem:[#allocation83_spill] sm:$0xff]  ;;  %vm9586_vm6 = vmmov %vm9584_vm5 }
 0x377   : > { %v7625_v14 = vpop.permute.xlu1 %1273  ;;  %4421 = vmatprep.mubr.msk.f32.mxu0 %vm2538_vm15, %v2528_v6  ;;  %v7628_v23 = vpop.permute.xlu0 %1200  ;;  %v2186_v6 = vsel %vm9571_vm13, %v2180_v39, %v9570_v7  ;;  %v9580_v39 = vld [vmem:[#allocation287_spill] sm:$0xff]  ;;  %vm9601_vm13 = vcmask 293888  }
 0x378   : > { %4422 = vmatmul.mubr.msk.f32.gmra.mrb[8].mxu0 %vm2538_vm15, %v2529_v30  ;;  %v9572_v30 = vld [vmem:[#allocation279_spill] sm:$0xff] }
 0x379   : > { %1285 = vrot.lane.b32.xlu1 %v9559_v40, %s4580_s10  ;;  %1214 = vrot.lane.b32.xlu0 %v9560_v24, %s4579_s9  ;;  %v2185_v40 = vsel %vm9573_vm0, %v2179_v46, %v9572_v30  ;;  %v9574_v24 = vld [vmem:[#allocation79_spill] sm:$0xff]  ;;  %vm9605_vm0 = vmmov %vm9584_vm5  ;;  %s4586_s9 = smov 120  }
 0x37b   : > { %v7635_v60 = vpop.permute.xlu1 %1421  ;;  %v7637_v38 = vpop.permute.xlu0 %1344 }
 0x37d   : > { %2405 = vrot.lane.b32.xlu1 %v9561_v25, %s4584_s25  ;;  %1362 = vrot.lane.b32.xlu0 %v9562_v36, %s4581_s11  ;;  %v2210_v25 = vsel %vm8866_vm8, %v2186_v6, %v9574_v24  ;;  %v9575_v36 = vld [vmem:[#allocation282_spill] sm:$0xff]  ;;  %v9581_v6 = vld [vmem:[#allocation111_spill] sm:$0xff] }
 0x37e   : > { %v2209_v27 = vsel %vm8866_vm8, %v2185_v40, %v9575_v36  ;;  %v9582_v40 = vld [vmem:[#allocation288_spill] sm:$0xff]  ;;  %v9583_v24 = vld [vmem:[#allocation90_spill] sm:$0xff]  ;;  %v9585_v36 = vld [vmem:[#allocation289_spill] sm:$0xff] }
 0x37f   : > { %v7646_v1 = vpop.permute.xlu1 %1055  ;;  %v1054_v13 = vpop.permute.xlu0 %1053  ;;  %v2233_v20 = vsel %vm1639_vm9, %v2209_v27, %v9578_v34 }
 0x380   : > { %v2257_v50 = vsel %vm1664_vm10, %v2233_v20, %v9580_v39  ;;  %v9588_v39 = vld [vmem:[#allocation181_spill] sm:$0xff] }
 0x381   : > { %1360 = vrot.lane.b32.xlu1 %v9563_v57, %s4581_s11  ;;  %1289 = vrot.lane.b32.xlu0 %v9564_v26, %s4580_s10  ;;  %v9576_v57 = vld [vmem:[#allocation218_spill] sm:$0xff]  ;;  %v9577_v26 = vld [vmem:[#allocation285_spill] sm:$0xff] }
 0x382   : > { %v2234_v53 = vsel %vm1639_vm9, %v2210_v25, %v9577_v26 }
 0x383   : > { %v7663_v2 = vpop.permute.xlu1 %1348  ;;  %v7665_v22 = vpop.permute.xlu0 %1275  ;;  %v2258_v62 = vsel %vm1664_vm10, %v2234_v53, %v9579_v37 }
 0x384   : > { %v2282_v30 = vsel %vm8865_vm11, %v2258_v62, %v9581_v6 }
 0x385   : > { %1364 = vrot.lane.b32.xlu1 %v9576_v57, %s4581_s11  ;;  %1437 = vrot.lane.b32.xlu0 %v1392_v56, %s4582_s12  ;;  %v2281_v56 = vsel %vm8865_vm11, %v2257_v50, %v9582_v40  ;;  %v2306_v25 = vsel %vm9584_vm5, %v2282_v30, %v9583_v24  ;;  %v9590_v40 = vld [vmem:[#allocation155_spill] sm:$0xff]  ;;  %vm9607_vm5 = vmmov %vm9605_vm0 }
 0x386   : > { %v2305_v27 = vsel %vm9586_vm6, %v2281_v56, %v9585_v36  ;;  %v2365_v53 = vrot.slane %v2306_v25, 1  ;;  %v9591_v56 = vld [vmem:[#allocation2_spill] sm:$0xff]  ;;  %v9593_v36 = vld [vmem:[#allocation3_spill] sm:$0xff]  ;;  %vm9608_vm6 = vcmask 359424  }
 0x387   : > { %v1496_v46 = vpop.permute.xlu1 %1495  ;;  %v1420_v7 = vpop.permute.xlu0 %1419  ;;  %v2364_v34 = vrot.slane %v2305_v27, 1  ;;  %v1628_v24 = vsel %vm8866_vm8, %v9591_v56, %v9590_v40  ;;  %v9592_v25 = vld [vmem:[#allocation158_spill] sm:$0xff]  ;;  %v9594_v27 = vld [vmem:[#allocation241_spill] sm:$0xff] }
 0x388   : > { %v9600_v56 = vld [vmem:[#allocation230_spill] sm:$0xff] }
 0x389   : > { %1511 = vrot.lane.b32.xlu1 %v4559_v17, %s4583_s13  ;;  %1435 = vrot.lane.b32.xlu0 %v7354_v19, %s4582_s12  ;;  %v2366_v62 = vsel %vm9558_vm7, %v2364_v34, %v2365_v53  ;;  %v9587_v17 = vld [vmem:[#allocation159_spill] sm:$0xff]  ;;  %v9595_v34 = vld [vmem:[#allocation177_spill] sm:$0xff]  ;;  %vm9609_vm7 = vmmov %vm9601_vm13 }
 0x38a   : > { %v1632_v19 = vsel %vm8866_vm8, %v6776_v58, %v9587_v17  ;;  %v1629_v58 = vsel %vm8866_vm8, %v9593_v36, %v9592_v25  ;;  %v9596_v17 = vld [vmem:[#allocation180_spill] sm:$0xff] }
 0x38b   : > { %v7697_v57 = vpop.permute.xlu1 %1129  ;;  %v1128_v26 = vpop.permute.xlu0 %1127  ;;  %v1657_v50 = vsel %vm1639_vm9, %v1632_v19, %v9588_v39  ;;  %v1654_v19 = vsel %vm1639_vm9, %v1629_v58, %v9596_v17  ;;  %v9597_v39 = vld [vmem:[#allocation245_spill] sm:$0xff]  ;;  %v9602_v25 = vld [vmem:[#allocation224_spill] sm:$0xff] }
 0x38c   : > { %v9603_v58 = vld [vmem:[#allocation232_spill] sm:$0xff] }
 0x38d   : > { %1509 = vrot.lane.b32.xlu1 %v7509_v35, %s4583_s13  ;;  %1439 = vrot.lane.b32.xlu0 %v1391_v32, %s4582_s12  ;;  %v9589_v35 = vld [vmem:[#allocation237_spill] sm:$0xff]  ;;  %v9606_v17 = vld [vmem:[#allocation236_spill] sm:$0xff] }
 0x38e   : > { %v1682_v32 = vsel %vm1664_vm10, %v1657_v50, %v9589_v35  ;;  %v9599_v35 = vld [vmem:[#allocation222_spill] sm:$0xff] }
 0x38f   : > { %v7702_v20 = vpop.permute.xlu1 %1423  ;;  %v7704_v37 = vpop.permute.xlu0 %1350 }
 0x391   : > { %1513 = vrot.lane.b32.xlu1 %v4558_v55, %s4583_s13  ;;  %2411 = vrot.lane.b32.xlu0 %v2366_v62, %s4584_s25  ;;  %v1707_v55 = vsel %vm8865_vm11, %v1682_v32, %v9594_v27  ;;  %v1653_v62 = vsel %vm1639_vm9, %v1628_v24, %v9595_v34  ;;  %v1679_v32 = vsel %vm1664_vm10, %v1654_v19, %v9600_v56  ;;  %s4587_s13 = smov 72  }
 0x392   : > { %v1732_v50 = vsel %vm9598_vm12, %v1707_v55, %v9597_v39  ;;  %v1678_v40 = vsel %vm1664_vm10, %v1653_v62, %v9599_v35  ;;  %v1704_v27 = vsel %vm8865_vm11, %v1679_v32, %v9603_v58  ;;  %vm9610_vm12 = vmmov %vm9609_vm7 }
 0x393   : > { %v2396_v6 = vpop.permute.xlu1 %2395  ;;  %v1494_v30 = vpop.permute.xlu0 %1493  ;;  %v1757_v24 = vsel %vm9601_vm13, %v1732_v50, %v1054_v13  ;;  %v1703_v36 = vsel %vm8865_vm11, %v1678_v40, %v9602_v25  ;;  %v1729_v62 = vsel %vm9607_vm5, %v1704_v27, %v9606_v17  ;;  %vm9611_vm13 = vmmov %vm9608_vm6  ;;  %v9614_v27 = vld [vmem:[#allocation157_spill] sm:$0xff]  ;;  %vm9616_vm5 = vcmask 523264  }
 0x394   : > { %v1754_v13 = vsel %vm9609_vm7, %v1729_v62, %v7332_v4  ;;  %vm9620_vm7 = vcmask 261120   ;;  %v4585_v62 = vmov 1983009808  }
 0x395   : > { %2413 = vrot.lane.b32.xlu1 %v2365_v53, %s4584_s25  ;;  %2409 = vrot.lane.b32.xlu0 %v2362_v48, %s4584_s25  ;;  %v1782_v53 = vsel %vm1764_vm14, %v1757_v24, %v1128_v26  ;;  %v1728_v48 = vsel %vm9605_vm0, %v1703_v36, %v9604_v49  ;;  %v1779_v26 = vsel %vm1764_vm14, %v1754_v13, %v7380_v31  ;;  %vm9612_vm0 = vmmov %vm9608_vm6  ;;  %v9619_v49 = vld [vmem:[#allocation229_spill] sm:$0xff]  ;;  %v2753_v13 = vunpack.c.l.s4 %v4585_v62 }
 0x396   : > { %v1753_v39 = vsel %vm9610_vm12, %v1728_v48, %v7382_v12  ;;  %v1804_v35 = vsel %vm9611_vm13, %v1779_v26, %v7482_v54  ;;  %v9613_v54 = vld [vmem:[#allocation164_spill] sm:$0xff]  ;;  %vm9623_vm13 = vmmov %vm9620_vm7 }
 0x397   : > { %v1203_v55 = vpop.permute.xlu1 %1202  ;;  %v1060_v34 = vpop.permute.xlu0 %1059  ;;  %v1778_v50 = vsel %vm1764_vm14, %v1753_v39, %v7458_v61  ;;  %v1829_v4 = vsel %vm1814_vm1, %v1804_v35, %v7534_v5  ;;  %v9621_v39 = vld [vmem:[#allocation231_spill] sm:$0xff] }
 0x398   : > { %v7749_v19 = vsel %vm9608_vm6, %v1782_v53, %v1203_v55  ;;  %v1803_v40 = vsel %vm9612_vm0, %v1778_v50, %v7500_v16  ;;  %v1854_v31 = vsel %vm1839_vm2, %v1829_v4, %v7616_v52  ;;  %v1635_v16 = vsel %vm8866_vm8, %v7074_v21, %v9613_v54  ;;  %vm9617_vm6 = vmmov %vm9616_vm5  ;;  %v9618_v55 = vld [vmem:[#allocation179_spill] sm:$0xff] }
 0x399   : > { %v1828_v12 = vsel %vm1814_vm1, %v1803_v40, %v7598_v10  ;;  %v1879_v24 = vsel %vm1864_vm4, %v1854_v31, %v7635_v60  ;;  %v1660_v5 = vsel %vm1639_vm9, %v1635_v16, %v9412_v47  ;;  %vm9624_vm0 = vmmov %vm9610_vm12  ;;  %v2754_v31 = vunpack.c.0.s8 %v2753_v13 }
 0x39a   : > { %v1853_v61 = vsel %vm1839_vm2, %v1828_v12, %v7637_v38  ;;  %v1904_v10 = vsel %vm1889_vm3, %v1879_v24, %v1496_v46  ;;  %v9615_v38 = vld [vmem:[#allocation22_spill] sm:$0xff]  ;;  %v1685_v21 = vsel %vm1664_vm10, %v1660_v5, %v9414_v59  ;;  %v2755_v59 = vlaneseq }
 0x39b   : > { %v7763_v56 = vpop.permute.xlu1 %1425  ;;  %v7765_v32 = vpop.permute.xlu0 %1204  ;;  %v1878_v25 = vsel %vm1864_vm4, %v1853_v61, %v1420_v7  ;;  %v1630_v53 = vsel %vm8866_vm8, %v9615_v38, %v9614_v27  ;;  %v2454_v60 = vsel %vm9616_vm5, %v1904_v10, %v2396_v6  ;;  %v1710_v46 = vsel %vm8865_vm11, %v1685_v21, %v9416_v0  ;;  %v9622_v0 = vld [vmem:[#allocation235_spill] sm:$0xff] }
 0x39c   : > { %v1903_v36 = vsel %vm1889_vm3, %v1878_v25, %v1494_v30  ;;  %v1655_v47 = vsel %vm1639_vm9, %v1630_v53, %v9618_v55  ;;  %v1735_v17 = vsel %vm9620_vm7, %v1710_v46, %v9418_v29  ;;  %v2756_v61 = vshrl.u32 %v2755_v59, 7  ;;  %v7826_v25 = vld [vmem:[%s8629_s2] ss:$0 sm:$0xff] }
 0x39d   : > { %v1680_v48 = vsel %vm1664_vm10, %v1655_v47, %v9619_v49  ;;  %v1760_v26 = vsel %vm9610_vm12, %v1735_v17, %v1060_v34  ;;  %vm9625_vm5 = vcmask 359424   ;;  %v2495_v10 = vcombine.high %v2454_v60, %v2454_v60  ;;  %vm9632_vm12 = vmmov %vm9623_vm13 }
 0x39e   : > { %v1705_v6 = vsel %vm8865_vm11, %v1680_v48, %v9621_v39  ;;  %vm3129_vm7 = vcmask 189440  }
 0x39f   : > { %v2394_v52 = vpop.permute.xlu1 %2393  ;;  %v1498_v58 = vpop.permute.xlu0 %1497  ;;  %v1730_v40 = vsel %vm9623_vm13, %v1705_v6, %v9622_v0  ;;  %v9626_v6 = vld [vmem:[#allocation160_spill] sm:$0xff]  ;;  %vm9633_vm13 = vmmov %vm9624_vm0 }
 0x3a0   : > { %v2453_v7 = vsel %vm9617_vm6, %v1903_v36, %v2394_v52  ;;  %v1755_v29 = vsel %vm9624_vm0, %v1730_v40, %v7461_v51  ;;  %vm9634_vm0 = vmmov %vm9625_vm5 }
 0x3a1   : > { %v2530_v30 = vcombine.low %v2453_v7, %v2454_v60  ;;  %v1780_v12 = vsel %vm1764_vm14, %v1755_v29, %v7502_v63 }
 0x3a2   : > { %v1805_v34 = vsel %vm9625_vm5, %v1780_v12, %v7600_v18  ;;  %v7832_v18 = vsub.s32 %v2754_v31, %v2756_v61  ;;  %v9628_v12 = vld [vmem:[#allocation182_spill] sm:$0xff]  ;;  %vm9635_vm5 = vmmov %vm9617_vm6 }
 0x3a3   : > { %v1134_v50 = vpop.permute.xlu1 %1133  ;;  %4424 = vmatprep.mubr.msk.f32.mxu0 %vm2538_vm15, %v2530_v30  ;;  %v7804_v35 = vpop.permute.xlu0 %1057  ;;  %v1830_v24 = vsel %vm1814_vm1, %v1805_v34, %v7625_v14 }
 0x3a4   : > { %v7809_v4 = vsel %vm1764_vm14, %v1760_v26, %v1134_v50  ;;  %v1855_v51 = vsel %vm1839_vm2, %v1830_v24, %v7663_v2  ;;  %v9627_v26 = vld [vmem:[#allocation45_spill] sm:$0xff]  ;;  %v9629_v24 = vld [vmem:[#allocation238_spill] sm:$0xff] }
 0x3a5   : > { %v1880_v63 = vsel %vm1864_vm4, %v1855_v51, %v7702_v20  ;;  %v1631_v50 = vsel %vm8866_vm8, %v9627_v26, %v9626_v6 }
 0x3a6   : > { %v1905_v36 = vsel %vm1889_vm3, %v1880_v63, %v1498_v58  ;;  %v1656_v31 = vsel %vm1639_vm9, %v1631_v50, %v9628_v12 }
 0x3a7   : > { %v7817_v54 = vpop.permute.xlu1 %1279  ;;  %v7819_v16 = vpop.permute.xlu0 %1277  ;;  %v1681_v51 = vsel %vm1664_vm10, %v1656_v31, %v9629_v24 }
 0x3aa   : > { %v4411_v5 = vpop.f32.mrb[0].mxu0 }
 0x3ab   : > { %v7836_v52 = vadd.f32 %v4411_v5, %v7826_v25  ;;  %v2398_v14 = vpop.permute.xlu1 %2397  ;;  %v2644_v27 = vpop.f32.mrb[1].mxu0 }
 0x3ac   : > { %v2455_v38 = vsel %vm9617_vm6, %v1905_v36, %v2398_v14  ;;  %v2645_v53 = vadd.f32 %v7826_v25, %v2644_v27  ;;  %v1500_v21 = vpop.permute.xlu0 %1499  ;;  %vm3794_vm6 = vcmask 1041409  }
 0x3ad   : > { %v2768_v2 = vcombine.high %v7836_v52, %v7836_v52  ;;  %v2531_v20 = vcombine.low %v2495_v10, %v2455_v38  ;;  %v9630_v10 = vld [vmem:[#allocation242_spill] sm:$0xff] }
 0x3ae   : > { %v2758_v7 = vrot.slane %v2645_v53, %v7832_v18  ;;  %v1706_v36 = vsel %vm8865_vm11, %v1681_v51, %v9630_v10  ;;  %v2775_v10 = vrot.slane %v7836_v52, %v7832_v18 }
 0x3af   : > { %v2782_v60 = vrot.slane %v2768_v2, %v7832_v18  ;;  %v7844_v58 = vpop.permute.xlu1 %1208  ;;  %4425 = vmatmul.mubr.msk.f32.gmra.mrb[10].mxu0 %vm2538_vm15, %v2531_v20  ;;  %v9631_v2 = vld [vmem:[#allocation246_spill] sm:$0xff] }
 0x3b0   : > { %v2766_v55 = vcombine.high %v2758_v7, %v2758_v7  ;;  %v3130_v47 = vsel %vm3129_vm7, %v2758_v7, -inf  ;;  %v7848_v46 = vpop.permute.xlu0 %1131  ;;  %v1731_v20 = vsel %vm9632_vm12, %v1706_v36, %v9631_v2  ;;  %v3158_v52 = vsel %vm3129_vm7, %v2775_v10, -inf }
 0x3b1   : > { %v2784_v30 = vcombine.high %v2782_v60, %v2782_v60  ;;  %v3172_v49 = vsel %vm3129_vm7, %v2782_v60, -inf  ;;  %v3131_v48 = vrot.slane %v3130_v47, 4 }
 0x3b2   : > { %v3173_v17 = vrot.slane %v3172_v49, 4  ;;  %v3137_v59 = vsel %vm3129_vm7, %v2766_v55, -inf }
 0x3b3   : > { %v3179_v62 = vsel %vm3129_vm7, %v2784_v30, -inf  ;;  %v3132_v13 = vmax.f32 %v3130_v47, %v3131_v48  ;;  %v7853_v39 = vpop.permute.xlu1 %1354  ;;  %v3138_v34 = vrot.slane %v3137_v59, 4  ;;  %v1756_v47 = vsel %vm9633_vm13, %v1731_v20, %v7488_v44 }
 0x3b4   : > { %v3174_v0 = vmax.f32 %v3172_v49, %v3173_v17  ;;  %v3180_v40 = vrot.slane %v3179_v62, 4  ;;  %v7858_v29 = vpop.permute.xlu0 %1352  ;;  %v2751_v30 = vcombine.high %v2645_v53, %v2645_v53  ;;  %v1781_v17 = vsel %vm1764_vm14, %v1756_v47, %v7570_v45 }
 0x3b5   : > { %v3133_v61 = vrot.slane %v3132_v13, 2  ;;  %v3139_v27 = vmax.f32 %v3137_v59, %v3138_v34  ;;  %v1806_v59 = vsel %vm9634_vm0, %v1781_v17, %v7628_v23  ;;  %v2783_v47 = vcombine.high %v2775_v10, %v2775_v10  ;;  %v9636_v17 = vld [vmem:[#allocation166_spill] sm:$0xff]  ;;  %vm9648_vm0 = vmmov %vm9632_vm12 }
 0x3b6   : > { %v3175_v63 = vrot.slane %v3174_v0, 2  ;;  %v3181_v5 = vmax.f32 %v3179_v62, %v3180_v40  ;;  %v2765_v45 = vrot.slane %v2751_v30, %v7832_v18 }
 0x3b7   : > { %v3134_v14 = vmax.f32 %v3132_v13, %v3133_v61  ;;  %v7866_v38 = vpop.permute.xlu1 %1206  ;;  %v3140_v48 = vrot.slane %v3139_v27, 2 }
 0x3b8   : > { %v3176_v7 = vmax.f32 %v3174_v0, %v3175_v63  ;;  %v3182_v60 = vrot.slane %v3181_v5, 2  ;;  %v2400_v55 = vpop.permute.xlu0 %2399  ;;  %v1831_v0 = vsel %vm1814_vm1, %v1806_v59, %v7665_v22  ;;  %v2767_v2 = vcombine.high %v2765_v45, %v2765_v45 }
 0x3b9   : > { %v3135_v49 = vrot.slane %v3134_v14, 1  ;;  %v3141_v26 = vmax.f32 %v3139_v27, %v3140_v48  ;;  %v1856_v12 = vsel %vm1839_vm2, %v1831_v0, %v7704_v37 }
 0x3ba   : > { %v3177_v62 = vrot.slane %v3176_v7, 1  ;;  %v3183_v13 = vmax.f32 %v3181_v5, %v3182_v60  ;;  %v1881_v23 = vsel %vm1864_vm4, %v1856_v12, %v7763_v56 }
 0x3bb   : > { %v3136_v6 = vmax.f32 %v3134_v14, %v3135_v49  ;;  %v7876_v50 = vpop.permute.xlu1 %1427  ;;  %v3142_v31 = vrot.slane %v3141_v26, 1  ;;  %v1906_v63 = vsel %vm1889_vm3, %v1881_v23, %v1500_v21  ;;  %v3144_v14 = vsel %vm3129_vm7, %v2765_v45, -inf }
 0x3bc   : > { %v3178_v40 = vmax.f32 %v3176_v7, %v3177_v62  ;;  %v3184_v44 = vrot.slane %v3183_v13, 1  ;;  %v7880_v53 = vpop.permute.xlu0 %1283  ;;  %v2456_v37 = vsel %vm9635_vm5, %v1906_v63, %v2400_v55  ;;  %v3145_v30 = vrot.slane %v3144_v14, 4  ;;  %vm9650_vm5 = vmmov %vm9648_vm0 }
 0x3bd   : > { %v3634_v61 = vsel %vm1664_vm10, %v3136_v6, -inf  ;;  %v3143_v51 = vmax.f32 %v3141_v26, %v3142_v31  ;;  %v2496_v56 = vcombine.high %v2456_v37, %v2456_v37  ;;  %v1637_v62 = vsel %vm8866_vm8, %v7288_v41, %v9636_v17 }
 0x3be   : > { %v3185_v34 = vmax.f32 %v3183_v13, %v3184_v44  ;;  %v3635_v24 = vsel %vm1664_vm10, %v3178_v40, -inf  ;;  %v3151_v13 = vsel %vm3129_vm7, %v2767_v2, -inf  ;;  %v1662_v59 = vsel %vm1639_vm9, %v1637_v62, %v9457_v15 }
 0x3bf   : > { %v3636_v22 = vmax.f32 %v3634_v61, %v3635_v24  ;;  %v1064_v5 = vpop.permute.xlu1 %1063  ;;  %v3637_v27 = vsel %vm1664_vm10, %v3143_v51, -inf  ;;  %v2532_v7 = vcombine.low %v2456_v37, %v2496_v56  ;;  %v1687_v0 = vsel %vm1664_vm10, %v1662_v59, %v9459_v8  ;;  %v9637_v37 = vld [vmem:[#allocation161_spill] sm:$0xff] }
 0x3c0   : > { %v7893_v36 = vpop.permute.xlu0 %1429  ;;  %v3638_v20 = vsel %vm1664_vm10, %v3185_v34, -inf  ;;  %v3159_v40 = vrot.slane %v3158_v52, 4  ;;  %v3165_v44 = vsel %vm3129_vm7, %v2783_v47, -inf  ;;  %v3146_v12 = vmax.f32 %v3144_v14, %v3145_v30  ;;  %v9638_v14 = vld [vmem:[#allocation23_spill] sm:$0xff]  ;;  %v9640_v56 = vld [vmem:[#allocation5_spill] sm:$0xff]  ;;  %v9643_v30 = vld [vmem:[#allocation244_spill] sm:$0xff] }
 0x3c1   : > { %v3639_v21 = vmax.f32 %v3637_v27, %v3638_v20  ;;  %4427 = vmatprep.mubr.msk.f32.mxu0 %vm2538_vm15, %v2532_v7  ;;  %v3742_v48 = vmax.f32 %v3636_v22, 0.0  ;;  %v1712_v41 = vsel %vm8865_vm11, %v1687_v0, %v9461_v42  ;;  %v3152_v31 = vrot.slane %v3151_v13, 4  ;;  %v9639_v27 = vld [vmem:[#allocation162_spill] sm:$0xff]  ;;  %v9641_v20 = vld [vmem:[#allocation183_spill] sm:$0xff] }
 0x3c2   : > { %v1737_v15 = vsel %vm9632_vm12, %v1712_v41, %v9463_v43  ;;  %v3166_v61 = vrot.slane %v3165_v44, 4  ;;  %v3160_v51 = vmax.f32 %v3158_v52, %v3159_v40  ;;  %v3147_v8 = vrot.slane %v3146_v12, 2  ;;  %v9644_v0 = vld [vmem:[#allocation243_spill] sm:$0xff]  ;;  %v9645_v40 = vld [vmem:[#allocation248_spill] sm:$0xff]  ;;  %vm9651_vm12 = vmmov %vm9633_vm13 }
 0x3c3   : > { %v7898_v60 = vpop.permute.xlu1 %1358  ;;  %v7904_v55 = vmax.f32 %v3639_v21, 0.0  ;;  %v1762_v23 = vsel %vm9633_vm13, %v1737_v15, %v1064_v5  ;;  %v1634_v42 = vsel %vm8866_vm8, %v9638_v14, %v9637_v37  ;;  %v1633_v43 = vsel %vm8866_vm8, %v9640_v56, %v9639_v27  ;;  %v9642_v21 = vld [vmem:[#allocation184_spill] sm:$0xff] }
 0x3c4   : > { %v7900_v49 = vpop.permute.xlu0 %1281  ;;  %v3153_v2 = vmax.f32 %v3151_v13, %v3152_v31  ;;  %v1659_v7 = vsel %vm1639_vm9, %v1634_v42, %v9641_v20  ;;  %v1658_v47 = vsel %vm1639_vm9, %v1633_v43, %v9642_v21  ;;  %v3161_v31 = vrot.slane %v3160_v51, 2  ;;  %v9647_v42 = vld [vmem:[#allocation250_spill] sm:$0xff]  ;;  %v9649_v43 = vld [vmem:[#allocation249_spill] sm:$0xff] }
 0x3c5   : > { %v7916_v26 = vsel %vm3794_vm6, %v7904_v55, %v3742_v48  ;;  %v1683_v52 = vsel %vm1664_vm10, %v1658_v47, %v9643_v30  ;;  %v3167_v48 = vmax.f32 %v3165_v44, %v3166_v61  ;;  %v1684_v13 = vsel %vm1664_vm10, %v1659_v7, %v9644_v0  ;;  %v9646_v61 = vld [vmem:[#allocation247_spill] sm:$0xff] }
 0x3c6   : > { %v1708_v41 = vsel %vm8865_vm11, %v1683_v52, %v9645_v40  ;;  %v3148_v15 = vmax.f32 %v3146_v12, %v3147_v8  ;;  %v1709_v14 = vsel %vm8865_vm11, %v1684_v13, %v9646_v61  ;;  %vm9652_vm13 = vcmask 359424  }
 0x3c7   : > { %v7912_v6 = vpop.permute.xlu1 %1503  ;;  %v1733_v27 = vsel %vm9648_vm0, %v1708_v41, %v9647_v42  ;;  %v3168_v8 = vrot.slane %v3167_v48, 2  ;;  %v3162_v0 = vmax.f32 %v3160_v51, %v3161_v31  ;;  %vm9653_vm0 = vmmov %vm9651_vm12  ;;  %vm9656_vm11 = vcmask 359424  }
 0x3c8   : > { %v7921_v45 = vpop.permute.xlu0 %1501  ;;  %v1758_v12 = vsel %vm9651_vm12, %v1733_v27, %v7646_v1  ;;  %v3149_v13 = vrot.slane %v3148_v15, 1  ;;  %v1832_v27 = vsel %vm1814_vm1, %v7749_v19, %v7819_v16  ;;  %vm3798_vm12 = vcmask 1043459  }
 0x3c9   : > { %v1783_v21 = vsel %vm1764_vm14, %v1758_v12, %v7697_v57 }
 0x3cb   : > { %v1138_v34 = vpop.permute.xlu1 %1137  ;;  %v4414_v24 = vpop.f32.mrb[2].mxu0 }
 0x3cc   : > { %v7929_v22 = vsel %vm1764_vm14, %v1762_v23, %v1138_v34  ;;  %v7931_v63 = vpop.permute.xlu0 %1061  ;;  %v2654_v10 = vpop.f32.mrb[3].mxu0  ;;  %v3154_v34 = vrot.slane %v3153_v2, 2 }
 0x3cd   : > { %v2655_v5 = vadd.f32 %v7826_v25, %v2654_v10 }
 0x3ce   : > { %v3155_v40 = vmax.f32 %v3153_v2, %v3154_v34 }
 0x3cf   : > { %v2785_v17 = vcombine.high %v2655_v5, %v2655_v5  ;;  %v2792_v62 = vrot.slane %v2655_v5, %v7832_v18  ;;  %v7947_v59 = vpop.permute.xlu1 %1433  ;;  %v1734_v5 = vsel %vm9650_vm5, %v1709_v14, %v9649_v43  ;;  %vm3796_vm5 = vcmask 1042434  }
 0x3d0   : > { %v7953_v23 = vpop.permute.xlu0 %1356  ;;  %v1759_v57 = vsel %vm9653_vm0, %v1734_v5, %v7804_v35  ;;  %v3150_v35 = vmax.f32 %v3148_v15, %v3149_v13  ;;  %v3156_v43 = vrot.slane %v3155_v40, 1 }
 0x3d1   : > { %v2799_v10 = vrot.slane %v2785_v17, %v7832_v18  ;;  %v2800_v37 = vcombine.high %v2792_v62, %v2792_v62  ;;  %v3186_v44 = vsel %vm3129_vm7, %v2792_v62, -inf  ;;  %v1808_v62 = vsel %vm9652_vm13, %v1783_v21, %v7765_v32 }
 0x3d2   : > { %v3187_v56 = vrot.slane %v3186_v44, 4  ;;  %vm9654_vm13 = vcmask 523264  }
 0x3d3   : > { %v2801_v20 = vcombine.high %v2799_v10, %v2799_v10  ;;  %v2404_v7 = vpop.permute.xlu1 %2403  ;;  %v3193_v30 = vsel %vm3129_vm7, %v2800_v37, -inf  ;;  %v3200_v52 = vsel %vm3129_vm7, %v2799_v10, -inf  ;;  %v1833_v37 = vsel %vm1814_vm1, %v1808_v62, %v7817_v54  ;;  %vm9655_vm0 = vmmov %vm9654_vm13 }
 0x3d4   : > { %v3188_v47 = vmax.f32 %v3186_v44, %v3187_v56  ;;  %v2402_v17 = vpop.permute.xlu0 %2401  ;;  %v3194_v1 = vrot.slane %v3193_v30, 4  ;;  %v3201_v61 = vrot.slane %v3200_v52, 4  ;;  %v3169_v44 = vmax.f32 %v3167_v48, %v3168_v8 }
 0x3d5   : > { %v3207_v14 = vsel %vm3129_vm7, %v2801_v20, -inf  ;;  %v2660_v10 = vadd.f32 %v4414_v24, %v7826_v25  ;;  %v3163_v56 = vrot.slane %v3162_v0, 1  ;;  %v1858_v8 = vsel %vm1839_vm2, %v1833_v37, %v7853_v39 }
 0x3d6   : > { %v3189_v41 = vrot.slane %v3188_v47, 2  ;;  %v3195_v51 = vmax.f32 %v3193_v30, %v3194_v1  ;;  %v3202_v31 = vmax.f32 %v3200_v52, %v3201_v61  ;;  %v3208_v2 = vrot.slane %v3207_v14, 4 }
 0x3d7   : > { %v7977_v42 = vpop.permute.xlu1 %1135  ;;  %v3170_v24 = vrot.slane %v3169_v44, 1  ;;  %v1857_v20 = vsel %vm1839_vm2, %v1832_v27, %v7858_v29  ;;  %v2802_v21 = vcombine.high %v2660_v10, %v2660_v10  ;;  %v3157_v62 = vmax.f32 %v3155_v40, %v3156_v43 }
 0x3d8   : > { %v3190_v32 = vmax.f32 %v3188_v47, %v3189_v41  ;;  %v7979_v34 = vpop.permute.xlu0 %1065  ;;  %v3196_v54 = vrot.slane %v3195_v51, 2  ;;  %v3203_v48 = vrot.slane %v3202_v31, 2  ;;  %v3209_v12 = vmax.f32 %v3207_v14, %v3208_v2 }
 0x3d9   : > { %v1882_v13 = vsel %vm1864_vm4, %v1857_v20, %v7876_v50  ;;  %v1883_v39 = vsel %vm1864_vm4, %v1858_v8, %v7893_v36  ;;  %v3640_v41 = vsel %vm1664_vm10, %v3150_v35, -inf  ;;  %v2816_v40 = vrot.slane %v2802_v21, %v7832_v18 }
 0x3da   : > { %v3191_v5 = vrot.slane %v3190_v32, 1  ;;  %v3197_v19 = vmax.f32 %v3195_v51, %v3196_v54  ;;  %v3204_v16 = vmax.f32 %v3202_v31, %v3203_v48  ;;  %v3210_v15 = vrot.slane %v3209_v12, 2 }
 0x3db   : > { %v7988_v47 = vpop.permute.xlu1 %1431  ;;  %v1908_v29 = vsel %vm1889_vm3, %v1883_v39, %v7912_v6  ;;  %v1907_v37 = vsel %vm1889_vm3, %v1882_v13, %v7921_v45  ;;  %v3164_v36 = vmax.f32 %v3162_v0, %v3163_v56  ;;  %v1810_v35 = vsel %vm9656_vm11, %v7809_v4, %v7844_v58 }
 0x3dc   : > { %v3192_v30 = vmax.f32 %v3190_v32, %v3191_v5  ;;  %v7990_v52 = vpop.permute.xlu0 %1212  ;;  %v3198_v1 = vrot.slane %v3197_v19, 1  ;;  %v3205_v61 = vrot.slane %v3204_v16, 1  ;;  %v3211_v32 = vmax.f32 %v3209_v12, %v3210_v15 }
 0x3dd   : > { %v8006_v2 = vsel %vm9654_vm13, %v1908_v29, %v2404_v7  ;;  %v2457_v6 = vsel %vm9655_vm0, %v1907_v37, %v2402_v17  ;;  %v1784_v45 = vsel %vm1764_vm14, %v1759_v57, %v7848_v46  ;;  %v2809_v43 = vrot.slane %v2660_v10, %v7832_v18  ;;  %vm9657_vm13 = vmmov %vm9655_vm0 }
 0x3de   : > { %v3641_v14 = vsel %vm1664_vm10, %v3192_v30, -inf  ;;  %v3199_v31 = vmax.f32 %v3197_v19, %v3198_v1  ;;  %v2533_v5 = vcombine.low %v2457_v6, %v8006_v2  ;;  %v1835_v0 = vsel %vm1814_vm1, %v1810_v35, %v7880_v53 }
 0x3df   : > { %v3642_v50 = vmax.f32 %v3640_v41, %v3641_v14  ;;  %v8003_v51 = vpop.permute.xlu1 %1139  ;;  %v3206_v56 = vmax.f32 %v3204_v16, %v3205_v61  ;;  %v3643_v7 = vsel %vm1664_vm10, %v3157_v62, -inf  ;;  %v3171_v54 = vmax.f32 %v3169_v44, %v3170_v24 }
 0x3e0   : > { %v1508_v27 = vpop.permute.xlu0 %1507  ;;  %v2818_v17 = vcombine.high %v2816_v40, %v2816_v40  ;;  %4428 = vmatmul.mubr.msk.f32.gmra.mrb[12].mxu0 %vm2538_vm15, %v2533_v5  ;;  %v3644_v4 = vsel %vm1664_vm10, %v3199_v31, -inf  ;;  %v3212_v46 = vrot.slane %v3211_v32, 1  ;;  %v1860_v57 = vsel %vm1839_vm2, %v1835_v0, %v7898_v60 }
 0x3e1   : > { %v3744_v58 = vmax.f32 %v3642_v50, 0.0  ;;  %v3645_v12 = vmax.f32 %v3643_v7, %v3644_v4  ;;  %v3646_v53 = vsel %vm1664_vm10, %v3164_v36, -inf  ;;  %v3647_v8 = vsel %vm1664_vm10, %v3206_v56, -inf }
 0x3e2   : > { %v2817_v44 = vcombine.high %v2809_v43, %v2809_v43  ;;  %v3648_v24 = vmax.f32 %v3646_v53, %v3647_v8  ;;  %v3213_v21 = vmax.f32 %v3211_v32, %v3212_v46  ;;  %v3228_v30 = vsel %vm3129_vm7, %v2816_v40, -inf }
 0x3e3   : > { %v8020_v48 = vpop.permute.xlu1 %1287  ;;  %v3817_v20 = vsel %vm3794_vm6, %v3744_v58, %v7904_v55  ;;  %v3745_v19 = vmax.f32 %v3645_v12, 0.0  ;;  %v3649_v16 = vsel %vm1664_vm10, %v3171_v54, -inf  ;;  %v3797_v60 = vsel %vm3796_vm5, %v3744_v58, %v7916_v26 }
 0x3e4   : > { %v8025_v10 = vpop.permute.xlu0 %1210  ;;  %v3214_v15 = vsel %vm3129_vm7, %v2809_v43, -inf  ;;  %v3235_v62 = vsel %vm3129_vm7, %v2818_v17, -inf  ;;  %v3746_v39 = vmax.f32 %v3648_v24, 0.0  ;;  %v3650_v41 = vsel %vm1664_vm10, %v3213_v21, -inf }
 0x3e5   : > { %v1885_v55 = vsel %vm1864_vm4, %v1860_v57, %v7947_v59  ;;  %v3818_v29 = vsel %vm3796_vm5, %v3745_v19, %v3817_v20  ;;  %v3651_v61 = vmax.f32 %v3649_v16, %v3650_v41  ;;  %v3845_v14 = vsel %vm3794_vm6, %v3745_v19, %v3744_v58  ;;  %v9658_v41 = vld [vmem:[#allocation163_spill] sm:$0xff] }
 0x3e6   : > { %v3221_v37 = vsel %vm3129_vm7, %v2817_v44, -inf  ;;  %v3229_v26 = vrot.slane %v3228_v30, 4  ;;  %v3819_v40 = vsel %vm3798_vm12, %v3746_v39, %v3818_v29  ;;  %v3846_v32 = vsel %vm3796_vm5, %v3746_v39, %v3845_v14 }
 0x3e7   : > { %v2408_v13 = vpop.permute.xlu1 %2407  ;;  %v3236_v50 = vrot.slane %v3235_v62, 4  ;;  %v1910_v36 = vsel %vm1889_vm3, %v1885_v55, %v1508_v27  ;;  %3829 = vrot.lane.b32.xlu0 %v3819_v40, %s4574_s29  ;;  %v3747_v31 = vmax.f32 %v3651_v61, 0.0  ;;  %v8048_v59 = vsel %vm3798_vm12, %v3745_v19, %v3797_v60 }
 0x3e8   : > { %v1506_v1 = vpop.permute.xlu0 %1505  ;;  %v1809_v6 = vsel %vm9656_vm11, %v1784_v45, %v7866_v38  ;;  %v3215_v35 = vrot.slane %v3214_v15, 4  ;;  %v2460_v43 = vsel %vm9657_vm13, %v1910_v36, %v2408_v13  ;;  %v3222_v56 = vrot.slane %v3221_v37, 4 }
 0x3e9   : > { %v1834_v0 = vsel %vm1814_vm1, %v1809_v6, %v7900_v49  ;;  %v3847_v27 = vsel %vm3798_vm12, %v3747_v31, %v3846_v32  ;;  %v3230_v54 = vmax.f32 %v3228_v30, %v3229_v26  ;;  %v3237_v4 = vmax.f32 %v3235_v62, %v3236_v50  ;;  %v9660_v31 = vld [vmem:[#allocation255_spill] sm:$0xff]  ;;  %v9662_v6 = vld [vmem:[#allocation40_spill] sm:$0xff] }
 0x3ea   : > { %v1859_v17 = vsel %vm1839_vm2, %v1834_v0, %v7953_v23  ;;  %v2498_v45 = vcombine.high %v2460_v43, %v2460_v43  ;;  %v3216_v58 = vmax.f32 %v3214_v15, %v3215_v35  ;;  %v2497_v46 = vcombine.high %v8006_v2, %v8006_v2  ;;  %v9665_v0 = vld [vmem:[#allocation18_spill] sm:$0xff] }
 0x3eb   : > { %v8053_v5 = vpop.permute.xlu1 %1285  ;;  %v1884_v38 = vsel %vm1864_vm4, %v1859_v17, %v7988_v47  ;;  %3857 = vrot.lane.b32.xlu0 %v3847_v27, %s4580_s10  ;;  %v3223_v12 = vmax.f32 %v3221_v37, %v3222_v56  ;;  %v3231_v44 = vrot.slane %v3230_v54, 2  ;;  %v3238_v24 = vrot.slane %v3237_v4, 2 }
 0x3ec   : > { %v1215_v7 = vpop.permute.xlu0 %1214  ;;  %v1909_v49 = vsel %vm1889_vm3, %v1884_v38, %v1506_v1  ;;  %v2535_v20 = vcombine.low %v2460_v43, %v2498_v45  ;;  %v3217_v21 = vrot.slane %v3216_v58, 2  ;;  %v1636_v55 = vsel %vm8866_vm8, %v7064_v9, %v9658_v41  ;;  %v9659_v1 = vld [vmem:[#allocation165_spill] sm:$0xff]  ;;  %v9663_v43 = vld [vmem:[#allocation16_spill] sm:$0xff] }
 0x3ed   : > { %v3224_v30 = vrot.slane %v3223_v12, 2  ;;  %v3232_v2 = vmax.f32 %v3230_v54, %v3231_v44  ;;  %v3239_v16 = vmax.f32 %v3237_v4, %v3238_v24  ;;  %v1638_v61 = vsel %vm8866_vm8, %v7284_v11, %v9659_v1 }
 0x3ee   : > { %v3218_v60 = vmax.f32 %v3216_v58, %v3217_v21  ;;  %v1661_v14 = vsel %vm1639_vm9, %v1636_v55, %v9410_v3  ;;  %v1663_v40 = vsel %vm1639_vm9, %v1638_v61, %v9456_v28  ;;  %vm9661_vm11 = vcmask 228352   ;;  %v9667_v28 = vld [vmem:[#allocation82_spill] sm:$0xff] }
 0x3ef   : > { %v2406_v57 = vpop.permute.xlu1 %2405  ;;  %v3225_v62 = vmax.f32 %v3223_v12, %v3224_v30  ;;  %v3233_v39 = vrot.slane %v3232_v2, 1  ;;  %v3240_v29 = vrot.slane %v3239_v16, 1  ;;  %v1686_v32 = vsel %vm1664_vm10, %v1661_v14, %v9413_v33 }
 0x3f0   : > { %v2459_v53 = vsel %vm9655_vm0, %v1909_v49, %v2406_v57  ;;  %v1363_v8 = vpop.permute.xlu0 %1362  ;;  %v3219_v37 = vrot.slane %v3218_v60, 1  ;;  %v1711_v9 = vsel %vm9661_vm11, %v1686_v32, %v9660_v31  ;;  %v1688_v35 = vsel %vm1664_vm10, %v1663_v40, %v9662_v6  ;;  %vm9666_vm0 = vmmov %vm9661_vm11 }
 0x3f1   : > { %v2534_v23 = vcombine.low %v2497_v46, %v2459_v53  ;;  %v3226_v50 = vrot.slane %v3225_v62, 1  ;;  %v3234_v11 = vmax.f32 %v3232_v2, %v3233_v39  ;;  %vm9664_vm13 = vcmask 261120  }
 0x3f2   : > { %v1736_v3 = vsel %vm9664_vm13, %v1711_v9, %v9663_v43  ;;  %v1713_v56 = vsel %vm9666_vm0, %v1688_v35, %v9665_v0  ;;  %v3241_v27 = vmax.f32 %v3239_v16, %v3240_v29  ;;  %vm9668_vm9 = vmmov %vm9664_vm13  ;;  %v8091_v33 = vmax.f32 %v3218_v60, %v3219_v37 }
 0x3f3   : > { %v1361_v47 = vpop.permute.xlu1 %1360  ;;  %4430 = vmatprep.mubr.msk.f32.mxu0 %vm2538_vm15, %v2534_v23  ;;  %v1738_v54 = vsel %vm9668_vm9, %v1713_v56, %v9667_v28  ;;  %vm9669_vm8 = vcmask 293888   ;;  %v8095_v38 = vmax.f32 %v3225_v62, %v3226_v50  ;;  %vm9671_vm13 = vcmask 359424  }
 0x3f4   : > { %v1290_v19 = vpop.permute.xlu0 %1289  ;;  %4431 = vmatmul.mubr.msk.f32.gmra.mrb[14].mxu0 %vm2538_vm15, %v2535_v20  ;;  %v1761_v17 = vsel %vm9669_vm8, %v1736_v3, %v7931_v63  ;;  %vm9670_vm11 = vmmov %vm9669_vm8  ;;  %v1812_v46 = vsel %vm9671_vm13, %v7929_v22, %v7990_v52  ;;  %v8111_v53 = vsel %vm1664_vm10, %v3234_v11, -inf  ;;  %v8118_v44 = vsel %vm1664_vm10, %v3241_v27, -inf }
 0x3f5   : > { %v1786_v45 = vsel %vm1764_vm14, %v1761_v17, %v7977_v42  ;;  %v1763_v58 = vsel %vm9670_vm11, %v1738_v54, %v7979_v34  ;;  %v1837_v63 = vsel %vm1814_vm1, %v1812_v46, %v8020_v48  ;;  %vm9672_vm8 = vmmov %vm9671_vm13  ;;  %vm9674_vm9 = vcmask 523264  }
 0x3f6   : > { %v1788_v57 = vsel %vm1764_vm14, %v1763_v58, %v8003_v51  ;;  %v1811_v12 = vsel %vm9672_vm8, %v1786_v45, %v8025_v10  ;;  %vm9673_vm0 = vmmov %vm9672_vm8  ;;  %v1862_v22 = vsel %vm1839_vm2, %v1837_v63, %v1363_v8  ;;  %vm4058_vm8 = vcmask 719872  }
 0x3f7   : > { %v1365_v15 = vpop.permute.xlu1 %1364  ;;  %v1836_v42 = vsel %vm1814_vm1, %v1811_v12, %v8053_v5  ;;  %v1813_v34 = vsel %vm9673_vm0, %v1788_v57, %v1215_v7 }
 0x3f8   : > { %v1438_v13 = vpop.permute.xlu0 %1437  ;;  %v1861_v51 = vsel %vm1839_vm2, %v1836_v42, %v1361_v47  ;;  %v1838_v48 = vsel %vm1814_vm1, %v1813_v34, %v1290_v19 }
 0x3f9   : > { %v1887_v10 = vsel %vm1864_vm4, %v1862_v22, %v1438_v13  ;;  %v1863_v5 = vsel %vm1839_vm2, %v1838_v48, %v1365_v15 }
 0x3fb   : > { %v1512_v26 = vpop.permute.xlu1 %1511 }
 0x3fc   : > { %v1436_v36 = vpop.permute.xlu0 %1435  ;;  %v1912_v7 = vsel %vm1889_vm3, %v1887_v10, %v1512_v26 }
 0x3fd   : > { %v1886_v8 = vsel %vm1864_vm4, %v1861_v51, %v1436_v36 }
 0x3ff   : > { %v1510_v4 = vpop.permute.xlu1 %1509 }
 0x400   : > { %v1440_v49 = vpop.permute.xlu0 %1439  ;;  %v8134_v60 = vsel %vm1889_vm3, %v1886_v8, %v1510_v4 }
 0x401   : > { %v1888_v2 = vsel %vm1864_vm4, %v1863_v5, %v1440_v49  ;;  %vm3984_vm4 = vcmask 785408  }
 0x402   : > { %v4417_v52 = vpop.f32.mrb[4].mxu0 }
 0x403   : > { %v2670_v23 = vadd.f32 %v4417_v52, %v7826_v25  ;;  %v1514_v24 = vpop.permute.xlu1 %1513  ;;  %v2664_v20 = vpop.f32.mrb[5].mxu0 }
 0x404   : > { %v2665_v21 = vadd.f32 %v7826_v25, %v2664_v20  ;;  %v2412_v30 = vpop.permute.xlu0 %2411  ;;  %v1913_v15 = vsel %vm1889_vm3, %v1888_v2, %v1514_v24  ;;  %vm9675_vm3 = vmmov %vm9674_vm9 }
 0x405   : > { %v2836_v47 = vcombine.high %v2670_v23, %v2670_v23  ;;  %v2843_v19 = vrot.slane %v2670_v23, %v7832_v18  ;;  %v8131_v16 = vsel %vm9674_vm9, %v1912_v7, %v2412_v30  ;;  %vm9676_vm2 = vmmov %vm9675_vm3 }
 0x406   : > { %v2819_v62 = vcombine.high %v2665_v21, %v2665_v21  ;;  %v2826_v13 = vrot.slane %v2665_v21, %v7832_v18  ;;  %v2499_v29 = vcombine.high %v8131_v16, %v8131_v16  ;;  %vm9679_vm11 = vmmov %vm9676_vm2 }
 0x407   : > { %v2850_v39 = vrot.slane %v2836_v47, %v7832_v18  ;;  %v2851_v41 = vcombine.high %v2843_v19, %v2843_v19  ;;  %v3270_v55 = vsel %vm3129_vm7, %v2843_v19, -inf  ;;  %v2414_v5 = vpop.permute.xlu1 %2413  ;;  %vm9680_vm13 = vmmov %vm9676_vm2 }
 0x408   : > { %v3271_v1 = vrot.slane %v3270_v55, 4  ;;  %v2833_v61 = vrot.slane %v2819_v62, %v7832_v18  ;;  %v2834_v14 = vcombine.high %v2826_v13, %v2826_v13  ;;  %v3242_v37 = vsel %vm3129_vm7, %v2826_v13, -inf  ;;  %v2410_v13 = vpop.permute.xlu0 %2409 }
 0x409   : > { %v2852_v26 = vcombine.high %v2850_v39, %v2850_v39  ;;  %v3277_v40 = vsel %vm3129_vm7, %v2851_v41, -inf  ;;  %v3284_v32 = vsel %vm3129_vm7, %v2850_v39, -inf  ;;  %v3243_v50 = vrot.slane %v3242_v37, 4 }
 0x40a   : > { %v3272_v36 = vmax.f32 %v3270_v55, %v3271_v1  ;;  %v3278_v31 = vrot.slane %v3277_v40, 4  ;;  %v3285_v9 = vrot.slane %v3284_v32, 4  ;;  %v2835_v6 = vcombine.high %v2833_v61, %v2833_v61 }
 0x40b   : > { %v3291_v35 = vsel %vm3129_vm7, %v2852_v26, -inf  ;;  %v3244_v11 = vmax.f32 %v3242_v37, %v3243_v50  ;;  %v3249_v43 = vsel %vm3129_vm7, %v2834_v14, -inf  ;;  %v3256_v3 = vsel %vm3129_vm7, %v2833_v61, -inf }
 0x40c   : > { %v3273_v0 = vrot.slane %v3272_v36, 2  ;;  %v3279_v56 = vmax.f32 %v3277_v40, %v3278_v31  ;;  %v3286_v27 = vmax.f32 %v3284_v32, %v3285_v9  ;;  %v3292_v28 = vrot.slane %v3291_v35, 4 }
 0x40d   : > { %v3245_v54 = vrot.slane %v3244_v11, 2  ;;  %v3250_v17 = vrot.slane %v3249_v43, 4  ;;  %v3257_v4 = vrot.slane %v3256_v3, 4  ;;  %v3263_v45 = vsel %vm3129_vm7, %v2835_v6, -inf }
 0x40e   : > { %v3274_v58 = vmax.f32 %v3272_v36, %v3273_v0  ;;  %v3280_v46 = vrot.slane %v3279_v56, 2  ;;  %v3287_v49 = vrot.slane %v3286_v27, 2  ;;  %v3293_v57 = vmax.f32 %v3291_v35, %v3292_v28 }
 0x40f   : > { %v3246_v63 = vmax.f32 %v3244_v11, %v3245_v54  ;;  %v3251_v12 = vmax.f32 %v3249_v43, %v3250_v17  ;;  %v3258_v42 = vmax.f32 %v3256_v3, %v3257_v4  ;;  %v3264_v34 = vrot.slane %v3263_v45, 4 }
 0x410   : > { %v3275_v22 = vrot.slane %v3274_v58, 1  ;;  %v3281_v52 = vmax.f32 %v3279_v56, %v3280_v46  ;;  %v3288_v51 = vmax.f32 %v3286_v27, %v3287_v49  ;;  %v3294_v48 = vrot.slane %v3293_v57, 2 }
 0x411   : > { %v3247_v10 = vrot.slane %v3246_v63, 1  ;;  %v3252_v23 = vrot.slane %v3251_v12, 2  ;;  %v3259_v24 = vrot.slane %v3258_v42, 2  ;;  %v3265_v20 = vmax.f32 %v3263_v45, %v3264_v34 }
 0x412   : > { %v3276_v7 = vmax.f32 %v3274_v58, %v3275_v22  ;;  %v3282_v8 = vrot.slane %v3281_v52, 1  ;;  %v3289_v21 = vrot.slane %v3288_v51, 1  ;;  %v3295_v30 = vmax.f32 %v3293_v57, %v3294_v48 }
 0x413   : > { %v3248_v2 = vmax.f32 %v3246_v63, %v3247_v10  ;;  %v3253_v47 = vmax.f32 %v3251_v12, %v3252_v23  ;;  %v3260_v19 = vmax.f32 %v3258_v42, %v3259_v24  ;;  %v3266_v62 = vrot.slane %v3265_v20, 2 }
 0x414   : > { %v3283_v39 = vmax.f32 %v3281_v52, %v3282_v8  ;;  %v3290_v41 = vmax.f32 %v3288_v51, %v3289_v21  ;;  %v3659_v55 = vsel %vm1664_vm10, %v3276_v7, -inf  ;;  %v2463_v1 = vsel %vm9675_vm3, %v1913_v15, %v2414_v5 }
 0x415   : > { %v3660_v61 = vmax.f32 %v8111_v53, %v3659_v55  ;;  %v3254_v14 = vrot.slane %v3253_v47, 1  ;;  %v3261_v37 = vrot.slane %v3260_v19, 1  ;;  %v3267_v26 = vmax.f32 %v3265_v20, %v3266_v62 }
 0x416   : > { %v3662_v40 = vsel %vm1664_vm10, %v3283_v39, -inf  ;;  %v3664_v32 = vsel %vm1664_vm10, %v3248_v2, -inf  ;;  %v2537_v50 = vcombine.low %v2499_v29, %v2463_v1  ;;  %v2461_v36 = vsel %vm9676_vm2, %v8134_v60, %v2410_v13 }
 0x417   : > { %v3262_v31 = vmax.f32 %v3260_v19, %v3261_v37  ;;  %v3268_v9 = vrot.slane %v3267_v26, 1  ;;  %v2536_v6 = vcombine.low %v2461_v36, %v8131_v16  ;;  %v3255_v35 = vmax.f32 %v3253_v47, %v3254_v14 }
 0x418   : > { %v3652_v15 = vsel %vm1664_vm10, %v8091_v33, -inf  ;;  %v3296_v53 = vrot.slane %v3295_v30, 1  ;;  %v3663_v11 = vmax.f32 %v8118_v44, %v3662_v40  ;;  %v3665_v43 = vsel %vm1664_vm10, %v3290_v41, -inf }
 0x419   : > { %v3269_v3 = vmax.f32 %v3267_v26, %v3268_v9  ;;  %v3653_v0 = vsel %vm1664_vm10, %v3262_v31, -inf  ;;  %4433 = vmatprep.mubr.msk.f32.mxu0 %vm2538_vm15, %v2536_v6  ;;  %v3666_v29 = vmax.f32 %v3664_v32, %v3665_v43  ;;  %v3750_v60 = vmax.f32 %v3660_v61, 0.0 }
 0x41a   : > { %4434 = vmatmul.mubr.msk.f32.gmra.mrb[16].mxu0 %vm2538_vm15, %v2537_v50  ;;  %v3297_v56 = vmax.f32 %v3295_v30, %v3296_v53  ;;  %v3667_v16 = vsel %vm1664_vm10, %v3255_v35, -inf  ;;  %v3751_v27 = vmax.f32 %v3663_v11, 0.0  ;;  %v3654_v28 = vmax.f32 %v3652_v15, %v3653_v0 }
 0x41b   : > { %v3655_v33 = vsel %vm1664_vm10, %v8095_v38, -inf  ;;  %v3752_v44 = vmax.f32 %v3666_v29, 0.0  ;;  %v3656_v54 = vsel %vm1664_vm10, %v3269_v3, -inf  ;;  %vm3979_vm15 = vcmask 588800  }
 0x41c   : > { %v3668_v17 = vsel %vm1664_vm10, %v3297_v56, -inf  ;;  %v3848_v4 = vsel %vm3794_vm6, %v3751_v27, %v3750_v60  ;;  %v3657_v45 = vmax.f32 %v3655_v33, %v3656_v54  ;;  %v3748_v57 = vmax.f32 %v3654_v28, 0.0 }
 0x41d   : > { %v3669_v58 = vmax.f32 %v3667_v16, %v3668_v17  ;;  %v3849_v46 = vsel %vm3796_vm5, %v3752_v44, %v3848_v4 }
 0x41e   : > { %v3749_v49 = vmax.f32 %v3657_v45, 0.0 }
 0x41f   : > { %v3753_v63 = vmax.f32 %v3669_v58, 0.0 }
 0x420   : > { %v3820_v12 = vsel %vm3794_vm6, %v3750_v60, %v3749_v49  ;;  %v3800_v42 = vsel %vm3794_vm6, %v3749_v49, %v3748_v57 }
 0x421   : > { %v3850_v38 = vsel %vm3798_vm12, %v3753_v63, %v3849_v46  ;;  %v3821_v34 = vsel %vm3796_vm5, %v3751_v27, %v3820_v12  ;;  %v3801_v22 = vsel %vm3796_vm5, %v3750_v60, %v3800_v42 }
 0x422   : > { %3908 = vrot.lane.b32.xlu0 %v3850_v38, %s4586_s9  ;;  %v8179_v52 = vsel %vm3798_vm12, %v3752_v44, %v3821_v34  ;;  %v8182_v51 = vsel %vm3798_vm12, %v3751_v27, %v3801_v22 }
 0x423   : > { %3831 = vrot.lane.b32.xlu1 %v8179_v52, %s4574_s29 }
 0x427   : > { %3859 = vrot.lane.b32.xlu1 %v3850_v38, %s4580_s10 }
 0x42a   : > { %v4420_v48 = vpop.f32.mrb[6].mxu0 }
 0x42b   : > { %v2680_v10 = vadd.f32 %v4420_v48, %v7826_v25  ;;  %v2674_v23 = vpop.f32.mrb[7].mxu0 }
 0x42c   : > { %v2675_v24 = vadd.f32 %v7826_v25, %v2674_v23 }
 0x42d   : > { %v2870_v20 = vcombine.high %v2680_v10, %v2680_v10  ;;  %v2877_v27 = vrot.slane %v2680_v10, %v7832_v18 }
 0x42e   : > { %v2860_v5 = vrot.slane %v2675_v24, %v7832_v18  ;;  %v2853_v50 = vcombine.high %v2675_v24, %v2675_v24 }
 0x42f   : > { %v2884_v7 = vrot.slane %v2870_v20, %v7832_v18  ;;  %v2885_v4 = vcombine.high %v2877_v27, %v2877_v27  ;;  %v3326_v49 = vsel %vm3129_vm7, %v2877_v27, -inf }
 0x430   : > { %v2868_v8 = vcombine.high %v2860_v5, %v2860_v5  ;;  %v3298_v21 = vsel %vm3129_vm7, %v2860_v5, -inf  ;;  %v2867_v43 = vrot.slane %v2853_v50, %v7832_v18  ;;  %v3327_v12 = vrot.slane %v3326_v49, 4  ;;  %v8214_v5 = vld [vmem:[%s8629_s2] ss:$0 sm:$0xff] }
 0x431   : > { %v2886_v30 = vcombine.high %v2884_v7, %v2884_v7  ;;  %v3340_v2 = vsel %vm3129_vm7, %v2884_v7, -inf  ;;  %v3299_v47 = vrot.slane %v3298_v21, 4  ;;  %v3333_v42 = vsel %vm3129_vm7, %v2885_v4, -inf }
 0x432   : > { %v3341_v19 = vrot.slane %v3340_v2, 4  ;;  %v3305_v39 = vsel %vm3129_vm7, %v2868_v8, -inf  ;;  %v3312_v33 = vsel %vm3129_vm7, %v2867_v43, -inf  ;;  %v2869_v54 = vcombine.high %v2867_v43, %v2867_v43 }
 0x433   : > { %v3347_v62 = vsel %vm3129_vm7, %v2886_v30, -inf  ;;  %v3300_v13 = vmax.f32 %v3298_v21, %v3299_v47  ;;  %v3306_v1 = vrot.slane %v3305_v39, 4  ;;  %v3313_v45 = vrot.slane %v3312_v33, 4 }
 0x434   : > { %v3342_v41 = vmax.f32 %v3340_v2, %v3341_v19  ;;  %v3348_v25 = vrot.slane %v3347_v62, 4  ;;  %v3319_v57 = vsel %vm3129_vm7, %v2869_v54, -inf  ;;  %v3334_v22 = vrot.slane %v3333_v42, 4 }
 0x435   : > { %v3301_v55 = vrot.slane %v3300_v13, 2  ;;  %v3307_v26 = vmax.f32 %v3305_v39, %v3306_v1  ;;  %v3314_v38 = vmax.f32 %v3312_v33, %v3313_v45  ;;  %v3320_v34 = vrot.slane %v3319_v57, 4 }
 0x436   : > { %v3343_v61 = vrot.slane %v3342_v41, 2  ;;  %v3349_v14 = vmax.f32 %v3347_v62, %v3348_v25  ;;  %v3328_v10 = vmax.f32 %v3326_v49, %v3327_v12  ;;  %v3335_v8 = vmax.f32 %v3333_v42, %v3334_v22 }
 0x437   : > { %v3302_v37 = vmax.f32 %v3300_v13, %v3301_v55  ;;  %v3308_v31 = vrot.slane %v3307_v26, 2  ;;  %v3315_v23 = vrot.slane %v3314_v38, 2  ;;  %v3321_v20 = vmax.f32 %v3319_v57, %v3320_v34 }
 0x438   : > { %v3344_v40 = vmax.f32 %v3342_v41, %v3343_v61  ;;  %v3350_v32 = vrot.slane %v3349_v14, 2  ;;  %v3329_v2 = vrot.slane %v3328_v10, 2  ;;  %v3336_v25 = vrot.slane %v3335_v8, 2 }
 0x439   : > { %v3303_v36 = vrot.slane %v3302_v37, 1  ;;  %v3309_v15 = vmax.f32 %v3307_v26, %v3308_v31  ;;  %v3316_v47 = vmax.f32 %v3314_v38, %v3315_v23  ;;  %v3322_v19 = vrot.slane %v3321_v20, 2 }
 0x43a   : > { %v3345_v9 = vrot.slane %v3344_v40, 1  ;;  %v3351_v6 = vmax.f32 %v3349_v14, %v3350_v32 }
 0x43b   : > { %v3304_v35 = vmax.f32 %v3302_v37, %v3303_v36  ;;  %v3310_v3 = vrot.slane %v3309_v15, 1  ;;  %v3330_v37 = vmax.f32 %v3328_v10, %v3329_v2  ;;  %v3317_v26 = vrot.slane %v3316_v47, 1 }
 0x43c   : > { %v3346_v53 = vmax.f32 %v3344_v40, %v3345_v9  ;;  %v3352_v11 = vrot.slane %v3351_v6, 1  ;;  %v3323_v40 = vmax.f32 %v3321_v20, %v3322_v19  ;;  %v3337_v9 = vmax.f32 %v3335_v8, %v3336_v25 }
 0x43d   : > { %v3670_v0 = vsel %vm1664_vm10, %v3304_v35, -inf  ;;  %v3311_v56 = vmax.f32 %v3309_v15, %v3310_v3  ;;  %v3318_v43 = vmax.f32 %v3316_v47, %v3317_v26 }
 0x43e   : > { %v3353_v29 = vmax.f32 %v3351_v6, %v3352_v11  ;;  %v3671_v60 = vsel %vm1664_vm10, %v3346_v53, -inf  ;;  %v3331_v11 = vrot.slane %v3330_v37, 1  ;;  %v3324_v3 = vrot.slane %v3323_v40, 1 }
 0x43f   : > { %v3672_v16 = vmax.f32 %v3670_v0, %v3671_v60  ;;  %v3673_v44 = vsel %vm1664_vm10, %v3311_v56, -inf  ;;  %v3676_v45 = vsel %vm1664_vm10, %v3318_v43, -inf }
 0x440   : > { %v3674_v28 = vsel %vm1664_vm10, %v3353_v29, -inf  ;;  %v3332_v54 = vmax.f32 %v3330_v37, %v3331_v11  ;;  %v3325_v4 = vmax.f32 %v3323_v40, %v3324_v3 }
 0x441   : > { %v3675_v17 = vmax.f32 %v3673_v44, %v3674_v28  ;;  %v3754_v58 = vmax.f32 %v3672_v16, 0.0  ;;  %v3338_v16 = vrot.slane %v3337_v9, 1 }
 0x442   : > { %v3682_v23 = vsel %vm1664_vm10, %v3332_v54, -inf }
 0x443   : > { %v8202_v46 = vmax.f32 %v3675_v17, 0.0  ;;  %v3339_v22 = vmax.f32 %v3337_v9, %v3338_v16 }
 0x445   : > { %v8208_v63 = vsel %vm3794_vm6, %v8202_v46, %v3754_v58 }
 0x44b   : > { %v4423_v48 = vpop.f32.mrb[8].mxu0 }
 0x44c   : > { %v2684_v24 = vpop.f32.mrb[9].mxu0  ;;  %v2690_v17 = vadd.f32 %v8214_v5, %v4423_v48 }
 0x44d   : > { %v2685_v7 = vadd.f32 %v8214_v5, %v2684_v24  ;;  %v3679_v24 = vsel %vm1664_vm10, %v3325_v4, -inf }
 0x44f   : > { %v2887_v21 = vcombine.high %v2685_v7, %v2685_v7  ;;  %v2894_v30 = vrot.slane %v2685_v7, %v7832_v18  ;;  %v2904_v7 = vcombine.high %v2690_v17, %v2690_v17 }
 0x451   : > { %v2901_v62 = vrot.slane %v2887_v21, %v7832_v18  ;;  %v2902_v13 = vcombine.high %v2894_v30, %v2894_v30  ;;  %v3354_v39 = vsel %vm3129_vm7, %v2894_v30, -inf }
 0x452   : > { %v3355_v41 = vrot.slane %v3354_v39, 4 }
 0x453   : > { %v2903_v55 = vcombine.high %v2901_v62, %v2901_v62  ;;  %v3361_v61 = vsel %vm3129_vm7, %v2902_v13, -inf  ;;  %v3368_v14 = vsel %vm3129_vm7, %v2901_v62, -inf  ;;  %v3685_v62 = vsel %vm1664_vm10, %v3339_v22, -inf  ;;  %v4018_v22 = vld [vmem:[%s8630_s3] sm:$0xff] }
 0x454   : > { %v3356_v1 = vmax.f32 %v3354_v39, %v3355_v41  ;;  %v3362_v50 = vrot.slane %v3361_v61, 4  ;;  %v3369_v36 = vrot.slane %v3368_v14, 4  ;;  %v2911_v39 = vrot.slane %v2690_v17, %v7832_v18 }
 0x455   : > { %v3375_v31 = vsel %vm3129_vm7, %v2903_v55, -inf }
 0x456   : > { %v3357_v32 = vrot.slane %v3356_v1, 2  ;;  %v3363_v35 = vmax.f32 %v3361_v61, %v3362_v50  ;;  %v3370_v15 = vmax.f32 %v3368_v14, %v3369_v36  ;;  %v3376_v53 = vrot.slane %v3375_v31, 4 }
 0x457   : > { %v2919_v40 = vcombine.high %v2911_v39, %v2911_v39 }
 0x458   : > { %v3358_v6 = vmax.f32 %v3356_v1, %v3357_v32  ;;  %v3364_v29 = vrot.slane %v3363_v35, 2  ;;  %v3371_v60 = vrot.slane %v3370_v15, 2  ;;  %v3377_v56 = vmax.f32 %v3375_v31, %v3376_v53 }
 0x459   : > { %v2918_v1 = vrot.slane %v2904_v7, %v7832_v18  ;;  %v3382_v31 = vsel %vm3129_vm7, %v2911_v39, -inf  ;;  %v3389_v9 = vsel %vm3129_vm7, %v2919_v40, -inf }
 0x45a   : > { %v3359_v0 = vrot.slane %v3358_v6, 1  ;;  %v3365_v28 = vmax.f32 %v3363_v35, %v3364_v29  ;;  %v3372_v33 = vmax.f32 %v3370_v15, %v3371_v60  ;;  %v3378_v44 = vrot.slane %v3377_v56, 2 }
 0x45b   : > { %v2920_v50 = vcombine.high %v2918_v1, %v2918_v1  ;;  %v3396_v36 = vsel %vm3129_vm7, %v2918_v1, -inf  ;;  %v3383_v15 = vrot.slane %v3382_v31, 4  ;;  %v3390_v53 = vrot.slane %v3389_v9, 4 }
 0x45c   : > { %v3360_v27 = vmax.f32 %v3358_v6, %v3359_v0  ;;  %v3366_v58 = vrot.slane %v3365_v28, 1  ;;  %v3373_v49 = vrot.slane %v3372_v33, 1  ;;  %v3379_v57 = vmax.f32 %v3377_v56, %v3378_v44 }
 0x45d   : > { %v3397_v6 = vrot.slane %v3396_v36, 4  ;;  %v3403_v35 = vsel %vm3129_vm7, %v2920_v50, -inf  ;;  %v3384_v3 = vmax.f32 %v3382_v31, %v3383_v15  ;;  %v3391_v0 = vmax.f32 %v3389_v9, %v3390_v53 }
 0x45e   : > { %v3677_v12 = vsel %vm1664_vm10, %v3360_v27, -inf  ;;  %v3374_v38 = vmax.f32 %v3372_v33, %v3373_v49  ;;  %v3367_v34 = vmax.f32 %v3365_v28, %v3366_v58  ;;  %v3380_v10 = vrot.slane %v3379_v57, 1 }
 0x45f   : > { %v3678_v42 = vmax.f32 %v3676_v45, %v3677_v12  ;;  %v3404_v11 = vrot.slane %v3403_v35, 4  ;;  %v3398_v43 = vmax.f32 %v3396_v36, %v3397_v6  ;;  %v3385_v56 = vrot.slane %v3384_v3, 2 }
 0x460   : > { %v3680_v48 = vsel %vm1664_vm10, %v3367_v34, -inf  ;;  %v3381_v8 = vmax.f32 %v3379_v57, %v3380_v10  ;;  %v3683_v21 = vsel %vm1664_vm10, %v3374_v38, -inf  ;;  %v3392_v16 = vrot.slane %v3391_v0, 2  ;;  %v4019_v10 = vld [vmem:[%s8630_s3 + $0x8] sm:$0xff] }
 0x461   : > { %v3756_v20 = vmax.f32 %v3678_v42, 0.0  ;;  %v3681_v30 = vmax.f32 %v3679_v24, %v3680_v48  ;;  %v3684_v47 = vmax.f32 %v3682_v23, %v3683_v21  ;;  %v3405_v29 = vmax.f32 %v3403_v35, %v3404_v11  ;;  %v4020_v23 = vld [vmem:[%s8630_s3 + $0x10] sm:$0xff]  ;;  %v4021_v21 = vld [vmem:[%s8630_s3 + $0x18] sm:$0xff] }
 0x462   : > { %v3686_v13 = vsel %vm1664_vm10, %v3381_v8, -inf  ;;  %v3399_v60 = vrot.slane %v3398_v43, 2  ;;  %v3386_v33 = vmax.f32 %v3384_v3, %v3385_v56  ;;  %v3393_v44 = vmax.f32 %v3391_v0, %v3392_v16 }
 0x463   : > { %v3804_v2 = vsel %vm3796_vm5, %v3756_v20, %v8208_v63  ;;  %v3823_v19 = vsel %vm3794_vm6, %v3756_v20, %v8202_v46  ;;  %v3757_v41 = vmax.f32 %v3681_v30, 0.0  ;;  %v3687_v25 = vmax.f32 %v3685_v62, %v3686_v13  ;;  %v4022_v30 = vld [vmem:[%s8630_s3 + $0x20] sm:$0xff] }
 0x464   : > { %v3758_v55 = vmax.f32 %v3684_v47, 0.0  ;;  %v3406_v27 = vrot.slane %v3405_v29, 2  ;;  %v3400_v28 = vmax.f32 %v3398_v43, %v3399_v60  ;;  %v3387_v4 = vrot.slane %v3386_v33, 1 }
 0x465   : > { %v8239_v61 = vsel %vm3798_vm12, %v3757_v41, %v3804_v2  ;;  %v3759_v14 = vmax.f32 %v3687_v25, 0.0  ;;  %v3851_v63 = vsel %vm3794_vm6, %v3757_v41, %v3756_v20  ;;  %v3824_v37 = vsel %vm3796_vm5, %v3757_v41, %v3823_v19  ;;  %v4023_v2 = vld [vmem:[%s8630_s3 + $0x28] sm:$0xff] }
 0x466   : > { %3927 = vrot.lane.b32.xlu0 %v8239_v61, %s4572_s27  ;;  %v3852_v46 = vsel %vm3796_vm5, %v3758_v55, %v3851_v63  ;;  %v8247_v26 = vsel %vm3798_vm12, %v3758_v55, %v3824_v37  ;;  %v3407_v54 = vmax.f32 %v3405_v29, %v3406_v27  ;;  %v3401_v17 = vrot.slane %v3400_v28, 1 }
 0x467   : > { %v3853_v32 = vsel %vm3798_vm12, %v3759_v14, %v3852_v46  ;;  %v3394_v45 = vrot.slane %v3393_v44, 1  ;;  %v8266_v42 = vmax.f32 %v3386_v33, %v3387_v4  ;;  %v4589_v48 = vmov 0.0|0.0  }
 0x468   : > { %3910 = vrot.lane.b32.xlu1 %v3853_v32, %s4586_s9  ;;  %v3402_v58 = vmax.f32 %v3400_v28, %v3401_v17  ;;  %4460 = vmatprep.subr.bf16.mxu1 %v4589_v48  ;;  %v4461_v8 = vpack.c.bf16 %v4019_v10, %v4018_v22  ;;  %v4464_v13 = vpack.c.bf16 %v4021_v21, %v4020_v23 }
 0x469   : > { %v8268_v38 = vmax.f32 %v3393_v44, %v3394_v45  ;;  %v4467_v55 = vpack.c.bf16 %v4023_v2, %v4022_v30 }
 0x46a   : > { %3876 = vrot.lane.b32.xlu0 %v8182_v51, %s4587_s13  ;;  %v8294_v47 = vsel %vm1664_vm10, %v3402_v58, -inf  ;;  %4462 = vmatpush1.bf16.msra.mxu1 %v4461_v8 }
 0x46b   : > { %4463 = vmatprep.subr.bf16.mxu1 %v4589_v48 }
 0x46e   : > { %3943 = vrot.lane.b32.xlu0 %v8247_v26, %s4578_s8  ;;  %4465 = vmatpush1.bf16.msra.mxu1 %v4464_v13 }
 0x46f   : > { %4466 = vmatprep.subr.bf16.mxu1 %v4589_v48 }
 0x472   : > { %3892 = vrot.lane.b32.xlu0 %v8179_v52, %s4588_s17  ;;  %v3408_v52 = vrot.slane %v3407_v54, 1  ;;  %4468 = vmatpush1.bf16.msra.mxu1 %v4467_v55 }
 0x473   : > { %4469 = vmatprep.subr.bf16.mxu1 %v4589_v48 }
 0x474   : > { %v8280_v24 = vmax.f32 %v3407_v54, %v3408_v52 }
 0x476   : > { %3959 = vrot.lane.b32.xlu0 %v3853_v32, %s4584_s25 }
 0x47a   : > { %3833 = vrot.lane.b32.xlu0 %v8247_v26, %s4574_s29 }
 0x47e   : > { %3861 = vrot.lane.b32.xlu0 %v3853_v32, %s4580_s10 }
 0x482   : > { %v4426_v49 = vpop.f32.mrb[10].mxu0 }
 0x483   : > { %v2700_v57 = vadd.f32 %v8214_v5, %v4426_v49  ;;  %v2694_v12 = vpop.f32.mrb[11].mxu0 }
 0x484   : > { %v2695_v34 = vadd.f32 %v8214_v5, %v2694_v12 }
 0x485   : > { %v2938_v20 = vcombine.high %v2700_v57, %v2700_v57  ;;  %v2945_v7 = vrot.slane %v2700_v57, %v7832_v18 }
 0x486   : > { %v2921_v19 = vcombine.high %v2695_v34, %v2695_v34  ;;  %v2928_v62 = vrot.slane %v2695_v34, %v7832_v18 }
 0x487   : > { %v2952_v39 = vrot.slane %v2938_v20, %v7832_v18  ;;  %v2953_v41 = vcombine.high %v2945_v7, %v2945_v7  ;;  %v3438_v25 = vsel %vm3129_vm7, %v2945_v7, -inf }
 0x488   : > { %v3439_v1 = vrot.slane %v3438_v25, 4  ;;  %v2935_v14 = vrot.slane %v2921_v19, %v7832_v18  ;;  %v2936_v63 = vcombine.high %v2928_v62, %v2928_v62  ;;  %v3410_v37 = vsel %vm3129_vm7, %v2928_v62, -inf }
 0x489   : > { %v2954_v46 = vcombine.high %v2952_v39, %v2952_v39  ;;  %v3445_v40 = vsel %vm3129_vm7, %v2953_v41, -inf  ;;  %v3452_v32 = vsel %vm3129_vm7, %v2952_v39, -inf  ;;  %v3411_v50 = vrot.slane %v3410_v37, 4 }
 0x48a   : > { %v3440_v36 = vmax.f32 %v3438_v25, %v3439_v1  ;;  %v3446_v31 = vrot.slane %v3445_v40, 4  ;;  %v3453_v9 = vrot.slane %v3452_v32, 4  ;;  %v2937_v6 = vcombine.high %v2935_v14, %v2935_v14 }
 0x48b   : > { %v3459_v35 = vsel %vm3129_vm7, %v2954_v46, -inf  ;;  %v3412_v15 = vmax.f32 %v3410_v37, %v3411_v50  ;;  %v3417_v53 = vsel %vm3129_vm7, %v2936_v63, -inf  ;;  %v3424_v11 = vsel %vm3129_vm7, %v2935_v14, -inf  ;;  %v4024_v37 = vld [vmem:[%s8630_s3 + $0x30] sm:$0xff]  ;;  %v4025_v46 = vld [vmem:[%s8630_s3 + $0x38] sm:$0xff] }
 0x48c   : > { %v3441_v43 = vrot.slane %v3440_v36, 2  ;;  %v3447_v3 = vmax.f32 %v3445_v40, %v3446_v31  ;;  %v3454_v0 = vmax.f32 %v3452_v32, %v3453_v9  ;;  %v3460_v29 = vrot.slane %v3459_v35, 4 }
 0x48d   : > { %v3413_v60 = vrot.slane %v3412_v15, 2  ;;  %v3418_v56 = vrot.slane %v3417_v53, 4  ;;  %v3425_v16 = vrot.slane %v3424_v11, 4  ;;  %v3431_v27 = vsel %vm3129_vm7, %v2937_v6, -inf }
 0x48e   : > { %v3442_v28 = vmax.f32 %v3440_v36, %v3441_v43  ;;  %v3448_v33 = vrot.slane %v3447_v3, 2  ;;  %v3455_v44 = vrot.slane %v3454_v0, 2  ;;  %v3461_v54 = vmax.f32 %v3459_v35, %v3460_v29  ;;  %v4026_v43 = vld [vmem:[%s8630_s3 + $0x40] sm:$0xff] }
 0x48f   : > { %v3414_v17 = vmax.f32 %v3412_v15, %v3413_v60  ;;  %v3419_v4 = vmax.f32 %v3417_v53, %v3418_v56  ;;  %v3426_v45 = vmax.f32 %v3424_v11, %v3425_v16  ;;  %v3432_v52 = vrot.slane %v3431_v27, 4 }
 0x490   : > { %v3443_v58 = vrot.slane %v3442_v28, 1  ;;  %v3449_v49 = vmax.f32 %v3447_v3, %v3448_v33  ;;  %v3456_v57 = vmax.f32 %v3454_v0, %v3455_v44  ;;  %v3462_v12 = vrot.slane %v3461_v54, 2 }
 0x491   : > { %v3415_v34 = vrot.slane %v3414_v17, 1  ;;  %v3420_v22 = vrot.slane %v3419_v4, 2  ;;  %v3427_v10 = vrot.slane %v3426_v45, 2  ;;  %v3433_v23 = vmax.f32 %v3431_v27, %v3432_v52 }
 0x492   : > { %v3444_v20 = vmax.f32 %v3442_v28, %v3443_v58  ;;  %v3450_v7 = vrot.slane %v3449_v49, 1  ;;  %v3457_v8 = vrot.slane %v3456_v57, 1  ;;  %v3463_v21 = vmax.f32 %v3461_v54, %v3462_v12 }
 0x493   : > { %v3416_v30 = vmax.f32 %v3414_v17, %v3415_v34  ;;  %v3421_v2 = vmax.f32 %v3419_v4, %v3420_v22  ;;  %v3428_v19 = vmax.f32 %v3426_v45, %v3427_v10  ;;  %v3434_v62 = vrot.slane %v3433_v23, 2  ;;  %v4028_v17 = vld [vmem:[%s8630_s3 + $0x50] sm:$0xff]  ;;  %v4029_v4 = vld [vmem:[%s8630_s3 + $0x58] sm:$0xff]  ;;  %v4030_v22 = vld [vmem:[%s8630_s3 + $0x60] sm:$0xff] }
 0x494   : > { %v3451_v13 = vmax.f32 %v3449_v49, %v3450_v7  ;;  %v3458_v39 = vmax.f32 %v3456_v57, %v3457_v8  ;;  %v3695_v41 = vsel %vm1664_vm10, %v3444_v20, -inf  ;;  %v3464_v25 = vrot.slane %v3463_v21, 1  ;;  %v4031_v10 = vld [vmem:[%s8630_s3 + $0x68] sm:$0xff] }
 0x495   : > { %v3696_v55 = vmax.f32 %v8294_v47, %v3695_v41  ;;  %v3422_v1 = vrot.slane %v3421_v2, 1  ;;  %v3429_v14 = vrot.slane %v3428_v19, 1  ;;  %v3435_v63 = vmax.f32 %v3433_v23, %v3434_v62  ;;  %v4033_v62 = vld [vmem:[%s8630_s3 + $0x78] sm:$0xff]  ;;  %v4035_v41 = vld [vmem:[%s8630_s3 + $0x88] sm:$0xff] }
 0x496   : > { %v3698_v40 = vsel %vm1664_vm10, %v3451_v13, -inf  ;;  %v3700_v32 = vsel %vm1664_vm10, %v3416_v30, -inf  ;;  %v3465_v50 = vmax.f32 %v3463_v21, %v3464_v25  ;;  %v3697_v36 = vsel %vm1664_vm10, %v8280_v24, -inf  ;;  %v4027_v24 = vld [vmem:[%s8630_s3 + $0x48] sm:$0xff] }
 0x497   : > { %v3430_v47 = vmax.f32 %v3428_v19, %v3429_v14  ;;  %v3436_v31 = vrot.slane %v3435_v63, 1  ;;  %v3423_v9 = vmax.f32 %v3421_v2, %v3422_v1  ;;  %v3699_v6 = vmax.f32 %v3697_v36, %v3698_v40  ;;  %v4032_v19 = vld [vmem:[%s8630_s3 + $0x70] sm:$0xff]  ;;  %v4037_v1 = vld [vmem:[%s8630_s3 + $0x98] sm:$0xff] }
 0x498   : > { %v3688_v35 = vsel %vm1664_vm10, %v8266_v42, -inf  ;;  %v3701_v15 = vsel %vm1664_vm10, %v3458_v39, -inf  ;;  %v3704_v53 = vsel %vm1664_vm10, %v3465_v50, -inf  ;;  %v4470_v11 = vpack.c.bf16 %v4025_v46, %v4024_v37  ;;  %v4034_v39 = vld [vmem:[%s8630_s3 + $0x80] sm:$0xff]  ;;  %v4039_v37 = vld [vmem:[%s8630_s3 + $0xa8] sm:$0xff]  ;;  %v4041_v40 = vld [vmem:[%s8630_s3 + $0xb8] sm:$0xff] }
 0x499   : > { %v3437_v3 = vmax.f32 %v3435_v63, %v3436_v31  ;;  %v3689_v0 = vsel %vm1664_vm10, %v3430_v47, -inf  ;;  %v3702_v29 = vmax.f32 %v3700_v32, %v3701_v15  ;;  %v3703_v60 = vsel %vm1664_vm10, %v3423_v9, -inf  ;;  %v4038_v63 = vld [vmem:[%s8630_s3 + $0xa0] sm:$0xff]  ;;  %v4043_v9 = vld [vmem:[%s8630_s3 + $0xc8] sm:$0xff] }
 0x49a   : > { %v3705_v42 = vmax.f32 %v3703_v60, %v3704_v53  ;;  %v3762_v56 = vmax.f32 %v3696_v55, 0.0  ;;  %v3763_v16 = vmax.f32 %v3699_v6, 0.0  ;;  %v3690_v27 = vmax.f32 %v3688_v35, %v3689_v0  ;;  %4471 = vmatpush1.bf16.msra.mxu1 %v4470_v11  ;;  %v4036_v55 = vld [vmem:[%s8630_s3 + $0x90] sm:$0xff]  ;;  %v4042_v31 = vld [vmem:[%s8630_s3 + $0xc0] sm:$0xff] }
 0x49b   : > { %v3691_v28 = vsel %vm1664_vm10, %v8268_v38, -inf  ;;  %v3764_v33 = vmax.f32 %v3702_v29, 0.0  ;;  %v3692_v44 = vsel %vm1664_vm10, %v3437_v3, -inf  ;;  %4472 = vmatprep.subr.bf16.mxu1 %v4589_v48  ;;  %v4473_v54 = vpack.c.bf16 %v4027_v24, %v4026_v43 }
 0x49c   : > { %v3765_v45 = vmax.f32 %v3705_v42, 0.0  ;;  %v3854_v52 = vsel %vm3794_vm6, %v3763_v16, %v3762_v56  ;;  %v3693_v58 = vmax.f32 %v3691_v28, %v3692_v44  ;;  %v3760_v57 = vmax.f32 %v3690_v27, 0.0 }
 0x49d   : > { %v3855_v38 = vsel %vm3796_vm5, %v3764_v33, %v3854_v52  ;;  %v4476_v34 = vpack.c.bf16 %v4029_v4, %v4028_v17  ;;  %v4479_v2 = vpack.c.bf16 %v4031_v10, %v4030_v22  ;;  %v4482_v13 = vpack.c.bf16 %v4033_v62, %v4032_v19  ;;  %v4044_v52 = vld [vmem:[%s8630_s3 + $0xd0] sm:$0xff] }
 0x49e   : > { %v8347_v49 = vsel %vm3798_vm12, %v3765_v45, %v3855_v38  ;;  %v3761_v12 = vmax.f32 %v3693_v58, 0.0  ;;  %4474 = vmatpush1.bf16.msra.mxu1 %v4473_v54  ;;  %v4485_v25 = vpack.c.bf16 %v4035_v41, %v4034_v39  ;;  %v4488_v14 = vpack.c.bf16 %v4037_v1, %v4036_v55 }
 0x49f   : > { %3912 = vrot.lane.b32.xlu0 %v8347_v49, %s4586_s9  ;;  %4475 = vmatprep.subr.bf16.mxu1 %v4589_v48  ;;  %v4491_v46 = vpack.c.bf16 %v4039_v37, %v4038_v63  ;;  %v4497_v43 = vpack.c.bf16 %v4043_v9, %v4042_v31  ;;  %v4590_v45 = vmov 0.0  }
 0x4a0   : > { %v3806_v23 = vsel %vm3794_vm6, %v3761_v12, %v3760_v57  ;;  %v3826_v20 = vsel %vm3794_vm6, %v3762_v56, %v3761_v12 }
 0x4a1   : > { %v3807_v7 = vsel %vm3796_vm5, %v3762_v56, %v3806_v23  ;;  %v3827_v8 = vsel %vm3796_vm5, %v3763_v16, %v3826_v20 }
 0x4a2   : > { %v8363_v21 = vsel %vm3798_vm12, %v3763_v16, %v3807_v7  ;;  %v8366_v30 = vsel %vm3798_vm12, %v3764_v33, %v3827_v8  ;;  %4477 = vmatpush1.bf16.msra.mxu1 %v4476_v34 }
 0x4a3   : > { %3929 = vrot.lane.b32.xlu1 %v8363_v21, %s4572_s27  ;;  %4478 = vmatprep.subr.bf16.mxu1 %v4589_v48 }
 0x4a6   : > { %4480 = vmatpush1.bf16.msra.mxu1 %v4479_v2 }
 0x4a7   : > { %3878 = vrot.lane.b32.xlu1 %v8239_v61, %s4587_s13  ;;  %4481 = vmatprep.subr.bf16.mxu1 %v4589_v48 }
 0x4aa   : > { %4483 = vmatpush1.bf16.msra.mxu1 %v4482_v13 }
 0x4ab   : > { %3945 = vrot.lane.b32.xlu1 %v8366_v30, %s4578_s8  ;;  %4484 = vmatprep.subr.bf16.mxu1 %v4589_v48 }
 0x4ae   : > { %4486 = vmatpush1.bf16.msra.mxu1 %v4485_v25 }
 0x4af   : > { %3894 = vrot.lane.b32.xlu1 %v8247_v26, %s4588_s17  ;;  %4487 = vmatprep.subr.bf16.mxu1 %v4589_v48  ;;  %v4040_v26 = vld [vmem:[%s8630_s3 + $0xb0] sm:$0xff] }
 0x4b0   : > { %v4494_v50 = vpack.c.bf16 %v4041_v40, %v4040_v26 }
 0x4b2   : > { %4489 = vmatpush1.bf16.msra.mxu1 %v4488_v14 }
 0x4b3   : > { %3961 = vrot.lane.b32.xlu1 %v8347_v49, %s4584_s25  ;;  %4490 = vmatprep.subr.bf16.mxu1 %v4589_v48  ;;  %v4429_v32 = vpop.f32.mrb[12].mxu0 }
 0x4b4   : > { %v2710_v36 = vadd.f32 %v8214_v5, %v4429_v32  ;;  %v2704_v47 = vpop.f32.mrb[13].mxu0 }
 0x4b5   : > { %v2705_v6 = vadd.f32 %v8214_v5, %v2704_v47 }
 0x4b6   : > { %4492 = vmatpush1.bf16.msra.mxu1 %v4491_v46  ;;  %v2972_v35 = vcombine.high %v2710_v36, %v2710_v36  ;;  %v2979_v15 = vrot.slane %v2710_v36, %v7832_v18 }
 0x4b7   : > { %3835 = vrot.lane.b32.xlu1 %v8366_v30, %s4574_s29  ;;  %4493 = vmatprep.subr.bf16.mxu1 %v4589_v48  ;;  %v2955_v53 = vcombine.high %v2705_v6, %v2705_v6  ;;  %v2962_v11 = vrot.slane %v2705_v6, %v7832_v18 }
 0x4b8   : > { %v2986_v24 = vrot.slane %v2972_v35, %v7832_v18  ;;  %v2987_v3 = vcombine.high %v2979_v15, %v2979_v15  ;;  %v3494_v0 = vsel %vm3129_vm7, %v2979_v15, -inf }
 0x4b9   : > { %v3495_v29 = vrot.slane %v3494_v0, 4  ;;  %v2969_v60 = vrot.slane %v2955_v53, %v7832_v18  ;;  %v2970_v42 = vcombine.high %v2962_v11, %v2962_v11  ;;  %v3466_v56 = vsel %vm3129_vm7, %v2962_v11, -inf }
 0x4ba   : > { %4495 = vmatpush1.bf16.msra.mxu1 %v4494_v50  ;;  %v2988_v16 = vcombine.high %v2986_v24, %v2986_v24  ;;  %v3501_v27 = vsel %vm3129_vm7, %v2987_v3, -inf  ;;  %v3508_v28 = vsel %vm3129_vm7, %v2986_v24, -inf  ;;  %v3467_v33 = vrot.slane %v3466_v56, 4 }
 0x4bb   : > { %3863 = vrot.lane.b32.xlu1 %v8347_v49, %s4580_s10  ;;  %4496 = vmatprep.subr.bf16.mxu1 %v4589_v48  ;;  %v3509_v44 = vrot.slane %v3508_v28, 4  ;;  %v3496_v54 = vmax.f32 %v3494_v0, %v3495_v29  ;;  %v3473_v48 = vsel %vm3129_vm7, %v2970_v42, -inf  ;;  %v3502_v58 = vrot.slane %v3501_v27, 4 }
 0x4bc   : > { %v3515_v17 = vsel %vm3129_vm7, %v2988_v16, -inf  ;;  %v3468_v4 = vmax.f32 %v3466_v56, %v3467_v33  ;;  %v2971_v57 = vcombine.high %v2969_v60, %v2969_v60  ;;  %v3474_v34 = vrot.slane %v3473_v48, 4 }
 0x4bd   : > { %v3510_v38 = vmax.f32 %v3508_v28, %v3509_v44  ;;  %v3516_v49 = vrot.slane %v3515_v17, 4  ;;  %v3480_v22 = vsel %vm3129_vm7, %v2969_v60, -inf  ;;  %v3497_v20 = vrot.slane %v3496_v54, 2 }
 0x4be   : > { %4498 = vmatpush1.bf16.msra.mxu1 %v4497_v43  ;;  %v3469_v12 = vrot.slane %v3468_v4, 2  ;;  %v3475_v8 = vmax.f32 %v3473_v48, %v3474_v34  ;;  %v3503_v2 = vmax.f32 %v3501_v27, %v3502_v58  ;;  %v3481_v62 = vrot.slane %v3480_v22, 4 }
 0x4bf   : > { %4115 = vmatprep.subr.mxu1 %v4590_v45  ;;  %v3511_v10 = vrot.slane %v3510_v38, 2  ;;  %v3517_v23 = vmax.f32 %v3515_v17, %v3516_v49  ;;  %v3487_v13 = vsel %vm3129_vm7, %v2971_v57, -inf  ;;  %v3498_v1 = vmax.f32 %v3496_v54, %v3497_v20 }
 0x4c0   : > { %v3470_v7 = vmax.f32 %v3468_v4, %v3469_v12  ;;  %v3476_v25 = vrot.slane %v3475_v8, 2  ;;  %v3488_v63 = vrot.slane %v3487_v13, 4  ;;  %v3504_v46 = vrot.slane %v3503_v2, 2 }
 0x4c1   : > { %v3512_v19 = vmax.f32 %v3510_v38, %v3511_v10  ;;  %v3518_v39 = vrot.slane %v3517_v23, 2  ;;  %v3482_v40 = vmax.f32 %v3480_v22, %v3481_v62  ;;  %v3499_v11 = vrot.slane %v3498_v1, 1 }
 0x4c2   : > { %4116 = vmatpush1.msra.mxu1 %v4044_v52  ;;  %v3471_v41 = vrot.slane %v3470_v7, 1  ;;  %v3477_v47 = vmax.f32 %v3475_v8, %v3476_v25  ;;  %v3489_v6 = vmax.f32 %v3487_v13, %v3488_v63  ;;  %v8452_v43 = vmax.f32 %v3503_v2, %v3504_v46 }
 0x4c3   : > { %v3513_v55 = vrot.slane %v3512_v19, 1  ;;  %v3519_v36 = vmax.f32 %v3517_v23, %v3518_v39  ;;  %v3483_v24 = vrot.slane %v3482_v40, 2  ;;  %v3500_v28 = vmax.f32 %v3498_v1, %v3499_v11 }
 0x4c4   : > { %v3472_v14 = vmax.f32 %v3470_v7, %v3471_v41  ;;  %v3478_v0 = vrot.slane %v3477_v47, 1  ;;  %v3490_v42 = vrot.slane %v3489_v6, 2  ;;  %v3506_v54 = vrot.slane %v8452_v43, 1 }
 0x4c5   : > { %v3514_v26 = vmax.f32 %v3512_v19, %v3513_v55  ;;  %v3520_v3 = vrot.slane %v3519_v36, 1  ;;  %v3484_v48 = vmax.f32 %v3482_v40, %v3483_v24  ;;  %v3718_v40 = vsel %vm1664_vm10, %v3500_v28, -inf }
 0x4c6   : > { %v8444_v31 = vsel %vm1664_vm10, %v3472_v14, -inf  ;;  %v3479_v4 = vmax.f32 %v3477_v47, %v3478_v0  ;;  %v3491_v49 = vmax.f32 %v3489_v6, %v3490_v42 }
 0x4c7   : > { %v4432_v37 = vpop.f32.mrb[14].mxu0  ;;  %v8447_v9 = vsel %vm1664_vm10, %v3514_v26, -inf  ;;  %v3521_v17 = vmax.f32 %v3519_v36, %v3520_v3  ;;  %v3485_v7 = vrot.slane %v3484_v48, 1 }
 0x4c8   : > { %v2720_v32 = vadd.f32 %v8214_v5, %v4432_v37  ;;  %v2714_v50 = vpop.f32.mrb[15].mxu0  ;;  %v3708_v35 = vmax.f32 %v8444_v31, %v8447_v9  ;;  %v3709_v8 = vsel %vm1664_vm10, %v3479_v4, -inf  ;;  %v3492_v14 = vrot.slane %v3491_v49, 1 }
 0x4c9   : > { %v2715_v53 = vadd.f32 %v8214_v5, %v2714_v50  ;;  %v3710_v19 = vsel %vm1664_vm10, %v3521_v17, -inf }
 0x4ca   : > { %v3006_v15 = vcombine.high %v2720_v32, %v2720_v32  ;;  %v3013_v56 = vrot.slane %v2720_v32, %v7832_v18  ;;  %v3486_v32 = vmax.f32 %v3484_v48, %v3485_v7  ;;  %v3711_v36 = vmax.f32 %v3709_v8, %v3710_v19 }
 0x4cb   : > { %v2989_v29 = vcombine.high %v2715_v53, %v2715_v53  ;;  %v2996_v60 = vrot.slane %v2715_v53, %v7832_v18  ;;  %v3493_v0 = vmax.f32 %v3491_v49, %v3492_v14 }
 0x4cc   : > { %v3020_v16 = vrot.slane %v3006_v15, %v7832_v18  ;;  %v3550_v12 = vsel %vm3129_vm7, %v3013_v56, -inf  ;;  %v3021_v2 = vcombine.high %v3013_v56, %v3013_v56  ;;  %v3767_v28 = vmax.f32 %v3711_v36, 0.0 }
 0x4cd   : > { %v3003_v27 = vrot.slane %v2989_v29, %v7832_v18  ;;  %v3004_v33 = vcombine.high %v2996_v60, %v2996_v60  ;;  %v3522_v44 = vsel %vm3129_vm7, %v2996_v60, -inf  ;;  %v3551_v25 = vrot.slane %v3550_v12, 4 }
 0x4ce   : > { %v3523_v52 = vrot.slane %v3522_v44, 4  ;;  %v3022_v57 = vcombine.high %v3020_v16, %v3020_v16  ;;  %v3564_v34 = vsel %vm3129_vm7, %v3020_v16, -inf  ;;  %v3557_v50 = vsel %vm3129_vm7, %v3021_v2, -inf }
 0x4cf   : > { %v3005_v45 = vcombine.high %v3003_v27, %v3003_v27  ;;  %v3529_v58 = vsel %vm3129_vm7, %v3004_v33, -inf  ;;  %v3536_v38 = vsel %vm3129_vm7, %v3003_v27, -inf  ;;  %v3565_v55 = vrot.slane %v3564_v34, 4 }
 0x4d0   : > { %v3524_v22 = vmax.f32 %v3522_v44, %v3523_v52  ;;  %v3530_v10 = vrot.slane %v3529_v58, 4  ;;  %v3537_v23 = vrot.slane %v3536_v38, 4  ;;  %v3571_v1 = vsel %vm3129_vm7, %v3022_v57, -inf }
 0x4d1   : > { %v3543_v20 = vsel %vm3129_vm7, %v3005_v45, -inf  ;;  %v3552_v11 = vmax.f32 %v3550_v12, %v3551_v25  ;;  %v3566_v24 = vmax.f32 %v3564_v34, %v3565_v55  ;;  %v3572_v3 = vrot.slane %v3571_v1, 4 }
 0x4d2   : > { %v3525_v62 = vrot.slane %v3524_v22, 2  ;;  %v3531_v13 = vmax.f32 %v3529_v58, %v3530_v10  ;;  %v3538_v39 = vmax.f32 %v3536_v38, %v3537_v23  ;;  %v3544_v41 = vrot.slane %v3543_v20, 4 }
 0x4d3   : > { %v3712_v16 = vsel %vm1664_vm10, %v3486_v32, -inf  ;;  %v3766_v27 = vmax.f32 %v3708_v35, 0.0  ;;  %v3507_v33 = vmax.f32 %v8452_v43, %v3506_v54  ;;  %v3558_v45 = vrot.slane %v3557_v50, 4 }
 0x4d4   : > { %v3526_v63 = vmax.f32 %v3524_v22, %v3525_v62  ;;  %v3532_v37 = vrot.slane %v3531_v13, 2  ;;  %v3539_v46 = vrot.slane %v3538_v39, 2  ;;  %v3545_v26 = vmax.f32 %v3543_v20, %v3544_v41 }
 0x4d5   : > { %v3573_v52 = vmax.f32 %v3571_v1, %v3572_v3  ;;  %v3873_v38 = vsel %vm3794_vm6, %v3767_v28, %v3766_v27  ;;  %v3715_v49 = vsel %vm1664_vm10, %v3493_v0, -inf  ;;  %v3567_v54 = vrot.slane %v3566_v24, 2 }
 0x4d6   : > { %v3527_v47 = vrot.slane %v3526_v63, 1  ;;  %v3533_v6 = vmax.f32 %v3531_v13, %v3532_v37  ;;  %v3540_v15 = vmax.f32 %v3538_v39, %v3539_v46  ;;  %v3546_v53 = vrot.slane %v3545_v26, 2 }
 0x4d7   : > { %v3721_v34 = vsel %vm1664_vm10, %v3507_v33, -inf  ;;  %v3553_v10 = vrot.slane %v3552_v11, 2  ;;  %v3559_v8 = vmax.f32 %v3557_v50, %v3558_v45  ;;  %v3574_v2 = vrot.slane %v3573_v52, 2 }
 0x4d8   : > { %v3528_v29 = vmax.f32 %v3526_v63, %v3527_v47  ;;  %v3534_v60 = vrot.slane %v3533_v6, 1  ;;  %v3541_v42 = vrot.slane %v3540_v15, 1  ;;  %v3547_v56 = vmax.f32 %v3545_v26, %v3546_v53 }
 0x4d9   : > { %v3568_v55 = vmax.f32 %v3566_v24, %v3567_v54  ;;  %v3554_v37 = vmax.f32 %v3552_v11, %v3553_v10  ;;  %v3560_v46 = vrot.slane %v3559_v8, 2  ;;  %v3575_v26 = vmax.f32 %v3573_v52, %v3574_v2 }
 0x4da   : > { %v3542_v44 = vmax.f32 %v3540_v15, %v3541_v42  ;;  %v3713_v17 = vsel %vm1664_vm10, %v3528_v29, -inf  ;;  %v3535_v4 = vmax.f32 %v3533_v6, %v3534_v60  ;;  %v3548_v48 = vrot.slane %v3547_v56, 1 }
 0x4db   : > { %v3714_v58 = vmax.f32 %v3712_v16, %v3713_v17  ;;  %v3555_v32 = vrot.slane %v3554_v37, 1  ;;  %v8499_v50 = vmax.f32 %v3559_v8, %v3560_v46  ;;  %v3576_v47 = vrot.slane %v3575_v26, 1 }
 0x4dc   : > { %v3716_v57 = vsel %vm1664_vm10, %v3535_v4, -inf  ;;  %v3549_v12 = vmax.f32 %v3547_v56, %v3548_v48  ;;  %v3719_v31 = vsel %vm1664_vm10, %v3542_v44, -inf }
 0x4dd   : > { %v3717_v9 = vmax.f32 %v3715_v49, %v3716_v57  ;;  %v3768_v35 = vmax.f32 %v3714_v58, 0.0  ;;  %v3720_v43 = vmax.f32 %v3718_v40, %v3719_v31  ;;  %v3569_v40 = vrot.slane %v3568_v55, 1 }
 0x4de   : > { %v3722_v22 = vsel %vm1664_vm10, %v3549_v12, -inf  ;;  %v8505_v24 = vmax.f32 %v3554_v37, %v3555_v32  ;;  %v3562_v29 = vrot.slane %v8499_v50, 1  ;;  %v3577_v56 = vmax.f32 %v3575_v26, %v3576_v47  ;;  %v8526_v47 = vpop.permute.xlu0 %3829 }
 0x4df   : > { %v3769_v23 = vmax.f32 %v3717_v9, 0.0  ;;  %v3874_v20 = vsel %vm3796_vm5, %v3768_v35, %v3873_v38  ;;  %v3723_v7 = vmax.f32 %v3721_v34, %v3722_v22  ;;  %v3770_v19 = vmax.f32 %v3720_v43, 0.0 }
 0x4e0   : > { %v3889_v62 = vsel %vm3794_vm6, %v3768_v35, %v3767_v28  ;;  %v3570_v6 = vmax.f32 %v3568_v55, %v3569_v40 }
 0x4e1   : > { %v8485_v13 = vsel %vm3798_vm12, %v3769_v23, %v3874_v20  ;;  %v3771_v39 = vmax.f32 %v3723_v7, 0.0  ;;  %v3905_v41 = vsel %vm3794_vm6, %v3769_v23, %v3768_v35  ;;  %v3890_v25 = vsel %vm3796_vm5, %v3769_v23, %v3889_v62 }
 0x4e2   : > { %3931 = vrot.lane.b32.xlu0 %v8485_v13, %s4572_s27  ;;  %v3906_v1 = vsel %vm3796_vm5, %v3770_v19, %v3905_v41  ;;  %v8493_v14 = vsel %vm3798_vm12, %v3770_v19, %v3890_v25 }
 0x4e3   : > { %v3907_v63 = vsel %vm3798_vm12, %v3771_v39, %v3906_v1 }
 0x4e4   : > { %3914 = vrot.lane.b32.xlu1 %v3907_v63, %s4586_s9 }
 0x4e6   : > { %3880 = vrot.lane.b32.xlu0 %v8363_v21, %s4587_s13 }
 0x4ea   : > { %3947 = vrot.lane.b32.xlu0 %v8493_v14, %s4578_s8 }
 0x4ed   : > { %v4435_v36 = vpop.f32.mrb[16].mxu0 }
 0x4ee   : > { %v2730_v15 = vadd.f32 %v8214_v5, %v4435_v36  ;;  %v2724_v53 = vpop.f32.mrb[17].mxu0  ;;  %3896 = vrot.lane.b32.xlu0 %v8366_v30, %s4588_s17 }
 0x4ef   : > { %v2725_v11 = vadd.f32 %v8214_v5, %v2724_v53  ;;  %v8515_v5 = vsel %vm1664_vm10, %v3570_v6, -inf }
 0x4f0   : > { %v3040_v3 = vcombine.high %v2730_v15, %v2730_v15  ;;  %v3047_v0 = vrot.slane %v2730_v15, %v7832_v18 }
 0x4f1   : > { %v3023_v60 = vcombine.high %v2725_v11, %v2725_v11  ;;  %v3030_v42 = vrot.slane %v2725_v11, %v7832_v18 }
 0x4f2   : > { %v3054_v16 = vrot.slane %v3040_v3, %v7832_v18  ;;  %v3055_v27 = vcombine.high %v3047_v0, %v3047_v0  ;;  %v3606_v28 = vsel %vm3129_vm7, %v3047_v0, -inf  ;;  %3963 = vrot.lane.b32.xlu0 %v3907_v63, %s4584_s25 }
 0x4f3   : > { %v3607_v33 = vrot.slane %v3606_v28, 4  ;;  %v3037_v44 = vrot.slane %v3023_v60, %v7832_v18  ;;  %v3038_v17 = vcombine.high %v3030_v42, %v3030_v42  ;;  %v3578_v4 = vsel %vm3129_vm7, %v3030_v42, -inf }
 0x4f4   : > { %v3056_v48 = vcombine.high %v3054_v16, %v3054_v16  ;;  %v3613_v45 = vsel %vm3129_vm7, %v3055_v27, -inf  ;;  %v3620_v52 = vsel %vm3129_vm7, %v3054_v16, -inf  ;;  %v3579_v58 = vrot.slane %v3578_v4, 4 }
 0x4f5   : > { %v3608_v38 = vmax.f32 %v3606_v28, %v3607_v33  ;;  %v3614_v49 = vrot.slane %v3613_v45, 4  ;;  %v3621_v57 = vrot.slane %v3620_v52, 4  ;;  %v3039_v12 = vcombine.high %v3037_v44, %v3037_v44 }
 0x4f6   : > { %v3627_v30 = vsel %vm3129_vm7, %v3056_v48, -inf  ;;  %v3580_v31 = vmax.f32 %v3578_v4, %v3579_v58  ;;  %v3585_v9 = vsel %vm3129_vm7, %v3038_v17, -inf  ;;  %v3592_v35 = vsel %vm3129_vm7, %v3037_v44, -inf }
 0x4f7   : > { %v3609_v43 = vrot.slane %v3608_v38, 2  ;;  %v3615_v54 = vmax.f32 %v3613_v45, %v3614_v49  ;;  %v3622_v34 = vmax.f32 %v3620_v52, %v3621_v57  ;;  %v3628_v22 = vrot.slane %v3627_v30, 4 }
 0x4f8   : > { %v3581_v10 = vrot.slane %v3580_v31, 2  ;;  %v3586_v23 = vrot.slane %v3585_v9, 4  ;;  %v3593_v20 = vrot.slane %v3592_v35, 4  ;;  %v3599_v7 = vsel %vm3129_vm7, %v3039_v12, -inf }
 0x4f9   : > { %v3610_v8 = vmax.f32 %v3608_v38, %v3609_v43  ;;  %v3616_v2 = vrot.slane %v3615_v54, 2  ;;  %v3623_v19 = vrot.slane %v3622_v34, 2  ;;  %v3629_v62 = vmax.f32 %v3627_v30, %v3628_v22  ;;  %v3858_v30 = vpop.permute.xlu0 %3857 }
 0x4fa   : > { %v3582_v39 = vmax.f32 %v3580_v31, %v3581_v10  ;;  %v3587_v41 = vmax.f32 %v3585_v9, %v3586_v23  ;;  %v3594_v25 = vmax.f32 %v3592_v35, %v3593_v20  ;;  %v3600_v55 = vrot.slane %v3599_v7, 4 }
 0x4fb   : > { %v3611_v1 = vrot.slane %v3610_v8, 1  ;;  %v3617_v37 = vmax.f32 %v3615_v54, %v3616_v2  ;;  %v3624_v63 = vmax.f32 %v3622_v34, %v3623_v19  ;;  %v3630_v46 = vrot.slane %v3629_v62, 2  ;;  %v3832_v19 = vpop.permute.xlu1 %3831 }
 0x4fc   : > { %v3583_v26 = vrot.slane %v3582_v39, 1  ;;  %v3588_v40 = vrot.slane %v3587_v41, 2  ;;  %v3595_v32 = vrot.slane %v3594_v25, 2  ;;  %v3601_v36 = vmax.f32 %v3599_v7, %v3600_v55 }
 0x4fd   : > { %v3612_v6 = vmax.f32 %v3610_v8, %v3611_v1  ;;  %v3618_v15 = vrot.slane %v3617_v37, 1  ;;  %v3625_v53 = vrot.slane %v3624_v63, 1  ;;  %v3631_v11 = vmax.f32 %v3629_v62, %v3630_v46  ;;  %v3909_v2 = vpop.permute.xlu0 %3908 }
 0x4fe   : > { %v3584_v3 = vmax.f32 %v3582_v39, %v3583_v26  ;;  %v3589_v0 = vmax.f32 %v3587_v41, %v3588_v40  ;;  %v3596_v60 = vmax.f32 %v3594_v25, %v3595_v32  ;;  %v3602_v42 = vrot.slane %v3601_v36, 2 }
 0x4ff   : > { %v3731_v16 = vsel %vm1664_vm10, %v3612_v6, -inf  ;;  %v3619_v27 = vmax.f32 %v3617_v37, %v3618_v15  ;;  %v3733_v28 = vsel %vm1664_vm10, %v3577_v56, -inf  ;;  %v3626_v33 = vmax.f32 %v3624_v63, %v3625_v53  ;;  %v3860_v32 = vpop.permute.xlu1 %3859 }
 0x500   : > { %v3590_v44 = vrot.slane %v3589_v0, 1  ;;  %v3597_v17 = vrot.slane %v3596_v60, 1  ;;  %v3603_v4 = vmax.f32 %v3601_v36, %v3602_v42  ;;  %v3732_v48 = vmax.f32 %v8515_v5, %v3731_v16 }
 0x501   : > { %v3734_v45 = vsel %vm1664_vm10, %v3619_v27, -inf  ;;  %v3736_v52 = vsel %vm1664_vm10, %v3584_v3, -inf  ;;  %v3737_v58 = vsel %vm1664_vm10, %v3626_v33, -inf  ;;  %v3632_v38 = vrot.slane %v3631_v11, 1  ;;  %v3928_v37 = vpop.permute.xlu0 %3927 }
 0x502   : > { %v3563_v49 = vmax.f32 %v8499_v50, %v3562_v29  ;;  %v3598_v57 = vmax.f32 %v3596_v60, %v3597_v17  ;;  %v3604_v12 = vrot.slane %v3603_v4, 1  ;;  %v3735_v56 = vmax.f32 %v3733_v28, %v3734_v45 }
 0x503   : > { %v3724_v31 = vsel %vm1664_vm10, %v8505_v24, -inf  ;;  %v3738_v9 = vmax.f32 %v3736_v52, %v3737_v58  ;;  %v3591_v5 = vmax.f32 %v3589_v0, %v3590_v44  ;;  %v3633_v35 = vmax.f32 %v3631_v11, %v3632_v38  ;;  %v3911_v15 = vpop.permute.xlu1 %3910 }
 0x504   : > { %v3605_v43 = vmax.f32 %v3603_v4, %v3604_v12  ;;  %v3725_v54 = vsel %vm1664_vm10, %v3598_v57, -inf  ;;  %v3774_v34 = vmax.f32 %v3732_v48, 0.0  ;;  %v3775_v22 = vmax.f32 %v3735_v56, 0.0 }
 0x505   : > { %v3726_v10 = vmax.f32 %v3724_v31, %v3725_v54  ;;  %v3776_v23 = vmax.f32 %v3738_v9, 0.0  ;;  %v3739_v20 = vsel %vm1664_vm10, %v3591_v5, -inf  ;;  %v3740_v50 = vsel %vm1664_vm10, %v3633_v35, -inf  ;;  %v3877_v53 = vpop.permute.xlu0 %3876 }
 0x506   : > { %v3727_v29 = vsel %vm1664_vm10, %v3563_v49, -inf  ;;  %v3728_v7 = vsel %vm1664_vm10, %v3605_v43, -inf  ;;  %v3741_v8 = vmax.f32 %v3739_v20, %v3740_v50  ;;  %v3956_v24 = vsel %vm3794_vm6, %v3775_v22, %v3774_v34 }
 0x507   : > { %v3729_v62 = vmax.f32 %v3727_v29, %v3728_v7  ;;  %v3957_v39 = vsel %vm3796_vm5, %v3776_v23, %v3956_v24  ;;  %v3772_v25 = vmax.f32 %v3726_v10, 0.0  ;;  %v3971_v60 = vsel %vm1664_vm10, %v8048_v59, %v8526_v47 }
 0x508   : > { %v3777_v41 = vmax.f32 %v3741_v8, 0.0  ;;  %v3975_v27 = vsel %vm1814_vm1, %v3971_v60, %v3858_v30  ;;  %vm3989_vm7 = vcmask 982016  }
 0x509   : > { %v3773_v55 = vmax.f32 %v3729_v62, 0.0  ;;  %v3944_v3 = vpop.permute.xlu0 %3943  ;;  %v3980_v28 = vsel %vm3979_vm15, %v3975_v27, %v3877_v53 }
 0x50a   : > { %v3958_v1 = vsel %vm3798_vm12, %v3777_v41, %v3957_v39 }
 0x50b   : > { %v3924_v63 = vsel %vm3794_vm6, %v3773_v55, %v3772_v25  ;;  %v3940_v46 = vsel %vm3794_vm6, %v3774_v34, %v3773_v55 }
 0x50c   : > { %v3925_v26 = vsel %vm3796_vm5, %v3774_v34, %v3924_v63  ;;  %v3941_v40 = vsel %vm3796_vm5, %v3775_v22, %v3940_v46  ;;  %vm9677_vm5 = vcmask 130048  }
 0x50d   : > { %v3926_v36 = vsel %vm3798_vm12, %v3775_v22, %v3925_v26  ;;  %v3942_v6 = vsel %vm3798_vm12, %v3776_v23, %v3941_v40  ;;  %v3893_v42 = vpop.permute.xlu0 %3892  ;;  %v3994_v45 = vsel %vm9677_vm5, %v3909_v2, %v3928_v37  ;;  %vm9678_vm12 = vmmov %vm9677_vm5 }
 0x50e   : > { %3933 = vrot.lane.b32.xlu1 %v3926_v36, %s4572_s27  ;;  %v3998_v58 = vsel %vm1764_vm14, %v3994_v45, %v3944_v3  ;;  %vm9681_vm0 = vmmov %vm9677_vm5 }
 0x50f   : > { %vm9682_vm9 = vmmov %vm9681_vm0 }
 0x511   : > { %v3960_v4 = vpop.permute.xlu0 %3959 }
 0x512   : > { %3882 = vrot.lane.b32.xlu1 %v8485_v13, %s4587_s13  ;;  %v3972_v13 = vsel %vm1664_vm10, %v8182_v51, %v3832_v19  ;;  %v4002_v57 = vsel %vm9679_vm11, %v3998_v58, %v3960_v4 }
 0x513   : > { %v3976_v33 = vsel %vm1814_vm1, %v3972_v13, %v3860_v32 }
 0x515   : > { %v3930_v11 = vpop.permute.xlu1 %3929  ;;  %v3834_v30 = vpop.permute.xlu0 %3833 }
 0x516   : > { %3949 = vrot.lane.b32.xlu1 %v3942_v6, %s4578_s8  ;;  %v3995_v51 = vsel %vm9678_vm12, %v3911_v15, %v3930_v11  ;;  %v3973_v8 = vsel %vm1664_vm10, %v8239_v61, %v3834_v30  ;;  %v4341_v6 = vld [vmem:[%s8631_s4] ss:$0 sm:$0xff] }
 0x519   : > { %v3879_v0 = vpop.permute.xlu1 %3878  ;;  %v3862_v31 = vpop.permute.xlu0 %3861 }
 0x51a   : > { %3898 = vrot.lane.b32.xlu1 %v8493_v14, %s4588_s17  ;;  %v3985_v14 = vsel %vm3984_vm4, %v3980_v28, %v3893_v42  ;;  %v3981_v44 = vsel %vm3979_vm15, %v3976_v33, %v3879_v0  ;;  %v3977_v19 = vsel %vm1814_vm1, %v3973_v8, %v3862_v31 }
 0x51b   : > { %v3990_v17 = vsel %vm3989_vm7, %v3985_v14, %v3909_v2 }
 0x51d   : > { %v3946_v16 = vpop.permute.xlu1 %3945  ;;  %v3913_v9 = vpop.permute.xlu0 %3912 }
 0x51e   : > { %3965 = vrot.lane.b32.xlu1 %v3958_v1, %s4584_s25  ;;  %v3999_v38 = vsel %vm1764_vm14, %v3995_v51, %v3946_v16  ;;  %s4351_s25 = sshll.u32 %s9686_s19, 2 }
 0x51f   : > { %s8612_s17 = scalar_lea.vmem %s8632_s5, %s4351_s25 }
 0x521   : > { %v3895_v59 = vpop.permute.xlu1 %3894 }
 0x522   : > { %v3986_v47 = vsel %vm3984_vm4, %v3981_v44, %v3895_v59 }
 0x523   : > { %v3991_v48 = vsel %vm3989_vm7, %v3986_v47, %v3911_v15 }
 0x524   : > { %v4342_v52 = vcombine.low %v3990_v17, %v3991_v48 }
 0x525   : > { %v3962_v49 = vpop.permute.xlu1 %3961 }
 0x526   : > { %v4003_v12 = vsel %vm9680_vm13, %v3999_v38, %v3962_v49 }
 0x527   : > { %v4343_v56 = vcombine.low %v4002_v57, %v4003_v12 }
 0x529   : > { %4346 = vmatprep.mubr.msk.f32.mxu1 %vm4058_vm8, %v4343_v56  ;;  %v3836_v5 = vpop.permute.xlu1 %3835 }
 0x52a   : > { %4128 = vmatmul.mubr.f32.vlgmr.msra.gmra.mrb[0].mxu1 %v4342_v52  ;;  %v3974_v29 = vsel %vm1664_vm10, %v8363_v21, %v3836_v5  ;;  %vm9683_vm10 = vmmov %vm9676_vm2 }
 0x52d   : > { %v3864_v43 = vpop.permute.xlu1 %3863 }
 0x52e   : > { %v3978_v7 = vsel %vm1814_vm1, %v3974_v29, %v3864_v43  ;;  %vm9684_vm1 = vmmov %vm9676_vm2 }
 0x554   : > { %v3932_v35 = vpop.permute.xlu0 %3931 }
 0x555   : > { %v3996_v25 = vsel %vm9681_vm0, %v3913_v9, %v3932_v35 }
 0x556   : > { %v3915_v54 = vpop.permute.xlu1 %3914 }
 0x558   : > { %v3881_v34 = vpop.permute.xlu0 %3880 }
 0x559   : > { %v3982_v39 = vsel %vm3979_vm15, %v3977_v19, %v3881_v34 }
 0x55c   : > { %v3948_v10 = vpop.permute.xlu0 %3947 }
 0x55d   : > { %v4000_v1 = vsel %vm1764_vm14, %v3996_v25, %v3948_v10 }
 0x560   : > { %v3897_v20 = vpop.permute.xlu0 %3896 }
 0x561   : > { %v3987_v55 = vsel %vm3984_vm4, %v3982_v39, %v3897_v20 }
 0x562   : > { %v3992_v40 = vsel %vm3989_vm7, %v3987_v55, %v3913_v9 }
 0x564   : > { %v3964_v41 = vpop.permute.xlu0 %3963 }
 0x565   : > { %v4004_v46 = vsel %vm9683_vm10, %v4000_v1, %v3964_v41 }
 0x580   : > { %v3934_v22 = vpop.permute.xlu1 %3933 }
 0x581   : > { %v3997_v21 = vsel %vm9682_vm9, %v3915_v54, %v3934_v22 }
 0x584   : > { %v3883_v23 = vpop.permute.xlu1 %3882 }
 0x585   : > { %v3983_v24 = vsel %vm3979_vm15, %v3978_v7, %v3883_v23 }
 0x588   : > { %v3950_v50 = vpop.permute.xlu1 %3949 }
 0x589   : > { %v4001_v61 = vsel %vm1764_vm14, %v3997_v21, %v3950_v50  ;;  %vm4182_vm14 = vcmask 1041408  }
 0x58c   : > { %v3899_v2 = vpop.permute.xlu1 %3898 }
 0x58d   : > { %v3988_v62 = vsel %vm3984_vm4, %v3983_v24, %v3899_v2 }
 0x58e   : > { %v3993_v37 = vsel %vm3989_vm7, %v3988_v62, %v3915_v54 }
 0x58f   : > { %v4344_v36 = vcombine.low %v3992_v40, %v3993_v37 }
 0x590   : > { %v3966_v63 = vpop.permute.xlu1 %3965 }
 0x591   : > { %v4005_v26 = vsel %vm9684_vm1, %v4001_v61, %v3966_v63 }
 0x592   : > { %v4345_v32 = vcombine.low %v4004_v46, %v4005_v26 }
 0x594   : > { %4347 = vmatprep.mubr.msk.f32.mxu1 %vm4058_vm8, %v4345_v32 }
 0x595   : > { %4133 = vmatmul.mubr.f32.gmra.mrb[2].mxu1 %v4344_v36 }
 0x5fd   : > { %v4129_v15 = vpop.f32.mrb[0].mxu1 }
 0x5fe   : > { %v4130_v53 = vadd.f32 %v4341_v6, %v4129_v15  ;;  %v4131_v11 = vpop.f32.mrb[1].mxu1 }
 0x600   : > { %v4140_v3 = vcombine.high %v4130_v53, %v4130_v53  ;;  %v4147_v0 = vrot.slane %v4130_v53, %v7832_v18 }
 0x602   : > { %v4154_v60 = vrot.slane %v4140_v3, %v7832_v18  ;;  %v4155_v42 = vcombine.high %v4147_v0, %v4147_v0  ;;  %v4183_v16 = vsel %vm4182_vm14, %v4147_v0, -inf }
 0x603   : > { %v4184_v27 = vrot.slane %v4183_v16, 4 }
 0x604   : > { %v4156_v13 = vcombine.high %v4154_v60, %v4154_v60  ;;  %v4190_v28 = vsel %vm4182_vm14, %v4155_v42, -inf  ;;  %v4197_v33 = vsel %vm4182_vm14, %v4154_v60, -inf }
 0x605   : > { %v4185_v14 = vmax.f32 %v4183_v16, %v4184_v27  ;;  %v4191_v44 = vrot.slane %v4190_v28, 4  ;;  %v4198_v59 = vrot.slane %v4197_v33, 4 }
 0x606   : > { %v4204_v47 = vsel %vm4182_vm14, %v4156_v13, -inf }
 0x607   : > { %v4186_v17 = vrot.slane %v4185_v14, 2  ;;  %v4192_v4 = vmax.f32 %v4190_v28, %v4191_v44  ;;  %v4199_v48 = vmax.f32 %v4197_v33, %v4198_v59  ;;  %v4205_v45 = vrot.slane %v4204_v47, 4 }
 0x609   : > { %v4187_v51 = vmax.f32 %v4185_v14, %v4186_v17  ;;  %v4193_v52 = vrot.slane %v4192_v4, 2  ;;  %v4200_v58 = vrot.slane %v4199_v48, 2  ;;  %v4206_v38 = vmax.f32 %v4204_v47, %v4205_v45 }
 0x60b   : > { %v4188_v49 = vrot.slane %v4187_v51, 1  ;;  %v4194_v57 = vmax.f32 %v4192_v4, %v4193_v52  ;;  %v4201_v12 = vmax.f32 %v4199_v48, %v4200_v58  ;;  %v4207_v56 = vrot.slane %v4206_v38, 2 }
 0x60d   : > { %v4195_v30 = vrot.slane %v4194_v57, 1  ;;  %v4202_v31 = vrot.slane %v4201_v12, 1  ;;  %v4208_v9 = vmax.f32 %v4206_v38, %v4207_v56  ;;  %v4189_v5 = vmax.f32 %v4187_v51, %v4188_v49 }
 0x60f   : > { %v4203_v35 = vmax.f32 %v4201_v12, %v4202_v31  ;;  %v4209_v43 = vrot.slane %v4208_v9, 1  ;;  %v4196_v54 = vmax.f32 %v4194_v57, %v4195_v30 }
 0x611   : > { %v4210_v34 = vmax.f32 %v4208_v9, %v4209_v43  ;;  %v4239_v22 = vmax.f32 %v4189_v5, %v4203_v35 }
 0x613   : > { %v4240_v10 = vmax.f32 %v4196_v54, %v4210_v34  ;;  %v4243_v23 = vmax.f32 %v4239_v22, 0.0 }
 0x615   : > { %v4244_v20 = vmax.f32 %v4240_v10, 0.0 }
 0x617   : > { %v4251_v50 = vsel %vm3794_vm6, %v4244_v20, %v4243_v23 }
 0x618   : > { %4255 = vst [vmem:[%s8612_s17] sm:$0x3] %v4251_v50 }
 0x668   : > { %v4134_v29 = vpop.f32.mrb[2].mxu1 }
 0x669   : > { %v4135_v7 = vadd.f32 %v4341_v6, %v4134_v29  ;;  %v4136_v8 = vpop.f32.mrb[3].mxu1 }
 0x66b   : > { %v4157_v24 = vcombine.high %v4135_v7, %v4135_v7  ;;  %v4164_v2 = vrot.slane %v4135_v7, %v7832_v18 }
 0x66d   : > { %v4171_v19 = vrot.slane %v4157_v24, %v7832_v18  ;;  %v4172_v62 = vcombine.high %v4164_v2, %v4164_v2  ;;  %v4211_v39 = vsel %vm4182_vm14, %v4164_v2, -inf }
 0x66e   : > { %v4212_v41 = vrot.slane %v4211_v39, 4 }
 0x66f   : > { %v4173_v25 = vcombine.high %v4171_v19, %v4171_v19  ;;  %v4218_v55 = vsel %vm4182_vm14, %v4172_v62, -inf  ;;  %v4225_v21 = vsel %vm4182_vm14, %v4171_v19, -inf }
 0x670   : > { %v4213_v1 = vmax.f32 %v4211_v39, %v4212_v41  ;;  %v4219_v61 = vrot.slane %v4218_v55, 4  ;;  %v4226_v37 = vrot.slane %v4225_v21, 4 }
 0x671   : > { %v4232_v63 = vsel %vm4182_vm14, %v4173_v25, -inf }
 0x672   : > { %v4214_v46 = vrot.slane %v4213_v1, 2  ;;  %v4220_v26 = vmax.f32 %v4218_v55, %v4219_v61  ;;  %v4227_v40 = vmax.f32 %v4225_v21, %v4226_v37  ;;  %v4233_v32 = vrot.slane %v4232_v63, 4 }
 0x674   : > { %v4215_v36 = vmax.f32 %v4213_v1, %v4214_v46  ;;  %v4221_v18 = vrot.slane %v4220_v26, 2  ;;  %v4228_v6 = vrot.slane %v4227_v40, 2  ;;  %v4234_v15 = vmax.f32 %v4232_v63, %v4233_v32 }
 0x676   : > { %v4216_v53 = vrot.slane %v4215_v36, 1  ;;  %v4222_v11 = vmax.f32 %v4220_v26, %v4221_v18  ;;  %v4229_v3 = vmax.f32 %v4227_v40, %v4228_v6  ;;  %v4235_v0 = vrot.slane %v4234_v15, 2 }
 0x678   : > { %v4223_v60 = vrot.slane %v4222_v11, 1  ;;  %v4230_v42 = vrot.slane %v4229_v3, 1  ;;  %v4236_v16 = vmax.f32 %v4234_v15, %v4235_v0  ;;  %v4217_v27 = vmax.f32 %v4215_v36, %v4216_v53 }
 0x67a   : > { %v4231_v13 = vmax.f32 %v4229_v3, %v4230_v42  ;;  %v4237_v28 = vrot.slane %v4236_v16, 1  ;;  %v4224_v33 = vmax.f32 %v4222_v11, %v4223_v60 }
 0x67c   : > { %v4238_v14 = vmax.f32 %v4236_v16, %v4237_v28  ;;  %v4241_v44 = vmax.f32 %v4217_v27, %v4231_v13 }
 0x67e   : > { %v4242_v59 = vmax.f32 %v4224_v33, %v4238_v14  ;;  %v4245_v47 = vmax.f32 %v4241_v44, 0.0 }
 0x680   : > { %v4246_v17 = vmax.f32 %v4242_v59, 0.0 }
 0x682   : > { %v4252_v4 = vsel %vm3794_vm6, %v4246_v17, %v4245_v47 }
 0x683   : > { %4256 = vst [vmem:[%s8612_s17 + $0x2] sm:$0x3] %v4252_v4 }
 0x684 PF: > { %s15_s18 = sadd.s32 1, %s4567_s18  }
 0x685   : > { %p12_p4 = scmp.ge.s32.totalorder %s15_s18, 4  }
 0x687   :  { %14 = sbr.rel (!%p12_p4) target bundleno = 1 (0x1), region = 70 }

</bundles_post_ra>
